<compile_context>
chip_gen: v7x
topology: tpu7x:2x2x1
jax: 0.10.0
libtpu: 0.0.40
codegen_flags: <defaults>
</compile_context>

<pallas_src>
import functools
import math

import jax
import jax.numpy as jnp
from jax.experimental import pallas as pl
from jax.experimental.pallas import tpu as pltpu

# ----------------------- config (scaled-down synthetic sizes) -----------------------
B = 2          # batch
S_SRC = 16     # encoder (source) sequence length
S_DEC = 8      # decoder sequence length (word / tag / pos)
D = 32         # hidden size   (768 in the real model)
H = 4          # attention heads
DH = D // H    # head dim
V = 64         # vocab size    (50004 in the real model)
FF = 64        # MLP inner dim

# tile caps — collapse to full dims at toy sizes, give a sane plan at real sizes
TM = 256       # rows per matmul tile
TN = 512       # output columns per matmul tile
TK = 512       # contraction tile
TV = 2048      # vocab tile for the fused LM-head + NLL kernel


# ================================ Pallas kernels ====================================

def _linear_kernel(a_ref, w_ref, b_ref, o_ref, acc_ref, *, activation):
    """One (tm, tn) output tile of act(a @ w + bias); K-reduction over grid axis 2."""
    @pl.when(pl.program_id(2) == 0)
    def _():
        acc_ref[...] = jnp.zeros_like(acc_ref)

    acc_ref[...] += jnp.dot(a_ref[...], w_ref[...],
                            preferred_element_type=jnp.float32)

    @pl.when(pl.program_id(2) == pl.num_programs(2) - 1)
    def _():
        y = acc_ref[...] + b_ref[...]            # (tm, tn) + (1, tn)
        if activation == "gelu":
            y = jax.nn.gelu(y)
        o_ref[...] = y.astype(o_ref.dtype)


def pallas_linear(a, w, bias, activation=None):
    """act((M,K) @ (K,N) + bias) with bf16 MXU inputs and f32 accumulation."""
    M, K = a.shape
    K2, N = w.shape
    assert K == K2
    tm, tn, tk = min(M, TM), min(N, TN), min(K, TK)
    kern = functools.partial(_linear_kernel, activation=activation)
    return pl.pallas_call(
        kern,
        out_shape=jax.ShapeDtypeStruct((M, N), jnp.float32),
        grid=(pl.cdiv(M, tm), pl.cdiv(N, tn), pl.cdiv(K, tk)),
        in_specs=[pl.BlockSpec((tm, tk), lambda i, j, k: (i, k)),
                  pl.BlockSpec((tk, tn), lambda i, j, k: (k, j)),
                  pl.BlockSpec((1, tn), lambda i, j, k: (0, j))],
        out_specs=pl.BlockSpec((tm, tn), lambda i, j, k: (i, j)),
        scratch_shapes=[pltpu.VMEM((tm, tn), jnp.float32)],
        compiler_params=pltpu.CompilerParams(
            dimension_semantics=("parallel", "parallel", "arbitrary")),
    )(a.astype(jnp.bfloat16), w.astype(jnp.bfloat16),
      bias.reshape(1, N).astype(jnp.float32))


def _attn_kernel(q_ref, k_ref, v_ref, msk_ref, o_ref, *, causal, heads, dh):
    """All heads of one batch element: QK^T, masked softmax (f32), PV.

    q/k/v blocks: (1, S, D) bf16.  msk block: (1, 1, Sk) f32 key mask.
    Output block is lane-dense (1, Sq, D).  Mask is built in-kernel with iota.
    """
    q = q_ref[0]                                   # (Sq, D) bf16
    k = k_ref[0]                                   # (Sk, D) bf16
    v = v_ref[0]                                   # (Sk, D) bf16
    sq = q.shape[0]
    sk = k.shape[0]
    scale = 1.0 / math.sqrt(dh)

    kvalid = msk_ref[0] > 0.5                      # (1, Sk) bool
    if causal:
        row = jax.lax.broadcasted_iota(jnp.int32, (sq, sk), 0)
        col = jax.lax.broadcasted_iota(jnp.int32, (sq, sk), 1)
        valid = jnp.logical_and(kvalid, col <= row)      # (Sq, Sk)
    else:
        valid = jnp.broadcast_to(kvalid, (sq, sk))       # (Sq, Sk)

    outs = []
    for h in range(heads):
        sl = slice(h * dh, (h + 1) * dh)
        s = jax.lax.dot_general(q[:, sl], k[:, sl],
                                (((1,), (1,)), ((), ())),
                                preferred_element_type=jnp.float32) * scale
        s = jnp.where(valid, s, -1e30)
        mx = jnp.max(s, axis=-1, keepdims=True)
        p = jnp.exp(s - mx)
        p = p * pl.reciprocal(jnp.sum(p, axis=-1, keepdims=True), approx=True)
        outs.append(jax.lax.dot_general(p.astype(v.dtype), v[:, sl],
                                        (((1,), (0,)), ((), ())),
                                        preferred_element_type=jnp.float32))
    o_ref[0] = jnp.concatenate(outs, axis=-1).astype(o_ref.dtype)


def pallas_attention(q, k, v, key_mask, *, causal):
    """q: (B, Sq, D), k/v: (B, Sk, D), key_mask: (B, Sk) int (1 = real token)."""
    Bq, Sq, Dm = q.shape
    Sk = k.shape[1]
    msk = key_mask.reshape(Bq, 1, Sk).astype(jnp.float32)
    kern = functools.partial(_attn_kernel, causal=causal, heads=H, dh=DH)
    return pl.pallas_call(
        kern,
        out_shape=jax.ShapeDtypeStruct((Bq, Sq, Dm), jnp.float32),
        grid=(Bq,),
        in_specs=[pl.BlockSpec((1, Sq, Dm), lambda b: (b, 0, 0)),
                  pl.BlockSpec((1, Sk, Dm), lambda b: (b, 0, 0)),
                  pl.BlockSpec((1, Sk, Dm), lambda b: (b, 0, 0)),
                  pl.BlockSpec((1, 1, Sk), lambda b: (b, 0, 0))],
        out_specs=pl.BlockSpec((1, Sq, Dm), lambda b: (b, 0, 0)),
        compiler_params=pltpu.CompilerParams(dimension_semantics=("parallel",)),
    )(q.astype(jnp.bfloat16), k.astype(jnp.bfloat16), v.astype(jnp.bfloat16), msk)


def _lmhead_nll_kernel(lbl_ref, h_ref, w_ref, o_ref, m_ref, l_ref, pk_ref):
    """Fused tied-LM-head matmul + token NLL, vocab-tiled with online logsumexp.

    h block (N, D) and labels (N, 1) are resident across the vocab axis; wte
    block is (tv, D).  Logits never leave VMEM.
    """
    j = pl.program_id(0)

    @pl.when(j == 0)
    def _():
        m_ref[...] = jnp.full_like(m_ref, -1e30)
        l_ref[...] = jnp.zeros_like(l_ref)
        pk_ref[...] = jnp.zeros_like(pk_ref)

    logits = jax.lax.dot_general(h_ref[...], w_ref[...],
                                 (((1,), (1,)), ((), ())),
                                 preferred_element_type=jnp.float32)   # (N, tv)
    n, tv = logits.shape
    col = jax.lax.broadcasted_iota(jnp.int32, (n, tv), 1) + j * tv
    onehot = (col == lbl_ref[...]).astype(jnp.float32)
    pk_ref[...] += jnp.sum(onehot * logits, axis=-1, keepdims=True)

    m_old = m_ref[...]
    m_new = jnp.maximum(m_old, jnp.max(logits, axis=-1, keepdims=True))
    l_ref[...] = (l_ref[...] * jnp.exp(m_old - m_new)
                  + jnp.sum(jnp.exp(logits - m_new), axis=-1, keepdims=True))
    m_ref[...] = m_new

    @pl.when(j == pl.num_programs(0) - 1)
    def _():
        o_ref[...] = m_ref[...] + jnp.log(l_ref[...]) - pk_ref[...]


def pallas_lmhead_nll(h, wte, labels):
    """Per-token NLL of softmax(h @ wte^T) at `labels`. h: (N, D), wte: (V, D)."""
    N, Dm = h.shape
    Vv = wte.shape[0]
    tv = min(Vv, TV)
    lbl = labels.reshape(N, 1).astype(jnp.int32)
    out = pl.pallas_call(
        _lmhead_nll_kernel,
        out_shape=jax.ShapeDtypeStruct((N, 1), jnp.float32),
        grid=(pl.cdiv(Vv, tv),),
        in_specs=[pl.BlockSpec((N, 1), lambda j: (0, 0)),
                  pl.BlockSpec((N, Dm), lambda j: (0, 0)),
                  pl.BlockSpec((tv, Dm), lambda j: (j, 0))],
        out_specs=pl.BlockSpec((N, 1), lambda j: (0, 0)),
        scratch_shapes=[pltpu.VMEM((N, 1), jnp.float32),
                        pltpu.VMEM((N, 1), jnp.float32),
                        pltpu.VMEM((N, 1), jnp.float32)],
        compiler_params=pltpu.CompilerParams(dimension_semantics=("arbitrary",)),
    )(lbl, h.astype(jnp.bfloat16), wte.astype(jnp.bfloat16))
    return out[:, 0]


def _pointer_nll_kernel(a_ref, b_ref, lbl_ref, o_ref):
    """Per batch element: pointer logits = proj @ enc_h^T, then token NLL."""
    logits = jax.lax.dot_general(a_ref[0], b_ref[0],
                                 (((1,), (1,)), ((), ())),
                                 preferred_element_type=jnp.float32)   # (T, S)
    t, s = logits.shape
    mx = jnp.max(logits, axis=-1, keepdims=True)
    lse = jnp.log(jnp.sum(jnp.exp(logits - mx), axis=-1, keepdims=True)) + mx
    col = jax.lax.broadcasted_iota(jnp.int32, (t, s), 1)
    onehot = (col == lbl_ref[0]).astype(jnp.float32)
    picked = jnp.sum(onehot * logits, axis=-1, keepdims=True)
    o_ref[0] = lse - picked


def pallas_pointer_nll(proj, enc_h, pos_ids):
    """proj: (B, T, D), enc_h: (B, S, D), pos_ids: (B, T) -> nll (B, T, 1)."""
    Bb, T, Dm = proj.shape
    S = enc_h.shape[1]
    lbl = pos_ids.reshape(Bb, T, 1).astype(jnp.int32)
    return pl.pallas_call(
        _pointer_nll_kernel,
        out_shape=jax.ShapeDtypeStruct((Bb, T, 1), jnp.float32),
        grid=(Bb,),
        in_specs=[pl.BlockSpec((1, T, Dm), lambda b: (b, 0, 0)),
                  pl.BlockSpec((1, S, Dm), lambda b: (b, 0, 0)),
                  pl.BlockSpec((1, T, 1), lambda b: (b, 0, 0))],
        out_specs=pl.BlockSpec((1, T, 1), lambda b: (b, 0, 0)),
        compiler_params=pltpu.CompilerParams(dimension_semantics=("parallel",)),
    )(proj.astype(jnp.bfloat16), enc_h.astype(jnp.bfloat16), lbl)


# ================================ model glue (plain JAX) ============================

def linear3(x, w, b, activation=None):
    bb, ss, _ = x.shape
    y = pallas_linear(x.reshape(bb * ss, -1), w, b, activation)
    return y.reshape(bb, ss, w.shape[1])


def layer_norm(x, g, b, eps=1e-5):
    mu = jnp.mean(x, axis=-1, keepdims=True)
    var = jnp.mean((x - mu) ** 2, axis=-1, keepdims=True)
    return (x - mu) * jax.lax.rsqrt(var + eps) * g + b


def encoder_forward(p, ids, mask):
    """CodeBERT-like encoder (single synthetic layer, post-LN)."""
    h = jnp.take(p['wte'], ids, axis=0) + p['wpe'][None, :, :]
    qkv = linear3(h, p['wqkv'], p['bqkv'])                 # fused Q/K/V projection
    q, k, v = jnp.split(qkv, 3, axis=-1)
    a = pallas_attention(q, k, v, mask, causal=False)
    h = layer_norm(h + linear3(a, p['o'], p['o_b']), p['ln1_g'], p['ln1_b'])
    m = linear3(h, p['fc1'], p['fc1_b'], activation="gelu")  # FC1 + GELU fused
    m = linear3(m, p['fc2'], p['fc2_b'])
    h = layer_norm(h + m, p['ln2_g'], p['ln2_b'])
    return h


def gpt2_decoder_forward(p, ids, mask, enc_h, enc_mask):
    """GPT2-like decoder block with cross-attention + tied LM head (pre-LN).

    Returns (shifted LM loss, final hidden states after ln_f).
    """
    h = jnp.take(p['wte'], ids, axis=0) + p['wpe'][None, :, :]

    # causal self-attention
    x = layer_norm(h, p['ln1_g'], p['ln1_b'])
    qkv = linear3(x, p['wqkv'], p['bqkv'])
    q, k, v = jnp.split(qkv, 3, axis=-1)
    a = pallas_attention(q, k, v, mask, causal=True)
    h = h + linear3(a, p['o'], p['o_b'])

    # cross-attention to encoder states (padding mask generated in-kernel)
    x = layer_norm(h, p['lnx_g'], p['lnx_b'])
    q = linear3(x, p['xq'], p['xq_b'])
    kv = linear3(enc_h, p['wkv_x'], p['bkv_x'])            # fused cross K/V
    k, v = jnp.split(kv, 2, axis=-1)
    a = pallas_attention(q, k, v, enc_mask, causal=False)
    h = h + linear3(a, p['xo'], p['xo_b'])

    # MLP
    x = layer_norm(h, p['ln2_g'], p['ln2_b'])
    m = linear3(x, p['fc1'], p['fc1_b'], activation="gelu")
    m = linear3(m, p['fc2'], p['fc2_b'])
    h = h + m

    h = layer_norm(h, p['lnf_g'], p['lnf_b'])

    # HF GPT2LMHeadModel loss: shifted cross-entropy, tied embeddings as LM head.
    # LM-head matmul + NLL fused; (B*S, V) logits never materialized in HBM.
    h_shift = h[:, :-1, :].reshape(-1, D)
    lbl_shift = ids[:, 1:].reshape(-1)
    loss = jnp.mean(pallas_lmhead_nll(h_shift, p['wte'], lbl_shift))
    return loss, h


def pointer_loss(p, enc_h, dec_h, pos_ids):
    """Bilinear pointer network: CE loss over source positions (logits fused with NLL)."""
    proj = linear3(dec_h, p['w'], p['b'])                  # (B, S_DEC, D)
    nll = pallas_pointer_nll(proj, enc_h, pos_ids)         # (B, S_DEC, 1)
    return jnp.mean(nll)


def seq2edit_forward(params, source_ids, source_mask, word_ids, word_mask,
                     tag_ids, tag_mask, pos_ids):
    """is_training=True branch of seq2editModel.forward."""
    enc_h = encoder_forward(params['enc'], source_ids, source_mask)

    word_loss, _ = gpt2_decoder_forward(params['word'], word_ids, word_mask,
                                        enc_h, source_mask)
    tag_loss, tag_hidden = gpt2_decoder_forward(params['tag'], tag_ids, tag_mask,
                                                enc_h, source_mask)
    position_loss = pointer_loss(params['ptr'], enc_h, tag_hidden, pos_ids)
    return word_loss, tag_loss, position_loss


# ================================ param init ========================================

def init_params(key):
    keys = iter(jax.random.split(key, 128))

    def nrm(shape, scale=0.02):
        return (scale * jax.random.normal(next(keys), shape)).astype(jnp.float32)

    def zeros(n):
        return jnp.zeros((n,), jnp.float32)

    def ones(n):
        return jnp.ones((n,), jnp.float32)

    def enc_params():
        wq, wk, wv = nrm((D, D)), nrm((D, D)), nrm((D, D))
        return dict(
            wte=nrm((V, D)), wpe=nrm((S_SRC, D)),
            wqkv=jnp.concatenate([wq, wk, wv], axis=1), bqkv=zeros(3 * D),
            o=nrm((D, D)), o_b=zeros(D),
            ln1_g=ones(D), ln1_b=zeros(D),
            fc1=nrm((D, FF)), fc1_b=zeros(FF),
            fc2=nrm((FF, D)), fc2_b=zeros(D),
            ln2_g=ones(D), ln2_b=zeros(D),
        )

    def dec_params():
        wq, wk, wv = nrm((D, D)), nrm((D, D)), nrm((D, D))
        xk, xv = nrm((D, D)), nrm((D, D))
        return dict(
            wte=nrm((V, D)), wpe=nrm((S_DEC, D)),
            ln1_g=ones(D), ln1_b=zeros(D),
            wqkv=jnp.concatenate([wq, wk, wv], axis=1), bqkv=zeros(3 * D),
            o=nrm((D, D)), o_b=zeros(D),
            lnx_g=ones(D), lnx_b=zeros(D),
            xq=nrm((D, D)), xq_b=zeros(D),
            wkv_x=jnp.concatenate([xk, xv], axis=1), bkv_x=zeros(2 * D),
            xo=nrm((D, D)), xo_b=zeros(D),
            ln2_g=ones(D), ln2_b=zeros(D),
            fc1=nrm((D, FF)), fc1_b=zeros(FF),
            fc2=nrm((FF, D)), fc2_b=zeros(D),
            lnf_g=ones(D), lnf_b=zeros(D),
        )

    return dict(enc=enc_params(), word=dec_params(), tag=dec_params(),
                ptr=dict(w=nrm((D, D)), b=zeros(D)))


# ================================ main ==============================================

if __name__ == "__main__":
    key = jax.random.PRNGKey(0)
    kp, k1, k2, k3, k4 = jax.random.split(key, 5)

    params = init_params(kp)

    source_ids = jax.random.randint(k1, (B, S_SRC), 3, V, dtype=jnp.int32)
    word_ids = jax.random.randint(k2, (B, S_DEC), 3, V, dtype=jnp.int32)
    tag_ids = jax.random.randint(k3, (B, S_DEC), 3, V, dtype=jnp.int32)
    pos_ids = jax.random.randint(k4, (B, S_DEC), 0, S_SRC, dtype=jnp.int32)

    # attention masks: 1 = real token, last two source tokens of batch-1 padded
    source_mask = jnp.ones((B, S_SRC), jnp.int32).at[1, -2:].set(0)
    word_mask = jnp.ones((B, S_DEC), jnp.int32)
    tag_mask = jnp.ones((B, S_DEC), jnp.int32)

    fwd = jax.jit(seq2edit_forward)
    word_loss, tag_loss, position_loss = fwd(params, source_ids, source_mask,
                                             word_ids, word_mask,
                                             tag_ids, tag_mask, pos_ids)
    jax.block_until_ready((word_loss, tag_loss, position_loss))

    for name, val in (("word_loss", word_loss), ("tag_loss", tag_loss),
                      ("position_loss", position_loss)):
        assert val.shape == () and bool(jnp.isfinite(val)), name

    print("KERNEL_OK")
</pallas_src>

<mosaic_0001>
module attributes {stable_mosaic.version = 11 : i64} {
  func.func @_linear_kernel(%arg0: i32, %arg1: i32, %arg2: i32, %arg3: memref<32x32xbf16, #tpu.memory_space<vmem>>, %arg4: memref<32x64xbf16, #tpu.memory_space<vmem>>, %arg5: memref<1x64xf32, #tpu.memory_space<vmem>>, %arg6: memref<32x64xf32, #tpu.memory_space<vmem>>, %arg7: memref<32x64xf32, #tpu.memory_space<vmem>>) attributes {dimension_semantics = [#tpu.dimension_semantics<parallel>, #tpu.dimension_semantics<parallel>, #tpu.dimension_semantics<arbitrary>], iteration_bounds = array<i64: 1, 1, 1>, scalar_prefetch = 0 : i64, scratch_operands = 1 : i64, tpu.core_type = #tpu.core_type<tc>, window_params = [{transform_indices = @transform_0, window_bounds = array<i64: 32, 32>}, {transform_indices = @transform_1, window_bounds = array<i64: 32, 64>}, {transform_indices = @transform_2, window_bounds = array<i64: 1, 64>}, {transform_indices = @transform_3, window_bounds = array<i64: 32, 64>}]} {
    %c0_i32 = arith.constant 0 : i32
    %0 = arith.cmpi eq, %arg2, %c0_i32 : i32
    %1 = arith.extui %0 : i1 to i32
    %c0_i32_0 = arith.constant 0 : i32
    %2 = arith.cmpi ne, %1, %c0_i32_0 : i32
    scf.if %2 {
      %cst_10 = arith.constant 0.000000e+00 : f32
      %12 = vector.broadcast %cst_10 : f32 to vector<32x64xf32>
      %c0_11 = arith.constant 0 : index
      %c0_12 = arith.constant 0 : index
      %13 = vector.load %arg7[%c0_11, %c0_12] : memref<32x64xf32, #tpu.memory_space<vmem>>, vector<32x64xf32>
      tpu.vector_store %arg7[%c0_11, %c0_12], %12 {strides = array<i32>} : memref<32x64xf32, #tpu.memory_space<vmem>>, vector<32x64xf32>,
    } else {
    }
    %c0 = arith.constant 0 : index
    %c0_1 = arith.constant 0 : index
    %3 = vector.load %arg7[%c0, %c0_1] : memref<32x64xf32, #tpu.memory_space<vmem>>, vector<32x64xf32>
    %c0_2 = arith.constant 0 : index
    %c0_3 = arith.constant 0 : index
    %4 = vector.load %arg3[%c0_2, %c0_3] : memref<32x32xbf16, #tpu.memory_space<vmem>>, vector<32x32xbf16>
    %c0_4 = arith.constant 0 : index
    %c0_5 = arith.constant 0 : index
    %5 = vector.load %arg4[%c0_4, %c0_5] : memref<32x64xbf16, #tpu.memory_space<vmem>>, vector<32x64xbf16>
    %cst = arith.constant dense<0.000000e+00> : vector<32x64xf32>
    %6 = tpu.matmul %4, %5, %cst {dimension_numbers = #tpu.dot_dimension_numbers<[1], [0], [0], [1], [0, 0, 1, 1], [], []>} : vector<32x32xbf16>, vector<32x64xbf16>, vector<32x64xf32> -> vector<32x64xf32>
    %7 = arith.addf %3, %6 : vector<32x64xf32>
    %c0_6 = arith.constant 0 : index
    %c0_7 = arith.constant 0 : index
    %8 = vector.load %arg7[%c0_6, %c0_7] : memref<32x64xf32, #tpu.memory_space<vmem>>, vector<32x64xf32>
    tpu.vector_store %arg7[%c0_6, %c0_7], %7 {strides = array<i32>} : memref<32x64xf32, #tpu.memory_space<vmem>>, vector<32x64xf32>,
    %c0_i32_8 = arith.constant 0 : i32
    %9 = arith.cmpi eq, %arg2, %c0_i32_8 : i32
    %10 = arith.extui %9 : i1 to i32
    %c0_i32_9 = arith.constant 0 : i32
    %11 = arith.cmpi ne, %10, %c0_i32_9 : i32
    scf.if %11 {
      %c0_10 = arith.constant 0 : index
      %c0_11 = arith.constant 0 : index
      %12 = vector.load %arg7[%c0_10, %c0_11] : memref<32x64xf32, #tpu.memory_space<vmem>>, vector<32x64xf32>
      %c0_12 = arith.constant 0 : index
      %c0_13 = arith.constant 0 : index
      %13 = vector.load %arg5[%c0_12, %c0_13] : memref<1x64xf32, #tpu.memory_space<vmem>>, vector<1x64xf32>
      %14 = vector.broadcast %13 : vector<1x64xf32> to vector<32x64xf32>
      %15 = arith.addf %12, %14 : vector<32x64xf32>
      %16 = arith.mulf %15, %15 : vector<32x64xf32>
      %17 = arith.mulf %15, %16 : vector<32x64xf32>
      %cst_14 = arith.constant 4.471500e-02 : f32
      %18 = vector.broadcast %cst_14 : f32 to vector<32x64xf32>
      %19 = arith.mulf %18, %17 : vector<32x64xf32>
      %20 = arith.addf %15, %19 : vector<32x64xf32>
      %cst_15 = arith.constant 0.797884583 : f32
      %21 = vector.broadcast %cst_15 : f32 to vector<32x64xf32>
      %22 = arith.mulf %21, %20 : vector<32x64xf32>
      %23 = math.tanh %22 : vector<32x64xf32>
      %cst_16 = arith.constant 1.000000e+00 : f32
      %24 = vector.broadcast %cst_16 : f32 to vector<32x64xf32>
      %25 = arith.addf %24, %23 : vector<32x64xf32>
      %cst_17 = arith.constant 5.000000e-01 : f32
      %26 = vector.broadcast %cst_17 : f32 to vector<32x64xf32>
      %27 = arith.mulf %26, %25 : vector<32x64xf32>
      %28 = arith.mulf %15, %27 : vector<32x64xf32>
      %c0_18 = arith.constant 0 : index
      %c0_19 = arith.constant 0 : index
      %29 = vector.load %arg6[%c0_18, %c0_19] : memref<32x64xf32, #tpu.memory_space<vmem>>, vector<32x64xf32>
      tpu.vector_store %arg6[%c0_18, %c0_19], %28 {strides = array<i32>} : memref<32x64xf32, #tpu.memory_space<vmem>>, vector<32x64xf32>,
    } else {
    }
    return
  }
  func.func @transform_0(%arg0: i32, %arg1: i32, %arg2: i32) -> (i32, i32) {
    %c0_i32 = arith.constant 0 : i32
    return %arg0, %arg2 : i32, i32
  }
  func.func @transform_1(%arg0: i32, %arg1: i32, %arg2: i32) -> (i32, i32) {
    %c0_i32 = arith.constant 0 : i32
    return %arg2, %arg1 : i32, i32
  }
  func.func @transform_2(%arg0: i32, %arg1: i32, %arg2: i32) -> (i32, i32) {
    %c0_i32 = arith.constant 0 : i32
    %c0_i32_0 = arith.constant 0 : i32
    return %c0_i32, %arg1 : i32, i32
  }
  func.func @transform_3(%arg0: i32, %arg1: i32, %arg2: i32) -> (i32, i32) {
    %c0_i32 = arith.constant 0 : i32
    return %arg0, %arg1 : i32, i32
  }
}

module attributes {stable_mosaic.version = 11 : i64} {
  func.func @_attn_kernel(%arg0: i32, %arg1: memref<1x16x32xbf16, #tpu.memory_space<vmem>>, %arg2: memref<1x16x32xbf16, #tpu.memory_space<vmem>>, %arg3: memref<1x16x32xbf16, #tpu.memory_space<vmem>>, %arg4: memref<1x1x16xf32, #tpu.memory_space<vmem>>, %arg5: memref<1x16x32xf32, #tpu.memory_space<vmem>>) attributes {dimension_semantics = [#tpu.dimension_semantics<parallel>], iteration_bounds = array<i64: 2>, scalar_prefetch = 0 : i64, scratch_operands = 0 : i64, tpu.core_type = #tpu.core_type<tc>, window_params = [{transform_indices = @transform_0, window_bounds = array<i64: 1, 16, 32>}, {transform_indices = @transform_1, window_bounds = array<i64: 1, 16, 32>}, {transform_indices = @transform_2, window_bounds = array<i64: 1, 16, 32>}, {transform_indices = @transform_3, window_bounds = array<i64: 1, 1, 16>}, {transform_indices = @transform_4, window_bounds = array<i64: 1, 16, 32>}]} {
    %c0 = arith.constant 0 : index
    %c0_0 = arith.constant 0 : index
    %c0_1 = arith.constant 0 : index
    %0 = vector.load %arg1[%c0, %c0_0, %c0_1] : memref<1x16x32xbf16, #tpu.memory_space<vmem>>, vector<1x16x32xbf16>
    %1 = vector.shape_cast %0 : vector<1x16x32xbf16> to vector<16x32xbf16>
    %c0_2 = arith.constant 0 : index
    %c0_3 = arith.constant 0 : index
    %c0_4 = arith.constant 0 : index
    %2 = vector.load %arg2[%c0_2, %c0_3, %c0_4] : memref<1x16x32xbf16, #tpu.memory_space<vmem>>, vector<1x16x32xbf16>
    %3 = vector.shape_cast %2 : vector<1x16x32xbf16> to vector<16x32xbf16>
    %c0_5 = arith.constant 0 : index
    %c0_6 = arith.constant 0 : index
    %c0_7 = arith.constant 0 : index
    %4 = vector.load %arg3[%c0_5, %c0_6, %c0_7] : memref<1x16x32xbf16, #tpu.memory_space<vmem>>, vector<1x16x32xbf16>
    %5 = vector.shape_cast %4 : vector<1x16x32xbf16> to vector<16x32xbf16>
    %c0_8 = arith.constant 0 : index
    %c0_9 = arith.constant 0 : index
    %c0_10 = arith.constant 0 : index
    %6 = vector.load %arg4[%c0_8, %c0_9, %c0_10] : memref<1x1x16xf32, #tpu.memory_space<vmem>>, vector<1x1x16xf32>
    %7 = vector.shape_cast %6 : vector<1x1x16xf32> to vector<1x16xf32>
    %cst = arith.constant 5.000000e-01 : f32
    %8 = vector.broadcast %cst : f32 to vector<1x16xf32>
    %9 = arith.cmpf ogt, %7, %8 : vector<1x16xf32>
    %10 = vector.shape_cast %9 : vector<1x16xi1> to vector<1x16xi1>
    %11 = vector.broadcast %10 : vector<1x16xi1> to vector<16x16xi1>
    %12 = vector.extract_strided_slice %1 {offsets = [0, 0], sizes = [16, 8], strides = [1, 1]} : vector<16x32xbf16> to vector<16x8xbf16>
    %13 = vector.extract_strided_slice %3 {offsets = [0, 0], sizes = [16, 8], strides = [1, 1]} : vector<16x32xbf16> to vector<16x8xbf16>
    %cst_11 = arith.constant dense<0.000000e+00> : vector<16x16xf32>
    %14 = tpu.matmul %12, %13, %cst_11 {dimension_numbers = #tpu.dot_dimension_numbers<[1], [1], [0], [0], [0, 0, 1, 0], [], []>} : vector<16x8xbf16>, vector<16x8xbf16>, vector<16x16xf32> -> vector<16x16xf32>
    %cst_12 = arith.constant 0.353553385 : f32
    %15 = vector.broadcast %cst_12 : f32 to vector<16x16xf32>
    %16 = arith.mulf %14, %15 : vector<16x16xf32>
    %cst_13 = arith.constant -1.000000e+30 : f32
    %17 = vector.broadcast %cst_13 : f32 to vector<16x16xf32>
    %18 = arith.select %11, %16, %17 : vector<16x16xi1>, vector<16x16xf32>
    %cst_14 = arith.constant dense<0xFF800000> : vector<16xf32>
    %19 = vector.multi_reduction <maximumf>, %18, %cst_14 [1] : vector<16x16xf32> to vector<16xf32>
    %20 = vector.shape_cast %19 : vector<16xf32> to vector<16x1xf32>
    %21 = vector.broadcast %20 : vector<16x1xf32> to vector<16x16xf32>
    %22 = arith.subf %18, %21 : vector<16x16xf32>
    %23 = math.exp %22 : vector<16x16xf32>
    %cst_15 = arith.constant dense<0.000000e+00> : vector<16xf32>
    %24 = vector.multi_reduction <add>, %23, %cst_15 [1] : vector<16x16xf32> to vector<16xf32>
    %25 = vector.shape_cast %24 : vector<16xf32> to vector<16x1xf32>
    %26 = tpu.reciprocal %25 {approx = true} : vector<16x1xf32> -> vector<16x1xf32>
    %27 = vector.broadcast %26 : vector<16x1xf32> to vector<16x16xf32>
    %28 = arith.mulf %23, %27 : vector<16x16xf32>
    %29 = arith.truncf %28 : vector<16x16xf32> to vector<16x16xbf16>
    %30 = vector.extract_strided_slice %5 {offsets = [0, 0], sizes = [16, 8], strides = [1, 1]} : vector<16x32xbf16> to vector<16x8xbf16>
    %cst_16 = arith.constant dense<0.000000e+00> : vector<16x8xf32>
    %31 = tpu.matmul %29, %30, %cst_16 {dimension_numbers = #tpu.dot_dimension_numbers<[1], [0], [0], [1], [0, 0, 1, 1], [], []>} : vector<16x16xbf16>, vector<16x8xbf16>, vector<16x8xf32> -> vector<16x8xf32>
    %32 = vector.extract_strided_slice %1 {offsets = [0, 8], sizes = [16, 8], strides = [1, 1]} : vector<16x32xbf16> to vector<16x8xbf16>
    %33 = vector.extract_strided_slice %3 {offsets = [0, 8], sizes = [16, 8], strides = [1, 1]} : vector<16x32xbf16> to vector<16x8xbf16>
    %cst_17 = arith.constant dense<0.000000e+00> : vector<16x16xf32>
    %34 = tpu.matmul %32, %33, %cst_17 {dimension_numbers = #tpu.dot_dimension_numbers<[1], [1], [0], [0], [0, 0, 1, 0], [], []>} : vector<16x8xbf16>, vector<16x8xbf16>, vector<16x16xf32> -> vector<16x16xf32>
    %cst_18 = arith.constant 0.353553385 : f32
    %35 = vector.broadcast %cst_18 : f32 to vector<16x16xf32>
    %36 = arith.mulf %34, %35 : vector<16x16xf32>
    %cst_19 = arith.constant -1.000000e+30 : f32
    %37 = vector.broadcast %cst_19 : f32 to vector<16x16xf32>
    %38 = arith.select %11, %36, %37 : vector<16x16xi1>, vector<16x16xf32>
    %cst_20 = arith.constant dense<0xFF800000> : vector<16xf32>
    %39 = vector.multi_reduction <maximumf>, %38, %cst_20 [1] : vector<16x16xf32> to vector<16xf32>
    %40 = vector.shape_cast %39 : vector<16xf32> to vector<16x1xf32>
    %41 = vector.broadcast %40 : vector<16x1xf32> to vector<16x16xf32>
    %42 = arith.subf %38, %41 : vector<16x16xf32>
    %43 = math.exp %42 : vector<16x16xf32>
    %cst_21 = arith.constant dense<0.000000e+00> : vector<16xf32>
    %44 = vector.multi_reduction <add>, %43, %cst_21 [1] : vector<16x16xf32> to vector<16xf32>
    %45 = vector.shape_cast %44 : vector<16xf32> to vector<16x1xf32>
    %46 = tpu.reciprocal %45 {approx = true} : vector<16x1xf32> -> vector<16x1xf32>
    %47 = vector.broadcast %46 : vector<16x1xf32> to vector<16x16xf32>
    %48 = arith.mulf %43, %47 : vector<16x16xf32>
    %49 = arith.truncf %48 : vector<16x16xf32> to vector<16x16xbf16>
    %50 = vector.extract_strided_slice %5 {offsets = [0, 8], sizes = [16, 8], strides = [1, 1]} : vector<16x32xbf16> to vector<16x8xbf16>
    %cst_22 = arith.constant dense<0.000000e+00> : vector<16x8xf32>
    %51 = tpu.matmul %49, %50, %cst_22 {dimension_numbers = #tpu.dot_dimension_numbers<[1], [0], [0], [1], [0, 0, 1, 1], [], []>} : vector<16x16xbf16>, vector<16x8xbf16>, vector<16x8xf32> -> vector<16x8xf32>
    %52 = vector.extract_strided_slice %1 {offsets = [0, 16], sizes = [16, 8], strides = [1, 1]} : vector<16x32xbf16> to vector<16x8xbf16>
    %53 = vector.extract_strided_slice %3 {offsets = [0, 16], sizes = [16, 8], strides = [1, 1]} : vector<16x32xbf16> to vector<16x8xbf16>
    %cst_23 = arith.constant dense<0.000000e+00> : vector<16x16xf32>
    %54 = tpu.matmul %52, %53, %cst_23 {dimension_numbers = #tpu.dot_dimension_numbers<[1], [1], [0], [0], [0, 0, 1, 0], [], []>} : vector<16x8xbf16>, vector<16x8xbf16>, vector<16x16xf32> -> vector<16x16xf32>
    %cst_24 = arith.constant 0.353553385 : f32
    %55 = vector.broadcast %cst_24 : f32 to vector<16x16xf32>
    %56 = arith.mulf %54, %55 : vector<16x16xf32>
    %cst_25 = arith.constant -1.000000e+30 : f32
    %57 = vector.broadcast %cst_25 : f32 to vector<16x16xf32>
    %58 = arith.select %11, %56, %57 : vector<16x16xi1>, vector<16x16xf32>
    %cst_26 = arith.constant dense<0xFF800000> : vector<16xf32>
    %59 = vector.multi_reduction <maximumf>, %58, %cst_26 [1] : vector<16x16xf32> to vector<16xf32>
    %60 = vector.shape_cast %59 : vector<16xf32> to vector<16x1xf32>
    %61 = vector.broadcast %60 : vector<16x1xf32> to vector<16x16xf32>
    %62 = arith.subf %58, %61 : vector<16x16xf32>
    %63 = math.exp %62 : vector<16x16xf32>
    %cst_27 = arith.constant dense<0.000000e+00> : vector<16xf32>
    %64 = vector.multi_reduction <add>, %63, %cst_27 [1] : vector<16x16xf32> to vector<16xf32>
    %65 = vector.shape_cast %64 : vector<16xf32> to vector<16x1xf32>
    %66 = tpu.reciprocal %65 {approx = true} : vector<16x1xf32> -> vector<16x1xf32>
    %67 = vector.broadcast %66 : vector<16x1xf32> to vector<16x16xf32>
    %68 = arith.mulf %63, %67 : vector<16x16xf32>
    %69 = arith.truncf %68 : vector<16x16xf32> to vector<16x16xbf16>
    %70 = vector.extract_strided_slice %5 {offsets = [0, 16], sizes = [16, 8], strides = [1, 1]} : vector<16x32xbf16> to vector<16x8xbf16>
    %cst_28 = arith.constant dense<0.000000e+00> : vector<16x8xf32>
    %71 = tpu.matmul %69, %70, %cst_28 {dimension_numbers = #tpu.dot_dimension_numbers<[1], [0], [0], [1], [0, 0, 1, 1], [], []>} : vector<16x16xbf16>, vector<16x8xbf16>, vector<16x8xf32> -> vector<16x8xf32>
    %72 = vector.extract_strided_slice %1 {offsets = [0, 24], sizes = [16, 8], strides = [1, 1]} : vector<16x32xbf16> to vector<16x8xbf16>
    %73 = vector.extract_strided_slice %3 {offsets = [0, 24], sizes = [16, 8], strides = [1, 1]} : vector<16x32xbf16> to vector<16x8xbf16>
    %cst_29 = arith.constant dense<0.000000e+00> : vector<16x16xf32>
    %74 = tpu.matmul %72, %73, %cst_29 {dimension_numbers = #tpu.dot_dimension_numbers<[1], [1], [0], [0], [0, 0, 1, 0], [], []>} : vector<16x8xbf16>, vector<16x8xbf16>, vector<16x16xf32> -> vector<16x16xf32>
    %cst_30 = arith.constant 0.353553385 : f32
    %75 = vector.broadcast %cst_30 : f32 to vector<16x16xf32>
    %76 = arith.mulf %74, %75 : vector<16x16xf32>
    %cst_31 = arith.constant -1.000000e+30 : f32
    %77 = vector.broadcast %cst_31 : f32 to vector<16x16xf32>
    %78 = arith.select %11, %76, %77 : vector<16x16xi1>, vector<16x16xf32>
    %cst_32 = arith.constant dense<0xFF800000> : vector<16xf32>
    %79 = vector.multi_reduction <maximumf>, %78, %cst_32 [1] : vector<16x16xf32> to vector<16xf32>
    %80 = vector.shape_cast %79 : vector<16xf32> to vector<16x1xf32>
    %81 = vector.broadcast %80 : vector<16x1xf32> to vector<16x16xf32>
    %82 = arith.subf %78, %81 : vector<16x16xf32>
    %83 = math.exp %82 : vector<16x16xf32>
    %cst_33 = arith.constant dense<0.000000e+00> : vector<16xf32>
    %84 = vector.multi_reduction <add>, %83, %cst_33 [1] : vector<16x16xf32> to vector<16xf32>
    %85 = vector.shape_cast %84 : vector<16xf32> to vector<16x1xf32>
    %86 = tpu.reciprocal %85 {approx = true} : vector<16x1xf32> -> vector<16x1xf32>
    %87 = vector.broadcast %86 : vector<16x1xf32> to vector<16x16xf32>
    %88 = arith.mulf %83, %87 : vector<16x16xf32>
    %89 = arith.truncf %88 : vector<16x16xf32> to vector<16x16xbf16>
    %90 = vector.extract_strided_slice %5 {offsets = [0, 24], sizes = [16, 8], strides = [1, 1]} : vector<16x32xbf16> to vector<16x8xbf16>
    %cst_34 = arith.constant dense<0.000000e+00> : vector<16x8xf32>
    %91 = tpu.matmul %89, %90, %cst_34 {dimension_numbers = #tpu.dot_dimension_numbers<[1], [0], [0], [1], [0, 0, 1, 1], [], []>} : vector<16x16xbf16>, vector<16x8xbf16>, vector<16x8xf32> -> vector<16x8xf32>
    %92 = tpu.concatenate %31, %51, %71, %91 in 1 : vector<16x8xf32>, vector<16x8xf32>, vector<16x8xf32>, vector<16x8xf32> -> vector<16x32xf32>
    %c0_35 = arith.constant 0 : index
    %c0_36 = arith.constant 0 : index
    %c0_37 = arith.constant 0 : index
    %93 = vector.load %arg5[%c0_35, %c0_36, %c0_37] : memref<1x16x32xf32, #tpu.memory_space<vmem>>, vector<1x16x32xf32>
    %94 = vector.shape_cast %93 : vector<1x16x32xf32> to vector<16x32xf32>
    %95 = vector.shape_cast %92 : vector<16x32xf32> to vector<1x16x32xf32>
    tpu.vector_store %arg5[%c0_35, %c0_36, %c0_37], %95 {strides = array<i32>} : memref<1x16x32xf32, #tpu.memory_space<vmem>>, vector<1x16x32xf32>,
    return
  }
  func.func @transform_0(%arg0: i32) -> (i32, i32, i32) {
    %c0_i32 = arith.constant 0 : i32
    %c0_i32_0 = arith.constant 0 : i32
    %c0_i32_1 = arith.constant 0 : i32
    return %arg0, %c0_i32, %c0_i32_0 : i32, i32, i32
  }
  func.func @transform_1(%arg0: i32) -> (i32, i32, i32) {
    %c0_i32 = arith.constant 0 : i32
    %c0_i32_0 = arith.constant 0 : i32
    %c0_i32_1 = arith.constant 0 : i32
    return %arg0, %c0_i32, %c0_i32_0 : i32, i32, i32
  }
  func.func @transform_2(%arg0: i32) -> (i32, i32, i32) {
    %c0_i32 = arith.constant 0 : i32
    %c0_i32_0 = arith.constant 0 : i32
    %c0_i32_1 = arith.constant 0 : i32
    return %arg0, %c0_i32, %c0_i32_0 : i32, i32, i32
  }
  func.func @transform_3(%arg0: i32) -> (i32, i32, i32) {
    %c0_i32 = arith.constant 0 : i32
    %c0_i32_0 = arith.constant 0 : i32
    %c0_i32_1 = arith.constant 0 : i32
    return %arg0, %c0_i32, %c0_i32_0 : i32, i32, i32
  }
  func.func @transform_4(%arg0: i32) -> (i32, i32, i32) {
    %c0_i32 = arith.constant 0 : i32
    %c0_i32_0 = arith.constant 0 : i32
    %c0_i32_1 = arith.constant 0 : i32
    return %arg0, %c0_i32, %c0_i32_0 : i32, i32, i32
  }
}

module attributes {stable_mosaic.version = 11 : i64} {
  func.func @_linear_kernel(%arg0: i32, %arg1: i32, %arg2: i32, %arg3: memref<32x32xbf16, #tpu.memory_space<vmem>>, %arg4: memref<32x96xbf16, #tpu.memory_space<vmem>>, %arg5: memref<1x96xf32, #tpu.memory_space<vmem>>, %arg6: memref<32x96xf32, #tpu.memory_space<vmem>>, %arg7: memref<32x96xf32, #tpu.memory_space<vmem>>) attributes {dimension_semantics = [#tpu.dimension_semantics<parallel>, #tpu.dimension_semantics<parallel>, #tpu.dimension_semantics<arbitrary>], iteration_bounds = array<i64: 1, 1, 1>, scalar_prefetch = 0 : i64, scratch_operands = 1 : i64, tpu.core_type = #tpu.core_type<tc>, window_params = [{transform_indices = @transform_0, window_bounds = array<i64: 32, 32>}, {transform_indices = @transform_1, window_bounds = array<i64: 32, 96>}, {transform_indices = @transform_2, window_bounds = array<i64: 1, 96>}, {transform_indices = @transform_3, window_bounds = array<i64: 32, 96>}]} {
    %c0_i32 = arith.constant 0 : i32
    %0 = arith.cmpi eq, %arg2, %c0_i32 : i32
    %1 = arith.extui %0 : i1 to i32
    %c0_i32_0 = arith.constant 0 : i32
    %2 = arith.cmpi ne, %1, %c0_i32_0 : i32
    scf.if %2 {
      %cst_10 = arith.constant 0.000000e+00 : f32
      %12 = vector.broadcast %cst_10 : f32 to vector<32x96xf32>
      %c0_11 = arith.constant 0 : index
      %c0_12 = arith.constant 0 : index
      %13 = vector.load %arg7[%c0_11, %c0_12] : memref<32x96xf32, #tpu.memory_space<vmem>>, vector<32x96xf32>
      tpu.vector_store %arg7[%c0_11, %c0_12], %12 {strides = array<i32>} : memref<32x96xf32, #tpu.memory_space<vmem>>, vector<32x96xf32>,
    } else {
    }
    %c0 = arith.constant 0 : index
    %c0_1 = arith.constant 0 : index
    %3 = vector.load %arg7[%c0, %c0_1] : memref<32x96xf32, #tpu.memory_space<vmem>>, vector<32x96xf32>
    %c0_2 = arith.constant 0 : index
    %c0_3 = arith.constant 0 : index
    %4 = vector.load %arg3[%c0_2, %c0_3] : memref<32x32xbf16, #tpu.memory_space<vmem>>, vector<32x32xbf16>
    %c0_4 = arith.constant 0 : index
    %c0_5 = arith.constant 0 : index
    %5 = vector.load %arg4[%c0_4, %c0_5] : memref<32x96xbf16, #tpu.memory_space<vmem>>, vector<32x96xbf16>
    %cst = arith.constant dense<0.000000e+00> : vector<32x96xf32>
    %6 = tpu.matmul %4, %5, %cst {dimension_numbers = #tpu.dot_dimension_numbers<[1], [0], [0], [1], [0, 0, 1, 1], [], []>} : vector<32x32xbf16>, vector<32x96xbf16>, vector<32x96xf32> -> vector<32x96xf32>
    %7 = arith.addf %3, %6 : vector<32x96xf32>
    %c0_6 = arith.constant 0 : index
    %c0_7 = arith.constant 0 : index
    %8 = vector.load %arg7[%c0_6, %c0_7] : memref<32x96xf32, #tpu.memory_space<vmem>>, vector<32x96xf32>
    tpu.vector_store %arg7[%c0_6, %c0_7], %7 {strides = array<i32>} : memref<32x96xf32, #tpu.memory_space<vmem>>, vector<32x96xf32>,
    %c0_i32_8 = arith.constant 0 : i32
    %9 = arith.cmpi eq, %arg2, %c0_i32_8 : i32
    %10 = arith.extui %9 : i1 to i32
    %c0_i32_9 = arith.constant 0 : i32
    %11 = arith.cmpi ne, %10, %c0_i32_9 : i32
    scf.if %11 {
      %c0_10 = arith.constant 0 : index
      %c0_11 = arith.constant 0 : index
      %12 = vector.load %arg7[%c0_10, %c0_11] : memref<32x96xf32, #tpu.memory_space<vmem>>, vector<32x96xf32>
      %c0_12 = arith.constant 0 : index
      %c0_13 = arith.constant 0 : index
      %13 = vector.load %arg5[%c0_12, %c0_13] : memref<1x96xf32, #tpu.memory_space<vmem>>, vector<1x96xf32>
      %14 = vector.broadcast %13 : vector<1x96xf32> to vector<32x96xf32>
      %15 = arith.addf %12, %14 : vector<32x96xf32>
      %c0_14 = arith.constant 0 : index
      %c0_15 = arith.constant 0 : index
      %16 = vector.load %arg6[%c0_14, %c0_15] : memref<32x96xf32, #tpu.memory_space<vmem>>, vector<32x96xf32>
      tpu.vector_store %arg6[%c0_14, %c0_15], %15 {strides = array<i32>} : memref<32x96xf32, #tpu.memory_space<vmem>>, vector<32x96xf32>,
    } else {
    }
    return
  }
  func.func @transform_0(%arg0: i32, %arg1: i32, %arg2: i32) -> (i32, i32) {
    %c0_i32 = arith.constant 0 : i32
    return %arg0, %arg2 : i32, i32
  }
  func.func @transform_1(%arg0: i32, %arg1: i32, %arg2: i32) -> (i32, i32) {
    %c0_i32 = arith.constant 0 : i32
    return %arg2, %arg1 : i32, i32
  }
  func.func @transform_2(%arg0: i32, %arg1: i32, %arg2: i32) -> (i32, i32) {
    %c0_i32 = arith.constant 0 : i32
    %c0_i32_0 = arith.constant 0 : i32
    return %c0_i32, %arg1 : i32, i32
  }
  func.func @transform_3(%arg0: i32, %arg1: i32, %arg2: i32) -> (i32, i32) {
    %c0_i32 = arith.constant 0 : i32
    return %arg0, %arg1 : i32, i32
  }
}

module attributes {stable_mosaic.version = 11 : i64} {
  func.func @_linear_kernel(%arg0: i32, %arg1: i32, %arg2: i32, %arg3: memref<32x32xbf16, #tpu.memory_space<vmem>>, %arg4: memref<32x32xbf16, #tpu.memory_space<vmem>>, %arg5: memref<1x32xf32, #tpu.memory_space<vmem>>, %arg6: memref<32x32xf32, #tpu.memory_space<vmem>>, %arg7: memref<32x32xf32, #tpu.memory_space<vmem>>) attributes {dimension_semantics = [#tpu.dimension_semantics<parallel>, #tpu.dimension_semantics<parallel>, #tpu.dimension_semantics<arbitrary>], iteration_bounds = array<i64: 1, 1, 1>, scalar_prefetch = 0 : i64, scratch_operands = 1 : i64, tpu.core_type = #tpu.core_type<tc>, window_params = [{transform_indices = @transform_0, window_bounds = array<i64: 32, 32>}, {transform_indices = @transform_1, window_bounds = array<i64: 32, 32>}, {transform_indices = @transform_2, window_bounds = array<i64: 1, 32>}, {transform_indices = @transform_3, window_bounds = array<i64: 32, 32>}]} {
    %c0_i32 = arith.constant 0 : i32
    %0 = arith.cmpi eq, %arg2, %c0_i32 : i32
    %1 = arith.extui %0 : i1 to i32
    %c0_i32_0 = arith.constant 0 : i32
    %2 = arith.cmpi ne, %1, %c0_i32_0 : i32
    scf.if %2 {
      %cst_10 = arith.constant 0.000000e+00 : f32
      %12 = vector.broadcast %cst_10 : f32 to vector<32x32xf32>
      %c0_11 = arith.constant 0 : index
      %c0_12 = arith.constant 0 : index
      %13 = vector.load %arg7[%c0_11, %c0_12] : memref<32x32xf32, #tpu.memory_space<vmem>>, vector<32x32xf32>
      tpu.vector_store %arg7[%c0_11, %c0_12], %12 {strides = array<i32>} : memref<32x32xf32, #tpu.memory_space<vmem>>, vector<32x32xf32>,
    } else {
    }
    %c0 = arith.constant 0 : index
    %c0_1 = arith.constant 0 : index
    %3 = vector.load %arg7[%c0, %c0_1] : memref<32x32xf32, #tpu.memory_space<vmem>>, vector<32x32xf32>
    %c0_2 = arith.constant 0 : index
    %c0_3 = arith.constant 0 : index
    %4 = vector.load %arg3[%c0_2, %c0_3] : memref<32x32xbf16, #tpu.memory_space<vmem>>, vector<32x32xbf16>
    %c0_4 = arith.constant 0 : index
    %c0_5 = arith.constant 0 : index
    %5 = vector.load %arg4[%c0_4, %c0_5] : memref<32x32xbf16, #tpu.memory_space<vmem>>, vector<32x32xbf16>
    %cst = arith.constant dense<0.000000e+00> : vector<32x32xf32>
    %6 = tpu.matmul %4, %5, %cst {dimension_numbers = #tpu.dot_dimension_numbers<[1], [0], [0], [1], [0, 0, 1, 1], [], []>} : vector<32x32xbf16>, vector<32x32xbf16>, vector<32x32xf32> -> vector<32x32xf32>
    %7 = arith.addf %3, %6 : vector<32x32xf32>
    %c0_6 = arith.constant 0 : index
    %c0_7 = arith.constant 0 : index
    %8 = vector.load %arg7[%c0_6, %c0_7] : memref<32x32xf32, #tpu.memory_space<vmem>>, vector<32x32xf32>
    tpu.vector_store %arg7[%c0_6, %c0_7], %7 {strides = array<i32>} : memref<32x32xf32, #tpu.memory_space<vmem>>, vector<32x32xf32>,
    %c0_i32_8 = arith.constant 0 : i32
    %9 = arith.cmpi eq, %arg2, %c0_i32_8 : i32
    %10 = arith.extui %9 : i1 to i32
    %c0_i32_9 = arith.constant 0 : i32
    %11 = arith.cmpi ne, %10, %c0_i32_9 : i32
    scf.if %11 {
      %c0_10 = arith.constant 0 : index
      %c0_11 = arith.constant 0 : index
      %12 = vector.load %arg7[%c0_10, %c0_11] : memref<32x32xf32, #tpu.memory_space<vmem>>, vector<32x32xf32>
      %c0_12 = arith.constant 0 : index
      %c0_13 = arith.constant 0 : index
      %13 = vector.load %arg5[%c0_12, %c0_13] : memref<1x32xf32, #tpu.memory_space<vmem>>, vector<1x32xf32>
      %14 = vector.broadcast %13 : vector<1x32xf32> to vector<32x32xf32>
      %15 = arith.addf %12, %14 : vector<32x32xf32>
      %c0_14 = arith.constant 0 : index
      %c0_15 = arith.constant 0 : index
      %16 = vector.load %arg6[%c0_14, %c0_15] : memref<32x32xf32, #tpu.memory_space<vmem>>, vector<32x32xf32>
      tpu.vector_store %arg6[%c0_14, %c0_15], %15 {strides = array<i32>} : memref<32x32xf32, #tpu.memory_space<vmem>>, vector<32x32xf32>,
    } else {
    }
    return
  }
  func.func @transform_0(%arg0: i32, %arg1: i32, %arg2: i32) -> (i32, i32) {
    %c0_i32 = arith.constant 0 : i32
    return %arg0, %arg2 : i32, i32
  }
  func.func @transform_1(%arg0: i32, %arg1: i32, %arg2: i32) -> (i32, i32) {
    %c0_i32 = arith.constant 0 : i32
    return %arg2, %arg1 : i32, i32
  }
  func.func @transform_2(%arg0: i32, %arg1: i32, %arg2: i32) -> (i32, i32) {
    %c0_i32 = arith.constant 0 : i32
    %c0_i32_0 = arith.constant 0 : i32
    return %c0_i32, %arg1 : i32, i32
  }
  func.func @transform_3(%arg0: i32, %arg1: i32, %arg2: i32) -> (i32, i32) {
    %c0_i32 = arith.constant 0 : i32
    return %arg0, %arg1 : i32, i32
  }
}

module attributes {stable_mosaic.version = 11 : i64} {
  func.func @_linear_kernel(%arg0: i32, %arg1: i32, %arg2: i32, %arg3: memref<32x64xbf16, #tpu.memory_space<vmem>>, %arg4: memref<64x32xbf16, #tpu.memory_space<vmem>>, %arg5: memref<1x32xf32, #tpu.memory_space<vmem>>, %arg6: memref<32x32xf32, #tpu.memory_space<vmem>>, %arg7: memref<32x32xf32, #tpu.memory_space<vmem>>) attributes {dimension_semantics = [#tpu.dimension_semantics<parallel>, #tpu.dimension_semantics<parallel>, #tpu.dimension_semantics<arbitrary>], iteration_bounds = array<i64: 1, 1, 1>, scalar_prefetch = 0 : i64, scratch_operands = 1 : i64, tpu.core_type = #tpu.core_type<tc>, window_params = [{transform_indices = @transform_0, window_bounds = array<i64: 32, 64>}, {transform_indices = @transform_1, window_bounds = array<i64: 64, 32>}, {transform_indices = @transform_2, window_bounds = array<i64: 1, 32>}, {transform_indices = @transform_3, window_bounds = array<i64: 32, 32>}]} {
    %c0_i32 = arith.constant 0 : i32
    %0 = arith.cmpi eq, %arg2, %c0_i32 : i32
    %1 = arith.extui %0 : i1 to i32
    %c0_i32_0 = arith.constant 0 : i32
    %2 = arith.cmpi ne, %1, %c0_i32_0 : i32
    scf.if %2 {
      %cst_10 = arith.constant 0.000000e+00 : f32
      %12 = vector.broadcast %cst_10 : f32 to vector<32x32xf32>
      %c0_11 = arith.constant 0 : index
      %c0_12 = arith.constant 0 : index
      %13 = vector.load %arg7[%c0_11, %c0_12] : memref<32x32xf32, #tpu.memory_space<vmem>>, vector<32x32xf32>
      tpu.vector_store %arg7[%c0_11, %c0_12], %12 {strides = array<i32>} : memref<32x32xf32, #tpu.memory_space<vmem>>, vector<32x32xf32>,
    } else {
    }
    %c0 = arith.constant 0 : index
    %c0_1 = arith.constant 0 : index
    %3 = vector.load %arg7[%c0, %c0_1] : memref<32x32xf32, #tpu.memory_space<vmem>>, vector<32x32xf32>
    %c0_2 = arith.constant 0 : index
    %c0_3 = arith.constant 0 : index
    %4 = vector.load %arg3[%c0_2, %c0_3] : memref<32x64xbf16, #tpu.memory_space<vmem>>, vector<32x64xbf16>
    %c0_4 = arith.constant 0 : index
    %c0_5 = arith.constant 0 : index
    %5 = vector.load %arg4[%c0_4, %c0_5] : memref<64x32xbf16, #tpu.memory_space<vmem>>, vector<64x32xbf16>
    %cst = arith.constant dense<0.000000e+00> : vector<32x32xf32>
    %6 = tpu.matmul %4, %5, %cst {dimension_numbers = #tpu.dot_dimension_numbers<[1], [0], [0], [1], [0, 0, 1, 1], [], []>} : vector<32x64xbf16>, vector<64x32xbf16>, vector<32x32xf32> -> vector<32x32xf32>
    %7 = arith.addf %3, %6 : vector<32x32xf32>
    %c0_6 = arith.constant 0 : index
    %c0_7 = arith.constant 0 : index
    %8 = vector.load %arg7[%c0_6, %c0_7] : memref<32x32xf32, #tpu.memory_space<vmem>>, vector<32x32xf32>
    tpu.vector_store %arg7[%c0_6, %c0_7], %7 {strides = array<i32>} : memref<32x32xf32, #tpu.memory_space<vmem>>, vector<32x32xf32>,
    %c0_i32_8 = arith.constant 0 : i32
    %9 = arith.cmpi eq, %arg2, %c0_i32_8 : i32
    %10 = arith.extui %9 : i1 to i32
    %c0_i32_9 = arith.constant 0 : i32
    %11 = arith.cmpi ne, %10, %c0_i32_9 : i32
    scf.if %11 {
      %c0_10 = arith.constant 0 : index
      %c0_11 = arith.constant 0 : index
      %12 = vector.load %arg7[%c0_10, %c0_11] : memref<32x32xf32, #tpu.memory_space<vmem>>, vector<32x32xf32>
      %c0_12 = arith.constant 0 : index
      %c0_13 = arith.constant 0 : index
      %13 = vector.load %arg5[%c0_12, %c0_13] : memref<1x32xf32, #tpu.memory_space<vmem>>, vector<1x32xf32>
      %14 = vector.broadcast %13 : vector<1x32xf32> to vector<32x32xf32>
      %15 = arith.addf %12, %14 : vector<32x32xf32>
      %c0_14 = arith.constant 0 : index
      %c0_15 = arith.constant 0 : index
      %16 = vector.load %arg6[%c0_14, %c0_15] : memref<32x32xf32, #tpu.memory_space<vmem>>, vector<32x32xf32>
      tpu.vector_store %arg6[%c0_14, %c0_15], %15 {strides = array<i32>} : memref<32x32xf32, #tpu.memory_space<vmem>>, vector<32x32xf32>,
    } else {
    }
    return
  }
  func.func @transform_0(%arg0: i32, %arg1: i32, %arg2: i32) -> (i32, i32) {
    %c0_i32 = arith.constant 0 : i32
    return %arg0, %arg2 : i32, i32
  }
  func.func @transform_1(%arg0: i32, %arg1: i32, %arg2: i32) -> (i32, i32) {
    %c0_i32 = arith.constant 0 : i32
    return %arg2, %arg1 : i32, i32
  }
  func.func @transform_2(%arg0: i32, %arg1: i32, %arg2: i32) -> (i32, i32) {
    %c0_i32 = arith.constant 0 : i32
    %c0_i32_0 = arith.constant 0 : i32
    return %c0_i32, %arg1 : i32, i32
  }
  func.func @transform_3(%arg0: i32, %arg1: i32, %arg2: i32) -> (i32, i32) {
    %c0_i32 = arith.constant 0 : i32
    return %arg0, %arg1 : i32, i32
  }
}

module attributes {stable_mosaic.version = 11 : i64} {
  func.func @_linear_kernel(%arg0: i32, %arg1: i32, %arg2: i32, %arg3: memref<16x32xbf16, #tpu.memory_space<vmem>>, %arg4: memref<32x96xbf16, #tpu.memory_space<vmem>>, %arg5: memref<1x96xf32, #tpu.memory_space<vmem>>, %arg6: memref<16x96xf32, #tpu.memory_space<vmem>>, %arg7: memref<16x96xf32, #tpu.memory_space<vmem>>) attributes {dimension_semantics = [#tpu.dimension_semantics<parallel>, #tpu.dimension_semantics<parallel>, #tpu.dimension_semantics<arbitrary>], iteration_bounds = array<i64: 1, 1, 1>, scalar_prefetch = 0 : i64, scratch_operands = 1 : i64, tpu.core_type = #tpu.core_type<tc>, window_params = [{transform_indices = @transform_0, window_bounds = array<i64: 16, 32>}, {transform_indices = @transform_1, window_bounds = array<i64: 32, 96>}, {transform_indices = @transform_2, window_bounds = array<i64: 1, 96>}, {transform_indices = @transform_3, window_bounds = array<i64: 16, 96>}]} {
    %c0_i32 = arith.constant 0 : i32
    %0 = arith.cmpi eq, %arg2, %c0_i32 : i32
    %1 = arith.extui %0 : i1 to i32
    %c0_i32_0 = arith.constant 0 : i32
    %2 = arith.cmpi ne, %1, %c0_i32_0 : i32
    scf.if %2 {
      %cst_10 = arith.constant 0.000000e+00 : f32
      %12 = vector.broadcast %cst_10 : f32 to vector<16x96xf32>
      %c0_11 = arith.constant 0 : index
      %c0_12 = arith.constant 0 : index
      %13 = vector.load %arg7[%c0_11, %c0_12] : memref<16x96xf32, #tpu.memory_space<vmem>>, vector<16x96xf32>
      tpu.vector_store %arg7[%c0_11, %c0_12], %12 {strides = array<i32>} : memref<16x96xf32, #tpu.memory_space<vmem>>, vector<16x96xf32>,
    } else {
    }
    %c0 = arith.constant 0 : index
    %c0_1 = arith.constant 0 : index
    %3 = vector.load %arg7[%c0, %c0_1] : memref<16x96xf32, #tpu.memory_space<vmem>>, vector<16x96xf32>
    %c0_2 = arith.constant 0 : index
    %c0_3 = arith.constant 0 : index
    %4 = vector.load %arg3[%c0_2, %c0_3] : memref<16x32xbf16, #tpu.memory_space<vmem>>, vector<16x32xbf16>
    %c0_4 = arith.constant 0 : index
    %c0_5 = arith.constant 0 : index
    %5 = vector.load %arg4[%c0_4, %c0_5] : memref<32x96xbf16, #tpu.memory_space<vmem>>, vector<32x96xbf16>
    %cst = arith.constant dense<0.000000e+00> : vector<16x96xf32>
    %6 = tpu.matmul %4, %5, %cst {dimension_numbers = #tpu.dot_dimension_numbers<[1], [0], [0], [1], [0, 0, 1, 1], [], []>} : vector<16x32xbf16>, vector<32x96xbf16>, vector<16x96xf32> -> vector<16x96xf32>
    %7 = arith.addf %3, %6 : vector<16x96xf32>
    %c0_6 = arith.constant 0 : index
    %c0_7 = arith.constant 0 : index
    %8 = vector.load %arg7[%c0_6, %c0_7] : memref<16x96xf32, #tpu.memory_space<vmem>>, vector<16x96xf32>
    tpu.vector_store %arg7[%c0_6, %c0_7], %7 {strides = array<i32>} : memref<16x96xf32, #tpu.memory_space<vmem>>, vector<16x96xf32>,
    %c0_i32_8 = arith.constant 0 : i32
    %9 = arith.cmpi eq, %arg2, %c0_i32_8 : i32
    %10 = arith.extui %9 : i1 to i32
    %c0_i32_9 = arith.constant 0 : i32
    %11 = arith.cmpi ne, %10, %c0_i32_9 : i32
    scf.if %11 {
      %c0_10 = arith.constant 0 : index
      %c0_11 = arith.constant 0 : index
      %12 = vector.load %arg7[%c0_10, %c0_11] : memref<16x96xf32, #tpu.memory_space<vmem>>, vector<16x96xf32>
      %c0_12 = arith.constant 0 : index
      %c0_13 = arith.constant 0 : index
      %13 = vector.load %arg5[%c0_12, %c0_13] : memref<1x96xf32, #tpu.memory_space<vmem>>, vector<1x96xf32>
      %14 = vector.broadcast %13 : vector<1x96xf32> to vector<16x96xf32>
      %15 = arith.addf %12, %14 : vector<16x96xf32>
      %c0_14 = arith.constant 0 : index
      %c0_15 = arith.constant 0 : index
      %16 = vector.load %arg6[%c0_14, %c0_15] : memref<16x96xf32, #tpu.memory_space<vmem>>, vector<16x96xf32>
      tpu.vector_store %arg6[%c0_14, %c0_15], %15 {strides = array<i32>} : memref<16x96xf32, #tpu.memory_space<vmem>>, vector<16x96xf32>,
    } else {
    }
    return
  }
  func.func @transform_0(%arg0: i32, %arg1: i32, %arg2: i32) -> (i32, i32) {
    %c0_i32 = arith.constant 0 : i32
    return %arg0, %arg2 : i32, i32
  }
  func.func @transform_1(%arg0: i32, %arg1: i32, %arg2: i32) -> (i32, i32) {
    %c0_i32 = arith.constant 0 : i32
    return %arg2, %arg1 : i32, i32
  }
  func.func @transform_2(%arg0: i32, %arg1: i32, %arg2: i32) -> (i32, i32) {
    %c0_i32 = arith.constant 0 : i32
    %c0_i32_0 = arith.constant 0 : i32
    return %c0_i32, %arg1 : i32, i32
  }
  func.func @transform_3(%arg0: i32, %arg1: i32, %arg2: i32) -> (i32, i32) {
    %c0_i32 = arith.constant 0 : i32
    return %arg0, %arg1 : i32, i32
  }
}

module attributes {stable_mosaic.version = 11 : i64} {
  func.func @_attn_kernel(%arg0: i32, %arg1: memref<1x8x32xbf16, #tpu.memory_space<vmem>>, %arg2: memref<1x8x32xbf16, #tpu.memory_space<vmem>>, %arg3: memref<1x8x32xbf16, #tpu.memory_space<vmem>>, %arg4: memref<1x1x8xf32, #tpu.memory_space<vmem>>, %arg5: memref<1x8x32xf32, #tpu.memory_space<vmem>>) attributes {dimension_semantics = [#tpu.dimension_semantics<parallel>], iteration_bounds = array<i64: 2>, scalar_prefetch = 0 : i64, scratch_operands = 0 : i64, tpu.core_type = #tpu.core_type<tc>, window_params = [{transform_indices = @transform_0, window_bounds = array<i64: 1, 8, 32>}, {transform_indices = @transform_1, window_bounds = array<i64: 1, 8, 32>}, {transform_indices = @transform_2, window_bounds = array<i64: 1, 8, 32>}, {transform_indices = @transform_3, window_bounds = array<i64: 1, 1, 8>}, {transform_indices = @transform_4, window_bounds = array<i64: 1, 8, 32>}]} {
    %c0 = arith.constant 0 : index
    %c0_0 = arith.constant 0 : index
    %c0_1 = arith.constant 0 : index
    %0 = vector.load %arg1[%c0, %c0_0, %c0_1] : memref<1x8x32xbf16, #tpu.memory_space<vmem>>, vector<1x8x32xbf16>
    %1 = vector.shape_cast %0 : vector<1x8x32xbf16> to vector<8x32xbf16>
    %c0_2 = arith.constant 0 : index
    %c0_3 = arith.constant 0 : index
    %c0_4 = arith.constant 0 : index
    %2 = vector.load %arg2[%c0_2, %c0_3, %c0_4] : memref<1x8x32xbf16, #tpu.memory_space<vmem>>, vector<1x8x32xbf16>
    %3 = vector.shape_cast %2 : vector<1x8x32xbf16> to vector<8x32xbf16>
    %c0_5 = arith.constant 0 : index
    %c0_6 = arith.constant 0 : index
    %c0_7 = arith.constant 0 : index
    %4 = vector.load %arg3[%c0_5, %c0_6, %c0_7] : memref<1x8x32xbf16, #tpu.memory_space<vmem>>, vector<1x8x32xbf16>
    %5 = vector.shape_cast %4 : vector<1x8x32xbf16> to vector<8x32xbf16>
    %c0_8 = arith.constant 0 : index
    %c0_9 = arith.constant 0 : index
    %c0_10 = arith.constant 0 : index
    %6 = vector.load %arg4[%c0_8, %c0_9, %c0_10] : memref<1x1x8xf32, #tpu.memory_space<vmem>>, vector<1x1x8xf32>
    %7 = vector.shape_cast %6 : vector<1x1x8xf32> to vector<1x8xf32>
    %cst = arith.constant 5.000000e-01 : f32
    %8 = vector.broadcast %cst : f32 to vector<1x8xf32>
    %9 = arith.cmpf ogt, %7, %8 : vector<1x8xf32>
    %10 = tpu.iota {dimensions = array<i32: 0>} : vector<8x8xi32>
    %11 = tpu.iota {dimensions = array<i32: 1>} : vector<8x8xi32>
    %12 = arith.cmpi sle, %11, %10 : vector<8x8xi32>
    %13 = vector.broadcast %9 : vector<1x8xi1> to vector<8x8xi1>
    %14 = arith.andi %13, %12 : vector<8x8xi1>
    %15 = vector.extract_strided_slice %1 {offsets = [0, 0], sizes = [8, 8], strides = [1, 1]} : vector<8x32xbf16> to vector<8x8xbf16>
    %16 = vector.extract_strided_slice %3 {offsets = [0, 0], sizes = [8, 8], strides = [1, 1]} : vector<8x32xbf16> to vector<8x8xbf16>
    %cst_11 = arith.constant dense<0.000000e+00> : vector<8x8xf32>
    %17 = tpu.matmul %15, %16, %cst_11 {dimension_numbers = #tpu.dot_dimension_numbers<[1], [1], [0], [0], [0, 0, 1, 0], [], []>} : vector<8x8xbf16>, vector<8x8xbf16>, vector<8x8xf32> -> vector<8x8xf32>
    %cst_12 = arith.constant 0.353553385 : f32
    %18 = vector.broadcast %cst_12 : f32 to vector<8x8xf32>
    %19 = arith.mulf %17, %18 : vector<8x8xf32>
    %cst_13 = arith.constant -1.000000e+30 : f32
    %20 = vector.broadcast %cst_13 : f32 to vector<8x8xf32>
    %21 = arith.select %14, %19, %20 : vector<8x8xi1>, vector<8x8xf32>
    %cst_14 = arith.constant dense<0xFF800000> : vector<8xf32>
    %22 = vector.multi_reduction <maximumf>, %21, %cst_14 [1] : vector<8x8xf32> to vector<8xf32>
    %23 = vector.shape_cast %22 : vector<8xf32> to vector<8x1xf32>
    %24 = vector.broadcast %23 : vector<8x1xf32> to vector<8x8xf32>
    %25 = arith.subf %21, %24 : vector<8x8xf32>
    %26 = math.exp %25 : vector<8x8xf32>
    %cst_15 = arith.constant dense<0.000000e+00> : vector<8xf32>
    %27 = vector.multi_reduction <add>, %26, %cst_15 [1] : vector<8x8xf32> to vector<8xf32>
    %28 = vector.shape_cast %27 : vector<8xf32> to vector<8x1xf32>
    %29 = tpu.reciprocal %28 {approx = true} : vector<8x1xf32> -> vector<8x1xf32>
    %30 = vector.broadcast %29 : vector<8x1xf32> to vector<8x8xf32>
    %31 = arith.mulf %26, %30 : vector<8x8xf32>
    %32 = arith.truncf %31 : vector<8x8xf32> to vector<8x8xbf16>
    %33 = vector.extract_strided_slice %5 {offsets = [0, 0], sizes = [8, 8], strides = [1, 1]} : vector<8x32xbf16> to vector<8x8xbf16>
    %cst_16 = arith.constant dense<0.000000e+00> : vector<8x8xf32>
    %34 = tpu.matmul %32, %33, %cst_16 {dimension_numbers = #tpu.dot_dimension_numbers<[1], [0], [0], [1], [0, 0, 1, 1], [], []>} : vector<8x8xbf16>, vector<8x8xbf16>, vector<8x8xf32> -> vector<8x8xf32>
    %35 = vector.extract_strided_slice %1 {offsets = [0, 8], sizes = [8, 8], strides = [1, 1]} : vector<8x32xbf16> to vector<8x8xbf16>
    %36 = vector.extract_strided_slice %3 {offsets = [0, 8], sizes = [8, 8], strides = [1, 1]} : vector<8x32xbf16> to vector<8x8xbf16>
    %cst_17 = arith.constant dense<0.000000e+00> : vector<8x8xf32>
    %37 = tpu.matmul %35, %36, %cst_17 {dimension_numbers = #tpu.dot_dimension_numbers<[1], [1], [0], [0], [0, 0, 1, 0], [], []>} : vector<8x8xbf16>, vector<8x8xbf16>, vector<8x8xf32> -> vector<8x8xf32>
    %cst_18 = arith.constant 0.353553385 : f32
    %38 = vector.broadcast %cst_18 : f32 to vector<8x8xf32>
    %39 = arith.mulf %37, %38 : vector<8x8xf32>
    %cst_19 = arith.constant -1.000000e+30 : f32
    %40 = vector.broadcast %cst_19 : f32 to vector<8x8xf32>
    %41 = arith.select %14, %39, %40 : vector<8x8xi1>, vector<8x8xf32>
    %cst_20 = arith.constant dense<0xFF800000> : vector<8xf32>
    %42 = vector.multi_reduction <maximumf>, %41, %cst_20 [1] : vector<8x8xf32> to vector<8xf32>
    %43 = vector.shape_cast %42 : vector<8xf32> to vector<8x1xf32>
    %44 = vector.broadcast %43 : vector<8x1xf32> to vector<8x8xf32>
    %45 = arith.subf %41, %44 : vector<8x8xf32>
    %46 = math.exp %45 : vector<8x8xf32>
    %cst_21 = arith.constant dense<0.000000e+00> : vector<8xf32>
    %47 = vector.multi_reduction <add>, %46, %cst_21 [1] : vector<8x8xf32> to vector<8xf32>
    %48 = vector.shape_cast %47 : vector<8xf32> to vector<8x1xf32>
    %49 = tpu.reciprocal %48 {approx = true} : vector<8x1xf32> -> vector<8x1xf32>
    %50 = vector.broadcast %49 : vector<8x1xf32> to vector<8x8xf32>
    %51 = arith.mulf %46, %50 : vector<8x8xf32>
    %52 = arith.truncf %51 : vector<8x8xf32> to vector<8x8xbf16>
    %53 = vector.extract_strided_slice %5 {offsets = [0, 8], sizes = [8, 8], strides = [1, 1]} : vector<8x32xbf16> to vector<8x8xbf16>
    %cst_22 = arith.constant dense<0.000000e+00> : vector<8x8xf32>
    %54 = tpu.matmul %52, %53, %cst_22 {dimension_numbers = #tpu.dot_dimension_numbers<[1], [0], [0], [1], [0, 0, 1, 1], [], []>} : vector<8x8xbf16>, vector<8x8xbf16>, vector<8x8xf32> -> vector<8x8xf32>
    %55 = vector.extract_strided_slice %1 {offsets = [0, 16], sizes = [8, 8], strides = [1, 1]} : vector<8x32xbf16> to vector<8x8xbf16>
    %56 = vector.extract_strided_slice %3 {offsets = [0, 16], sizes = [8, 8], strides = [1, 1]} : vector<8x32xbf16> to vector<8x8xbf16>
    %cst_23 = arith.constant dense<0.000000e+00> : vector<8x8xf32>
    %57 = tpu.matmul %55, %56, %cst_23 {dimension_numbers = #tpu.dot_dimension_numbers<[1], [1], [0], [0], [0, 0, 1, 0], [], []>} : vector<8x8xbf16>, vector<8x8xbf16>, vector<8x8xf32> -> vector<8x8xf32>
    %cst_24 = arith.constant 0.353553385 : f32
    %58 = vector.broadcast %cst_24 : f32 to vector<8x8xf32>
    %59 = arith.mulf %57, %58 : vector<8x8xf32>
    %cst_25 = arith.constant -1.000000e+30 : f32
    %60 = vector.broadcast %cst_25 : f32 to vector<8x8xf32>
    %61 = arith.select %14, %59, %60 : vector<8x8xi1>, vector<8x8xf32>
    %cst_26 = arith.constant dense<0xFF800000> : vector<8xf32>
    %62 = vector.multi_reduction <maximumf>, %61, %cst_26 [1] : vector<8x8xf32> to vector<8xf32>
    %63 = vector.shape_cast %62 : vector<8xf32> to vector<8x1xf32>
    %64 = vector.broadcast %63 : vector<8x1xf32> to vector<8x8xf32>
    %65 = arith.subf %61, %64 : vector<8x8xf32>
    %66 = math.exp %65 : vector<8x8xf32>
    %cst_27 = arith.constant dense<0.000000e+00> : vector<8xf32>
    %67 = vector.multi_reduction <add>, %66, %cst_27 [1] : vector<8x8xf32> to vector<8xf32>
    %68 = vector.shape_cast %67 : vector<8xf32> to vector<8x1xf32>
    %69 = tpu.reciprocal %68 {approx = true} : vector<8x1xf32> -> vector<8x1xf32>
    %70 = vector.broadcast %69 : vector<8x1xf32> to vector<8x8xf32>
    %71 = arith.mulf %66, %70 : vector<8x8xf32>
    %72 = arith.truncf %71 : vector<8x8xf32> to vector<8x8xbf16>
    %73 = vector.extract_strided_slice %5 {offsets = [0, 16], sizes = [8, 8], strides = [1, 1]} : vector<8x32xbf16> to vector<8x8xbf16>
    %cst_28 = arith.constant dense<0.000000e+00> : vector<8x8xf32>
    %74 = tpu.matmul %72, %73, %cst_28 {dimension_numbers = #tpu.dot_dimension_numbers<[1], [0], [0], [1], [0, 0, 1, 1], [], []>} : vector<8x8xbf16>, vector<8x8xbf16>, vector<8x8xf32> -> vector<8x8xf32>
    %75 = vector.extract_strided_slice %1 {offsets = [0, 24], sizes = [8, 8], strides = [1, 1]} : vector<8x32xbf16> to vector<8x8xbf16>
    %76 = vector.extract_strided_slice %3 {offsets = [0, 24], sizes = [8, 8], strides = [1, 1]} : vector<8x32xbf16> to vector<8x8xbf16>
    %cst_29 = arith.constant dense<0.000000e+00> : vector<8x8xf32>
    %77 = tpu.matmul %75, %76, %cst_29 {dimension_numbers = #tpu.dot_dimension_numbers<[1], [1], [0], [0], [0, 0, 1, 0], [], []>} : vector<8x8xbf16>, vector<8x8xbf16>, vector<8x8xf32> -> vector<8x8xf32>
    %cst_30 = arith.constant 0.353553385 : f32
    %78 = vector.broadcast %cst_30 : f32 to vector<8x8xf32>
    %79 = arith.mulf %77, %78 : vector<8x8xf32>
    %cst_31 = arith.constant -1.000000e+30 : f32
    %80 = vector.broadcast %cst_31 : f32 to vector<8x8xf32>
    %81 = arith.select %14, %79, %80 : vector<8x8xi1>, vector<8x8xf32>
    %cst_32 = arith.constant dense<0xFF800000> : vector<8xf32>
    %82 = vector.multi_reduction <maximumf>, %81, %cst_32 [1] : vector<8x8xf32> to vector<8xf32>
    %83 = vector.shape_cast %82 : vector<8xf32> to vector<8x1xf32>
    %84 = vector.broadcast %83 : vector<8x1xf32> to vector<8x8xf32>
    %85 = arith.subf %81, %84 : vector<8x8xf32>
    %86 = math.exp %85 : vector<8x8xf32>
    %cst_33 = arith.constant dense<0.000000e+00> : vector<8xf32>
    %87 = vector.multi_reduction <add>, %86, %cst_33 [1] : vector<8x8xf32> to vector<8xf32>
    %88 = vector.shape_cast %87 : vector<8xf32> to vector<8x1xf32>
    %89 = tpu.reciprocal %88 {approx = true} : vector<8x1xf32> -> vector<8x1xf32>
    %90 = vector.broadcast %89 : vector<8x1xf32> to vector<8x8xf32>
    %91 = arith.mulf %86, %90 : vector<8x8xf32>
    %92 = arith.truncf %91 : vector<8x8xf32> to vector<8x8xbf16>
    %93 = vector.extract_strided_slice %5 {offsets = [0, 24], sizes = [8, 8], strides = [1, 1]} : vector<8x32xbf16> to vector<8x8xbf16>
    %cst_34 = arith.constant dense<0.000000e+00> : vector<8x8xf32>
    %94 = tpu.matmul %92, %93, %cst_34 {dimension_numbers = #tpu.dot_dimension_numbers<[1], [0], [0], [1], [0, 0, 1, 1], [], []>} : vector<8x8xbf16>, vector<8x8xbf16>, vector<8x8xf32> -> vector<8x8xf32>
    %95 = tpu.concatenate %34, %54, %74, %94 in 1 : vector<8x8xf32>, vector<8x8xf32>, vector<8x8xf32>, vector<8x8xf32> -> vector<8x32xf32>
    %c0_35 = arith.constant 0 : index
    %c0_36 = arith.constant 0 : index
    %c0_37 = arith.constant 0 : index
    %96 = vector.load %arg5[%c0_35, %c0_36, %c0_37] : memref<1x8x32xf32, #tpu.memory_space<vmem>>, vector<1x8x32xf32>
    %97 = vector.shape_cast %96 : vector<1x8x32xf32> to vector<8x32xf32>
    %98 = vector.shape_cast %95 : vector<8x32xf32> to vector<1x8x32xf32>
    tpu.vector_store %arg5[%c0_35, %c0_36, %c0_37], %98 {strides = array<i32>} : memref<1x8x32xf32, #tpu.memory_space<vmem>>, vector<1x8x32xf32>,
    return
  }
  func.func @transform_0(%arg0: i32) -> (i32, i32, i32) {
    %c0_i32 = arith.constant 0 : i32
    %c0_i32_0 = arith.constant 0 : i32
    %c0_i32_1 = arith.constant 0 : i32
    return %arg0, %c0_i32, %c0_i32_0 : i32, i32, i32
  }
  func.func @transform_1(%arg0: i32) -> (i32, i32, i32) {
    %c0_i32 = arith.constant 0 : i32
    %c0_i32_0 = arith.constant 0 : i32
    %c0_i32_1 = arith.constant 0 : i32
    return %arg0, %c0_i32, %c0_i32_0 : i32, i32, i32
  }
  func.func @transform_2(%arg0: i32) -> (i32, i32, i32) {
    %c0_i32 = arith.constant 0 : i32
    %c0_i32_0 = arith.constant 0 : i32
    %c0_i32_1 = arith.constant 0 : i32
    return %arg0, %c0_i32, %c0_i32_0 : i32, i32, i32
  }
  func.func @transform_3(%arg0: i32) -> (i32, i32, i32) {
    %c0_i32 = arith.constant 0 : i32
    %c0_i32_0 = arith.constant 0 : i32
    %c0_i32_1 = arith.constant 0 : i32
    return %arg0, %c0_i32, %c0_i32_0 : i32, i32, i32
  }
  func.func @transform_4(%arg0: i32) -> (i32, i32, i32) {
    %c0_i32 = arith.constant 0 : i32
    %c0_i32_0 = arith.constant 0 : i32
    %c0_i32_1 = arith.constant 0 : i32
    return %arg0, %c0_i32, %c0_i32_0 : i32, i32, i32
  }
}

module attributes {stable_mosaic.version = 11 : i64} {
  func.func @_linear_kernel(%arg0: i32, %arg1: i32, %arg2: i32, %arg3: memref<16x32xbf16, #tpu.memory_space<vmem>>, %arg4: memref<32x32xbf16, #tpu.memory_space<vmem>>, %arg5: memref<1x32xf32, #tpu.memory_space<vmem>>, %arg6: memref<16x32xf32, #tpu.memory_space<vmem>>, %arg7: memref<16x32xf32, #tpu.memory_space<vmem>>) attributes {dimension_semantics = [#tpu.dimension_semantics<parallel>, #tpu.dimension_semantics<parallel>, #tpu.dimension_semantics<arbitrary>], iteration_bounds = array<i64: 1, 1, 1>, scalar_prefetch = 0 : i64, scratch_operands = 1 : i64, tpu.core_type = #tpu.core_type<tc>, window_params = [{transform_indices = @transform_0, window_bounds = array<i64: 16, 32>}, {transform_indices = @transform_1, window_bounds = array<i64: 32, 32>}, {transform_indices = @transform_2, window_bounds = array<i64: 1, 32>}, {transform_indices = @transform_3, window_bounds = array<i64: 16, 32>}]} {
    %c0_i32 = arith.constant 0 : i32
    %0 = arith.cmpi eq, %arg2, %c0_i32 : i32
    %1 = arith.extui %0 : i1 to i32
    %c0_i32_0 = arith.constant 0 : i32
    %2 = arith.cmpi ne, %1, %c0_i32_0 : i32
    scf.if %2 {
      %cst_10 = arith.constant 0.000000e+00 : f32
      %12 = vector.broadcast %cst_10 : f32 to vector<16x32xf32>
      %c0_11 = arith.constant 0 : index
      %c0_12 = arith.constant 0 : index
      %13 = vector.load %arg7[%c0_11, %c0_12] : memref<16x32xf32, #tpu.memory_space<vmem>>, vector<16x32xf32>
      tpu.vector_store %arg7[%c0_11, %c0_12], %12 {strides = array<i32>} : memref<16x32xf32, #tpu.memory_space<vmem>>, vector<16x32xf32>,
    } else {
    }
    %c0 = arith.constant 0 : index
    %c0_1 = arith.constant 0 : index
    %3 = vector.load %arg7[%c0, %c0_1] : memref<16x32xf32, #tpu.memory_space<vmem>>, vector<16x32xf32>
    %c0_2 = arith.constant 0 : index
    %c0_3 = arith.constant 0 : index
    %4 = vector.load %arg3[%c0_2, %c0_3] : memref<16x32xbf16, #tpu.memory_space<vmem>>, vector<16x32xbf16>
    %c0_4 = arith.constant 0 : index
    %c0_5 = arith.constant 0 : index
    %5 = vector.load %arg4[%c0_4, %c0_5] : memref<32x32xbf16, #tpu.memory_space<vmem>>, vector<32x32xbf16>
    %cst = arith.constant dense<0.000000e+00> : vector<16x32xf32>
    %6 = tpu.matmul %4, %5, %cst {dimension_numbers = #tpu.dot_dimension_numbers<[1], [0], [0], [1], [0, 0, 1, 1], [], []>} : vector<16x32xbf16>, vector<32x32xbf16>, vector<16x32xf32> -> vector<16x32xf32>
    %7 = arith.addf %3, %6 : vector<16x32xf32>
    %c0_6 = arith.constant 0 : index
    %c0_7 = arith.constant 0 : index
    %8 = vector.load %arg7[%c0_6, %c0_7] : memref<16x32xf32, #tpu.memory_space<vmem>>, vector<16x32xf32>
    tpu.vector_store %arg7[%c0_6, %c0_7], %7 {strides = array<i32>} : memref<16x32xf32, #tpu.memory_space<vmem>>, vector<16x32xf32>,
    %c0_i32_8 = arith.constant 0 : i32
    %9 = arith.cmpi eq, %arg2, %c0_i32_8 : i32
    %10 = arith.extui %9 : i1 to i32
    %c0_i32_9 = arith.constant 0 : i32
    %11 = arith.cmpi ne, %10, %c0_i32_9 : i32
    scf.if %11 {
      %c0_10 = arith.constant 0 : index
      %c0_11 = arith.constant 0 : index
      %12 = vector.load %arg7[%c0_10, %c0_11] : memref<16x32xf32, #tpu.memory_space<vmem>>, vector<16x32xf32>
      %c0_12 = arith.constant 0 : index
      %c0_13 = arith.constant 0 : index
      %13 = vector.load %arg5[%c0_12, %c0_13] : memref<1x32xf32, #tpu.memory_space<vmem>>, vector<1x32xf32>
      %14 = vector.broadcast %13 : vector<1x32xf32> to vector<16x32xf32>
      %15 = arith.addf %12, %14 : vector<16x32xf32>
      %c0_14 = arith.constant 0 : index
      %c0_15 = arith.constant 0 : index
      %16 = vector.load %arg6[%c0_14, %c0_15] : memref<16x32xf32, #tpu.memory_space<vmem>>, vector<16x32xf32>
      tpu.vector_store %arg6[%c0_14, %c0_15], %15 {strides = array<i32>} : memref<16x32xf32, #tpu.memory_space<vmem>>, vector<16x32xf32>,
    } else {
    }
    return
  }
  func.func @transform_0(%arg0: i32, %arg1: i32, %arg2: i32) -> (i32, i32) {
    %c0_i32 = arith.constant 0 : i32
    return %arg0, %arg2 : i32, i32
  }
  func.func @transform_1(%arg0: i32, %arg1: i32, %arg2: i32) -> (i32, i32) {
    %c0_i32 = arith.constant 0 : i32
    return %arg2, %arg1 : i32, i32
  }
  func.func @transform_2(%arg0: i32, %arg1: i32, %arg2: i32) -> (i32, i32) {
    %c0_i32 = arith.constant 0 : i32
    %c0_i32_0 = arith.constant 0 : i32
    return %c0_i32, %arg1 : i32, i32
  }
  func.func @transform_3(%arg0: i32, %arg1: i32, %arg2: i32) -> (i32, i32) {
    %c0_i32 = arith.constant 0 : i32
    return %arg0, %arg1 : i32, i32
  }
}

module attributes {stable_mosaic.version = 11 : i64} {
  func.func @_linear_kernel(%arg0: i32, %arg1: i32, %arg2: i32, %arg3: memref<32x32xbf16, #tpu.memory_space<vmem>>, %arg4: memref<32x64xbf16, #tpu.memory_space<vmem>>, %arg5: memref<1x64xf32, #tpu.memory_space<vmem>>, %arg6: memref<32x64xf32, #tpu.memory_space<vmem>>, %arg7: memref<32x64xf32, #tpu.memory_space<vmem>>) attributes {dimension_semantics = [#tpu.dimension_semantics<parallel>, #tpu.dimension_semantics<parallel>, #tpu.dimension_semantics<arbitrary>], iteration_bounds = array<i64: 1, 1, 1>, scalar_prefetch = 0 : i64, scratch_operands = 1 : i64, tpu.core_type = #tpu.core_type<tc>, window_params = [{transform_indices = @transform_0, window_bounds = array<i64: 32, 32>}, {transform_indices = @transform_1, window_bounds = array<i64: 32, 64>}, {transform_indices = @transform_2, window_bounds = array<i64: 1, 64>}, {transform_indices = @transform_3, window_bounds = array<i64: 32, 64>}]} {
    %c0_i32 = arith.constant 0 : i32
    %0 = arith.cmpi eq, %arg2, %c0_i32 : i32
    %1 = arith.extui %0 : i1 to i32
    %c0_i32_0 = arith.constant 0 : i32
    %2 = arith.cmpi ne, %1, %c0_i32_0 : i32
    scf.if %2 {
      %cst_10 = arith.constant 0.000000e+00 : f32
      %12 = vector.broadcast %cst_10 : f32 to vector<32x64xf32>
      %c0_11 = arith.constant 0 : index
      %c0_12 = arith.constant 0 : index
      %13 = vector.load %arg7[%c0_11, %c0_12] : memref<32x64xf32, #tpu.memory_space<vmem>>, vector<32x64xf32>
      tpu.vector_store %arg7[%c0_11, %c0_12], %12 {strides = array<i32>} : memref<32x64xf32, #tpu.memory_space<vmem>>, vector<32x64xf32>,
    } else {
    }
    %c0 = arith.constant 0 : index
    %c0_1 = arith.constant 0 : index
    %3 = vector.load %arg7[%c0, %c0_1] : memref<32x64xf32, #tpu.memory_space<vmem>>, vector<32x64xf32>
    %c0_2 = arith.constant 0 : index
    %c0_3 = arith.constant 0 : index
    %4 = vector.load %arg3[%c0_2, %c0_3] : memref<32x32xbf16, #tpu.memory_space<vmem>>, vector<32x32xbf16>
    %c0_4 = arith.constant 0 : index
    %c0_5 = arith.constant 0 : index
    %5 = vector.load %arg4[%c0_4, %c0_5] : memref<32x64xbf16, #tpu.memory_space<vmem>>, vector<32x64xbf16>
    %cst = arith.constant dense<0.000000e+00> : vector<32x64xf32>
    %6 = tpu.matmul %4, %5, %cst {dimension_numbers = #tpu.dot_dimension_numbers<[1], [0], [0], [1], [0, 0, 1, 1], [], []>} : vector<32x32xbf16>, vector<32x64xbf16>, vector<32x64xf32> -> vector<32x64xf32>
    %7 = arith.addf %3, %6 : vector<32x64xf32>
    %c0_6 = arith.constant 0 : index
    %c0_7 = arith.constant 0 : index
    %8 = vector.load %arg7[%c0_6, %c0_7] : memref<32x64xf32, #tpu.memory_space<vmem>>, vector<32x64xf32>
    tpu.vector_store %arg7[%c0_6, %c0_7], %7 {strides = array<i32>} : memref<32x64xf32, #tpu.memory_space<vmem>>, vector<32x64xf32>,
    %c0_i32_8 = arith.constant 0 : i32
    %9 = arith.cmpi eq, %arg2, %c0_i32_8 : i32
    %10 = arith.extui %9 : i1 to i32
    %c0_i32_9 = arith.constant 0 : i32
    %11 = arith.cmpi ne, %10, %c0_i32_9 : i32
    scf.if %11 {
      %c0_10 = arith.constant 0 : index
      %c0_11 = arith.constant 0 : index
      %12 = vector.load %arg7[%c0_10, %c0_11] : memref<32x64xf32, #tpu.memory_space<vmem>>, vector<32x64xf32>
      %c0_12 = arith.constant 0 : index
      %c0_13 = arith.constant 0 : index
      %13 = vector.load %arg5[%c0_12, %c0_13] : memref<1x64xf32, #tpu.memory_space<vmem>>, vector<1x64xf32>
      %14 = vector.broadcast %13 : vector<1x64xf32> to vector<32x64xf32>
      %15 = arith.addf %12, %14 : vector<32x64xf32>
      %c0_14 = arith.constant 0 : index
      %c0_15 = arith.constant 0 : index
      %16 = vector.load %arg6[%c0_14, %c0_15] : memref<32x64xf32, #tpu.memory_space<vmem>>, vector<32x64xf32>
      tpu.vector_store %arg6[%c0_14, %c0_15], %15 {strides = array<i32>} : memref<32x64xf32, #tpu.memory_space<vmem>>, vector<32x64xf32>,
    } else {
    }
    return
  }
  func.func @transform_0(%arg0: i32, %arg1: i32, %arg2: i32) -> (i32, i32) {
    %c0_i32 = arith.constant 0 : i32
    return %arg0, %arg2 : i32, i32
  }
  func.func @transform_1(%arg0: i32, %arg1: i32, %arg2: i32) -> (i32, i32) {
    %c0_i32 = arith.constant 0 : i32
    return %arg2, %arg1 : i32, i32
  }
  func.func @transform_2(%arg0: i32, %arg1: i32, %arg2: i32) -> (i32, i32) {
    %c0_i32 = arith.constant 0 : i32
    %c0_i32_0 = arith.constant 0 : i32
    return %c0_i32, %arg1 : i32, i32
  }
  func.func @transform_3(%arg0: i32, %arg1: i32, %arg2: i32) -> (i32, i32) {
    %c0_i32 = arith.constant 0 : i32
    return %arg0, %arg1 : i32, i32
  }
}

module attributes {stable_mosaic.version = 11 : i64} {
  func.func @_attn_kernel(%arg0: i32, %arg1: memref<1x8x32xbf16, #tpu.memory_space<vmem>>, %arg2: memref<1x16x32xbf16, #tpu.memory_space<vmem>>, %arg3: memref<1x16x32xbf16, #tpu.memory_space<vmem>>, %arg4: memref<1x1x16xf32, #tpu.memory_space<vmem>>, %arg5: memref<1x8x32xf32, #tpu.memory_space<vmem>>) attributes {dimension_semantics = [#tpu.dimension_semantics<parallel>], iteration_bounds = array<i64: 2>, scalar_prefetch = 0 : i64, scratch_operands = 0 : i64, tpu.core_type = #tpu.core_type<tc>, window_params = [{transform_indices = @transform_0, window_bounds = array<i64: 1, 8, 32>}, {transform_indices = @transform_1, window_bounds = array<i64: 1, 16, 32>}, {transform_indices = @transform_2, window_bounds = array<i64: 1, 16, 32>}, {transform_indices = @transform_3, window_bounds = array<i64: 1, 1, 16>}, {transform_indices = @transform_4, window_bounds = array<i64: 1, 8, 32>}]} {
    %c0 = arith.constant 0 : index
    %c0_0 = arith.constant 0 : index
    %c0_1 = arith.constant 0 : index
    %0 = vector.load %arg1[%c0, %c0_0, %c0_1] : memref<1x8x32xbf16, #tpu.memory_space<vmem>>, vector<1x8x32xbf16>
    %1 = vector.shape_cast %0 : vector<1x8x32xbf16> to vector<8x32xbf16>
    %c0_2 = arith.constant 0 : index
    %c0_3 = arith.constant 0 : index
    %c0_4 = arith.constant 0 : index
    %2 = vector.load %arg2[%c0_2, %c0_3, %c0_4] : memref<1x16x32xbf16, #tpu.memory_space<vmem>>, vector<1x16x32xbf16>
    %3 = vector.shape_cast %2 : vector<1x16x32xbf16> to vector<16x32xbf16>
    %c0_5 = arith.constant 0 : index
    %c0_6 = arith.constant 0 : index
    %c0_7 = arith.constant 0 : index
    %4 = vector.load %arg3[%c0_5, %c0_6, %c0_7] : memref<1x16x32xbf16, #tpu.memory_space<vmem>>, vector<1x16x32xbf16>
    %5 = vector.shape_cast %4 : vector<1x16x32xbf16> to vector<16x32xbf16>
    %c0_8 = arith.constant 0 : index
    %c0_9 = arith.constant 0 : index
    %c0_10 = arith.constant 0 : index
    %6 = vector.load %arg4[%c0_8, %c0_9, %c0_10] : memref<1x1x16xf32, #tpu.memory_space<vmem>>, vector<1x1x16xf32>
    %7 = vector.shape_cast %6 : vector<1x1x16xf32> to vector<1x16xf32>
    %cst = arith.constant 5.000000e-01 : f32
    %8 = vector.broadcast %cst : f32 to vector<1x16xf32>
    %9 = arith.cmpf ogt, %7, %8 : vector<1x16xf32>
    %10 = vector.shape_cast %9 : vector<1x16xi1> to vector<1x16xi1>
    %11 = vector.broadcast %10 : vector<1x16xi1> to vector<8x16xi1>
    %12 = vector.extract_strided_slice %1 {offsets = [0, 0], sizes = [8, 8], strides = [1, 1]} : vector<8x32xbf16> to vector<8x8xbf16>
    %13 = vector.extract_strided_slice %3 {offsets = [0, 0], sizes = [16, 8], strides = [1, 1]} : vector<16x32xbf16> to vector<16x8xbf16>
    %cst_11 = arith.constant dense<0.000000e+00> : vector<8x16xf32>
    %14 = tpu.matmul %12, %13, %cst_11 {dimension_numbers = #tpu.dot_dimension_numbers<[1], [1], [0], [0], [0, 0, 1, 0], [], []>} : vector<8x8xbf16>, vector<16x8xbf16>, vector<8x16xf32> -> vector<8x16xf32>
    %cst_12 = arith.constant 0.353553385 : f32
    %15 = vector.broadcast %cst_12 : f32 to vector<8x16xf32>
    %16 = arith.mulf %14, %15 : vector<8x16xf32>
    %cst_13 = arith.constant -1.000000e+30 : f32
    %17 = vector.broadcast %cst_13 : f32 to vector<8x16xf32>
    %18 = arith.select %11, %16, %17 : vector<8x16xi1>, vector<8x16xf32>
    %cst_14 = arith.constant dense<0xFF800000> : vector<8xf32>
    %19 = vector.multi_reduction <maximumf>, %18, %cst_14 [1] : vector<8x16xf32> to vector<8xf32>
    %20 = vector.shape_cast %19 : vector<8xf32> to vector<8x1xf32>
    %21 = vector.broadcast %20 : vector<8x1xf32> to vector<8x16xf32>
    %22 = arith.subf %18, %21 : vector<8x16xf32>
    %23 = math.exp %22 : vector<8x16xf32>
    %cst_15 = arith.constant dense<0.000000e+00> : vector<8xf32>
    %24 = vector.multi_reduction <add>, %23, %cst_15 [1] : vector<8x16xf32> to vector<8xf32>
    %25 = vector.shape_cast %24 : vector<8xf32> to vector<8x1xf32>
    %26 = tpu.reciprocal %25 {approx = true} : vector<8x1xf32> -> vector<8x1xf32>
    %27 = vector.broadcast %26 : vector<8x1xf32> to vector<8x16xf32>
    %28 = arith.mulf %23, %27 : vector<8x16xf32>
    %29 = arith.truncf %28 : vector<8x16xf32> to vector<8x16xbf16>
    %30 = vector.extract_strided_slice %5 {offsets = [0, 0], sizes = [16, 8], strides = [1, 1]} : vector<16x32xbf16> to vector<16x8xbf16>
    %cst_16 = arith.constant dense<0.000000e+00> : vector<8x8xf32>
    %31 = tpu.matmul %29, %30, %cst_16 {dimension_numbers = #tpu.dot_dimension_numbers<[1], [0], [0], [1], [0, 0, 1, 1], [], []>} : vector<8x16xbf16>, vector<16x8xbf16>, vector<8x8xf32> -> vector<8x8xf32>
    %32 = vector.extract_strided_slice %1 {offsets = [0, 8], sizes = [8, 8], strides = [1, 1]} : vector<8x32xbf16> to vector<8x8xbf16>
    %33 = vector.extract_strided_slice %3 {offsets = [0, 8], sizes = [16, 8], strides = [1, 1]} : vector<16x32xbf16> to vector<16x8xbf16>
    %cst_17 = arith.constant dense<0.000000e+00> : vector<8x16xf32>
    %34 = tpu.matmul %32, %33, %cst_17 {dimension_numbers = #tpu.dot_dimension_numbers<[1], [1], [0], [0], [0, 0, 1, 0], [], []>} : vector<8x8xbf16>, vector<16x8xbf16>, vector<8x16xf32> -> vector<8x16xf32>
    %cst_18 = arith.constant 0.353553385 : f32
    %35 = vector.broadcast %cst_18 : f32 to vector<8x16xf32>
    %36 = arith.mulf %34, %35 : vector<8x16xf32>
    %cst_19 = arith.constant -1.000000e+30 : f32
    %37 = vector.broadcast %cst_19 : f32 to vector<8x16xf32>
    %38 = arith.select %11, %36, %37 : vector<8x16xi1>, vector<8x16xf32>
    %cst_20 = arith.constant dense<0xFF800000> : vector<8xf32>
    %39 = vector.multi_reduction <maximumf>, %38, %cst_20 [1] : vector<8x16xf32> to vector<8xf32>
    %40 = vector.shape_cast %39 : vector<8xf32> to vector<8x1xf32>
    %41 = vector.broadcast %40 : vector<8x1xf32> to vector<8x16xf32>
    %42 = arith.subf %38, %41 : vector<8x16xf32>
    %43 = math.exp %42 : vector<8x16xf32>
    %cst_21 = arith.constant dense<0.000000e+00> : vector<8xf32>
    %44 = vector.multi_reduction <add>, %43, %cst_21 [1] : vector<8x16xf32> to vector<8xf32>
    %45 = vector.shape_cast %44 : vector<8xf32> to vector<8x1xf32>
    %46 = tpu.reciprocal %45 {approx = true} : vector<8x1xf32> -> vector<8x1xf32>
    %47 = vector.broadcast %46 : vector<8x1xf32> to vector<8x16xf32>
    %48 = arith.mulf %43, %47 : vector<8x16xf32>
    %49 = arith.truncf %48 : vector<8x16xf32> to vector<8x16xbf16>
    %50 = vector.extract_strided_slice %5 {offsets = [0, 8], sizes = [16, 8], strides = [1, 1]} : vector<16x32xbf16> to vector<16x8xbf16>
    %cst_22 = arith.constant dense<0.000000e+00> : vector<8x8xf32>
    %51 = tpu.matmul %49, %50, %cst_22 {dimension_numbers = #tpu.dot_dimension_numbers<[1], [0], [0], [1], [0, 0, 1, 1], [], []>} : vector<8x16xbf16>, vector<16x8xbf16>, vector<8x8xf32> -> vector<8x8xf32>
    %52 = vector.extract_strided_slice %1 {offsets = [0, 16], sizes = [8, 8], strides = [1, 1]} : vector<8x32xbf16> to vector<8x8xbf16>
    %53 = vector.extract_strided_slice %3 {offsets = [0, 16], sizes = [16, 8], strides = [1, 1]} : vector<16x32xbf16> to vector<16x8xbf16>
    %cst_23 = arith.constant dense<0.000000e+00> : vector<8x16xf32>
    %54 = tpu.matmul %52, %53, %cst_23 {dimension_numbers = #tpu.dot_dimension_numbers<[1], [1], [0], [0], [0, 0, 1, 0], [], []>} : vector<8x8xbf16>, vector<16x8xbf16>, vector<8x16xf32> -> vector<8x16xf32>
    %cst_24 = arith.constant 0.353553385 : f32
    %55 = vector.broadcast %cst_24 : f32 to vector<8x16xf32>
    %56 = arith.mulf %54, %55 : vector<8x16xf32>
    %cst_25 = arith.constant -1.000000e+30 : f32
    %57 = vector.broadcast %cst_25 : f32 to vector<8x16xf32>
    %58 = arith.select %11, %56, %57 : vector<8x16xi1>, vector<8x16xf32>
    %cst_26 = arith.constant dense<0xFF800000> : vector<8xf32>
    %59 = vector.multi_reduction <maximumf>, %58, %cst_26 [1] : vector<8x16xf32> to vector<8xf32>
    %60 = vector.shape_cast %59 : vector<8xf32> to vector<8x1xf32>
    %61 = vector.broadcast %60 : vector<8x1xf32> to vector<8x16xf32>
    %62 = arith.subf %58, %61 : vector<8x16xf32>
    %63 = math.exp %62 : vector<8x16xf32>
    %cst_27 = arith.constant dense<0.000000e+00> : vector<8xf32>
    %64 = vector.multi_reduction <add>, %63, %cst_27 [1] : vector<8x16xf32> to vector<8xf32>
    %65 = vector.shape_cast %64 : vector<8xf32> to vector<8x1xf32>
    %66 = tpu.reciprocal %65 {approx = true} : vector<8x1xf32> -> vector<8x1xf32>
    %67 = vector.broadcast %66 : vector<8x1xf32> to vector<8x16xf32>
    %68 = arith.mulf %63, %67 : vector<8x16xf32>
    %69 = arith.truncf %68 : vector<8x16xf32> to vector<8x16xbf16>
    %70 = vector.extract_strided_slice %5 {offsets = [0, 16], sizes = [16, 8], strides = [1, 1]} : vector<16x32xbf16> to vector<16x8xbf16>
    %cst_28 = arith.constant dense<0.000000e+00> : vector<8x8xf32>
    %71 = tpu.matmul %69, %70, %cst_28 {dimension_numbers = #tpu.dot_dimension_numbers<[1], [0], [0], [1], [0, 0, 1, 1], [], []>} : vector<8x16xbf16>, vector<16x8xbf16>, vector<8x8xf32> -> vector<8x8xf32>
    %72 = vector.extract_strided_slice %1 {offsets = [0, 24], sizes = [8, 8], strides = [1, 1]} : vector<8x32xbf16> to vector<8x8xbf16>
    %73 = vector.extract_strided_slice %3 {offsets = [0, 24], sizes = [16, 8], strides = [1, 1]} : vector<16x32xbf16> to vector<16x8xbf16>
    %cst_29 = arith.constant dense<0.000000e+00> : vector<8x16xf32>
    %74 = tpu.matmul %72, %73, %cst_29 {dimension_numbers = #tpu.dot_dimension_numbers<[1], [1], [0], [0], [0, 0, 1, 0], [], []>} : vector<8x8xbf16>, vector<16x8xbf16>, vector<8x16xf32> -> vector<8x16xf32>
    %cst_30 = arith.constant 0.353553385 : f32
    %75 = vector.broadcast %cst_30 : f32 to vector<8x16xf32>
    %76 = arith.mulf %74, %75 : vector<8x16xf32>
    %cst_31 = arith.constant -1.000000e+30 : f32
    %77 = vector.broadcast %cst_31 : f32 to vector<8x16xf32>
    %78 = arith.select %11, %76, %77 : vector<8x16xi1>, vector<8x16xf32>
    %cst_32 = arith.constant dense<0xFF800000> : vector<8xf32>
    %79 = vector.multi_reduction <maximumf>, %78, %cst_32 [1] : vector<8x16xf32> to vector<8xf32>
    %80 = vector.shape_cast %79 : vector<8xf32> to vector<8x1xf32>
    %81 = vector.broadcast %80 : vector<8x1xf32> to vector<8x16xf32>
    %82 = arith.subf %78, %81 : vector<8x16xf32>
    %83 = math.exp %82 : vector<8x16xf32>
    %cst_33 = arith.constant dense<0.000000e+00> : vector<8xf32>
    %84 = vector.multi_reduction <add>, %83, %cst_33 [1] : vector<8x16xf32> to vector<8xf32>
    %85 = vector.shape_cast %84 : vector<8xf32> to vector<8x1xf32>
    %86 = tpu.reciprocal %85 {approx = true} : vector<8x1xf32> -> vector<8x1xf32>
    %87 = vector.broadcast %86 : vector<8x1xf32> to vector<8x16xf32>
    %88 = arith.mulf %83, %87 : vector<8x16xf32>
    %89 = arith.truncf %88 : vector<8x16xf32> to vector<8x16xbf16>
    %90 = vector.extract_strided_slice %5 {offsets = [0, 24], sizes = [16, 8], strides = [1, 1]} : vector<16x32xbf16> to vector<16x8xbf16>
    %cst_34 = arith.constant dense<0.000000e+00> : vector<8x8xf32>
    %91 = tpu.matmul %89, %90, %cst_34 {dimension_numbers = #tpu.dot_dimension_numbers<[1], [0], [0], [1], [0, 0, 1, 1], [], []>} : vector<8x16xbf16>, vector<16x8xbf16>, vector<8x8xf32> -> vector<8x8xf32>
    %92 = tpu.concatenate %31, %51, %71, %91 in 1 : vector<8x8xf32>, vector<8x8xf32>, vector<8x8xf32>, vector<8x8xf32> -> vector<8x32xf32>
    %c0_35 = arith.constant 0 : index
    %c0_36 = arith.constant 0 : index
    %c0_37 = arith.constant 0 : index
    %93 = vector.load %arg5[%c0_35, %c0_36, %c0_37] : memref<1x8x32xf32, #tpu.memory_space<vmem>>, vector<1x8x32xf32>
    %94 = vector.shape_cast %93 : vector<1x8x32xf32> to vector<8x32xf32>
    %95 = vector.shape_cast %92 : vector<8x32xf32> to vector<1x8x32xf32>
    tpu.vector_store %arg5[%c0_35, %c0_36, %c0_37], %95 {strides = array<i32>} : memref<1x8x32xf32, #tpu.memory_space<vmem>>, vector<1x8x32xf32>,
    return
  }
  func.func @transform_0(%arg0: i32) -> (i32, i32, i32) {
    %c0_i32 = arith.constant 0 : i32
    %c0_i32_0 = arith.constant 0 : i32
    %c0_i32_1 = arith.constant 0 : i32
    return %arg0, %c0_i32, %c0_i32_0 : i32, i32, i32
  }
  func.func @transform_1(%arg0: i32) -> (i32, i32, i32) {
    %c0_i32 = arith.constant 0 : i32
    %c0_i32_0 = arith.constant 0 : i32
    %c0_i32_1 = arith.constant 0 : i32
    return %arg0, %c0_i32, %c0_i32_0 : i32, i32, i32
  }
  func.func @transform_2(%arg0: i32) -> (i32, i32, i32) {
    %c0_i32 = arith.constant 0 : i32
    %c0_i32_0 = arith.constant 0 : i32
    %c0_i32_1 = arith.constant 0 : i32
    return %arg0, %c0_i32, %c0_i32_0 : i32, i32, i32
  }
  func.func @transform_3(%arg0: i32) -> (i32, i32, i32) {
    %c0_i32 = arith.constant 0 : i32
    %c0_i32_0 = arith.constant 0 : i32
    %c0_i32_1 = arith.constant 0 : i32
    return %arg0, %c0_i32, %c0_i32_0 : i32, i32, i32
  }
  func.func @transform_4(%arg0: i32) -> (i32, i32, i32) {
    %c0_i32 = arith.constant 0 : i32
    %c0_i32_0 = arith.constant 0 : i32
    %c0_i32_1 = arith.constant 0 : i32
    return %arg0, %c0_i32, %c0_i32_0 : i32, i32, i32
  }
}

module attributes {stable_mosaic.version = 11 : i64} {
  func.func @_linear_kernel(%arg0: i32, %arg1: i32, %arg2: i32, %arg3: memref<16x64xbf16, #tpu.memory_space<vmem>>, %arg4: memref<64x32xbf16, #tpu.memory_space<vmem>>, %arg5: memref<1x32xf32, #tpu.memory_space<vmem>>, %arg6: memref<16x32xf32, #tpu.memory_space<vmem>>, %arg7: memref<16x32xf32, #tpu.memory_space<vmem>>) attributes {dimension_semantics = [#tpu.dimension_semantics<parallel>, #tpu.dimension_semantics<parallel>, #tpu.dimension_semantics<arbitrary>], iteration_bounds = array<i64: 1, 1, 1>, scalar_prefetch = 0 : i64, scratch_operands = 1 : i64, tpu.core_type = #tpu.core_type<tc>, window_params = [{transform_indices = @transform_0, window_bounds = array<i64: 16, 64>}, {transform_indices = @transform_1, window_bounds = array<i64: 64, 32>}, {transform_indices = @transform_2, window_bounds = array<i64: 1, 32>}, {transform_indices = @transform_3, window_bounds = array<i64: 16, 32>}]} {
    %c0_i32 = arith.constant 0 : i32
    %0 = arith.cmpi eq, %arg2, %c0_i32 : i32
    %1 = arith.extui %0 : i1 to i32
    %c0_i32_0 = arith.constant 0 : i32
    %2 = arith.cmpi ne, %1, %c0_i32_0 : i32
    scf.if %2 {
      %cst_10 = arith.constant 0.000000e+00 : f32
      %12 = vector.broadcast %cst_10 : f32 to vector<16x32xf32>
      %c0_11 = arith.constant 0 : index
      %c0_12 = arith.constant 0 : index
      %13 = vector.load %arg7[%c0_11, %c0_12] : memref<16x32xf32, #tpu.memory_space<vmem>>, vector<16x32xf32>
      tpu.vector_store %arg7[%c0_11, %c0_12], %12 {strides = array<i32>} : memref<16x32xf32, #tpu.memory_space<vmem>>, vector<16x32xf32>,
    } else {
    }
    %c0 = arith.constant 0 : index
    %c0_1 = arith.constant 0 : index
    %3 = vector.load %arg7[%c0, %c0_1] : memref<16x32xf32, #tpu.memory_space<vmem>>, vector<16x32xf32>
    %c0_2 = arith.constant 0 : index
    %c0_3 = arith.constant 0 : index
    %4 = vector.load %arg3[%c0_2, %c0_3] : memref<16x64xbf16, #tpu.memory_space<vmem>>, vector<16x64xbf16>
    %c0_4 = arith.constant 0 : index
    %c0_5 = arith.constant 0 : index
    %5 = vector.load %arg4[%c0_4, %c0_5] : memref<64x32xbf16, #tpu.memory_space<vmem>>, vector<64x32xbf16>
    %cst = arith.constant dense<0.000000e+00> : vector<16x32xf32>
    %6 = tpu.matmul %4, %5, %cst {dimension_numbers = #tpu.dot_dimension_numbers<[1], [0], [0], [1], [0, 0, 1, 1], [], []>} : vector<16x64xbf16>, vector<64x32xbf16>, vector<16x32xf32> -> vector<16x32xf32>
    %7 = arith.addf %3, %6 : vector<16x32xf32>
    %c0_6 = arith.constant 0 : index
    %c0_7 = arith.constant 0 : index
    %8 = vector.load %arg7[%c0_6, %c0_7] : memref<16x32xf32, #tpu.memory_space<vmem>>, vector<16x32xf32>
    tpu.vector_store %arg7[%c0_6, %c0_7], %7 {strides = array<i32>} : memref<16x32xf32, #tpu.memory_space<vmem>>, vector<16x32xf32>,
    %c0_i32_8 = arith.constant 0 : i32
    %9 = arith.cmpi eq, %arg2, %c0_i32_8 : i32
    %10 = arith.extui %9 : i1 to i32
    %c0_i32_9 = arith.constant 0 : i32
    %11 = arith.cmpi ne, %10, %c0_i32_9 : i32
    scf.if %11 {
      %c0_10 = arith.constant 0 : index
      %c0_11 = arith.constant 0 : index
      %12 = vector.load %arg7[%c0_10, %c0_11] : memref<16x32xf32, #tpu.memory_space<vmem>>, vector<16x32xf32>
      %c0_12 = arith.constant 0 : index
      %c0_13 = arith.constant 0 : index
      %13 = vector.load %arg5[%c0_12, %c0_13] : memref<1x32xf32, #tpu.memory_space<vmem>>, vector<1x32xf32>
      %14 = vector.broadcast %13 : vector<1x32xf32> to vector<16x32xf32>
      %15 = arith.addf %12, %14 : vector<16x32xf32>
      %c0_14 = arith.constant 0 : index
      %c0_15 = arith.constant 0 : index
      %16 = vector.load %arg6[%c0_14, %c0_15] : memref<16x32xf32, #tpu.memory_space<vmem>>, vector<16x32xf32>
      tpu.vector_store %arg6[%c0_14, %c0_15], %15 {strides = array<i32>} : memref<16x32xf32, #tpu.memory_space<vmem>>, vector<16x32xf32>,
    } else {
    }
    return
  }
  func.func @transform_0(%arg0: i32, %arg1: i32, %arg2: i32) -> (i32, i32) {
    %c0_i32 = arith.constant 0 : i32
    return %arg0, %arg2 : i32, i32
  }
  func.func @transform_1(%arg0: i32, %arg1: i32, %arg2: i32) -> (i32, i32) {
    %c0_i32 = arith.constant 0 : i32
    return %arg2, %arg1 : i32, i32
  }
  func.func @transform_2(%arg0: i32, %arg1: i32, %arg2: i32) -> (i32, i32) {
    %c0_i32 = arith.constant 0 : i32
    %c0_i32_0 = arith.constant 0 : i32
    return %c0_i32, %arg1 : i32, i32
  }
  func.func @transform_3(%arg0: i32, %arg1: i32, %arg2: i32) -> (i32, i32) {
    %c0_i32 = arith.constant 0 : i32
    return %arg0, %arg1 : i32, i32
  }
}

module attributes {stable_mosaic.version = 11 : i64} {
  func.func @_pointer_nll_kernel(%arg0: i32, %arg1: memref<1x8x32xbf16, #tpu.memory_space<vmem>>, %arg2: memref<1x16x32xbf16, #tpu.memory_space<vmem>>, %arg3: memref<1x8x1xi32, #tpu.memory_space<vmem>>, %arg4: memref<1x8x1xf32, #tpu.memory_space<vmem>>) attributes {dimension_semantics = [#tpu.dimension_semantics<parallel>], iteration_bounds = array<i64: 2>, scalar_prefetch = 0 : i64, scratch_operands = 0 : i64, tpu.core_type = #tpu.core_type<tc>, window_params = [{transform_indices = @transform_0, window_bounds = array<i64: 1, 8, 32>}, {transform_indices = @transform_1, window_bounds = array<i64: 1, 16, 32>}, {transform_indices = @transform_2, window_bounds = array<i64: 1, 8, 1>}, {transform_indices = @transform_3, window_bounds = array<i64: 1, 8, 1>}]} {
    %c0 = arith.constant 0 : index
    %c0_0 = arith.constant 0 : index
    %c0_1 = arith.constant 0 : index
    %0 = vector.load %arg1[%c0, %c0_0, %c0_1] : memref<1x8x32xbf16, #tpu.memory_space<vmem>>, vector<1x8x32xbf16>
    %1 = vector.shape_cast %0 : vector<1x8x32xbf16> to vector<8x32xbf16>
    %c0_2 = arith.constant 0 : index
    %c0_3 = arith.constant 0 : index
    %c0_4 = arith.constant 0 : index
    %2 = vector.load %arg2[%c0_2, %c0_3, %c0_4] : memref<1x16x32xbf16, #tpu.memory_space<vmem>>, vector<1x16x32xbf16>
    %3 = vector.shape_cast %2 : vector<1x16x32xbf16> to vector<16x32xbf16>
    %cst = arith.constant dense<0.000000e+00> : vector<8x16xf32>
    %4 = tpu.matmul %1, %3, %cst {dimension_numbers = #tpu.dot_dimension_numbers<[1], [1], [0], [0], [0, 0, 1, 0], [], []>} : vector<8x32xbf16>, vector<16x32xbf16>, vector<8x16xf32> -> vector<8x16xf32>
    %cst_5 = arith.constant dense<0xFF800000> : vector<8xf32>
    %5 = vector.multi_reduction <maximumf>, %4, %cst_5 [1] : vector<8x16xf32> to vector<8xf32>
    %6 = vector.shape_cast %5 : vector<8xf32> to vector<8x1xf32>
    %7 = vector.broadcast %6 : vector<8x1xf32> to vector<8x16xf32>
    %8 = arith.subf %4, %7 : vector<8x16xf32>
    %9 = math.exp %8 : vector<8x16xf32>
    %cst_6 = arith.constant dense<0.000000e+00> : vector<8xf32>
    %10 = vector.multi_reduction <add>, %9, %cst_6 [1] : vector<8x16xf32> to vector<8xf32>
    %11 = vector.shape_cast %10 : vector<8xf32> to vector<8x1xf32>
    %12 = math.log %11 : vector<8x1xf32>
    %13 = arith.addf %12, %6 : vector<8x1xf32>
    %14 = tpu.iota {dimensions = array<i32: 1>} : vector<8x16xi32>
    %c0_7 = arith.constant 0 : index
    %c0_8 = arith.constant 0 : index
    %c0_9 = arith.constant 0 : index
    %15 = vector.load %arg3[%c0_7, %c0_8, %c0_9] : memref<1x8x1xi32, #tpu.memory_space<vmem>>, vector<1x8x1xi32>
    %16 = vector.shape_cast %15 : vector<1x8x1xi32> to vector<8x1xi32>
    %17 = vector.broadcast %16 : vector<8x1xi32> to vector<8x16xi32>
    %18 = arith.cmpi eq, %14, %17 : vector<8x16xi32>
    %19 = arith.extui %18 : vector<8x16xi1> to vector<8x16xi32>
    %20 = arith.sitofp %19 : vector<8x16xi32> to vector<8x16xf32>
    %21 = arith.mulf %20, %4 : vector<8x16xf32>
    %cst_10 = arith.constant dense<0.000000e+00> : vector<8xf32>
    %22 = vector.multi_reduction <add>, %21, %cst_10 [1] : vector<8x16xf32> to vector<8xf32>
    %23 = vector.shape_cast %22 : vector<8xf32> to vector<8x1xf32>
    %24 = arith.subf %13, %23 : vector<8x1xf32>
    %c0_11 = arith.constant 0 : index
    %c0_12 = arith.constant 0 : index
    %c0_13 = arith.constant 0 : index
    %25 = vector.load %arg4[%c0_11, %c0_12, %c0_13] : memref<1x8x1xf32, #tpu.memory_space<vmem>>, vector<1x8x1xf32>
    %26 = vector.shape_cast %25 : vector<1x8x1xf32> to vector<8x1xf32>
    %27 = vector.shape_cast %24 : vector<8x1xf32> to vector<1x8x1xf32>
    tpu.vector_store %arg4[%c0_11, %c0_12, %c0_13], %27 {strides = array<i32>} : memref<1x8x1xf32, #tpu.memory_space<vmem>>, vector<1x8x1xf32>,
    return
  }
  func.func @transform_0(%arg0: i32) -> (i32, i32, i32) {
    %c0_i32 = arith.constant 0 : i32
    %c0_i32_0 = arith.constant 0 : i32
    %c0_i32_1 = arith.constant 0 : i32
    return %arg0, %c0_i32, %c0_i32_0 : i32, i32, i32
  }
  func.func @transform_1(%arg0: i32) -> (i32, i32, i32) {
    %c0_i32 = arith.constant 0 : i32
    %c0_i32_0 = arith.constant 0 : i32
    %c0_i32_1 = arith.constant 0 : i32
    return %arg0, %c0_i32, %c0_i32_0 : i32, i32, i32
  }
  func.func @transform_2(%arg0: i32) -> (i32, i32, i32) {
    %c0_i32 = arith.constant 0 : i32
    %c0_i32_0 = arith.constant 0 : i32
    %c0_i32_1 = arith.constant 0 : i32
    return %arg0, %c0_i32, %c0_i32_0 : i32, i32, i32
  }
  func.func @transform_3(%arg0: i32) -> (i32, i32, i32) {
    %c0_i32 = arith.constant 0 : i32
    %c0_i32_0 = arith.constant 0 : i32
    %c0_i32_1 = arith.constant 0 : i32
    return %arg0, %c0_i32, %c0_i32_0 : i32, i32, i32
  }
}

module attributes {stable_mosaic.version = 11 : i64} {
  func.func @_linear_kernel(%arg0: i32, %arg1: i32, %arg2: i32, %arg3: memref<16x32xbf16, #tpu.memory_space<vmem>>, %arg4: memref<32x64xbf16, #tpu.memory_space<vmem>>, %arg5: memref<1x64xf32, #tpu.memory_space<vmem>>, %arg6: memref<16x64xf32, #tpu.memory_space<vmem>>, %arg7: memref<16x64xf32, #tpu.memory_space<vmem>>) attributes {dimension_semantics = [#tpu.dimension_semantics<parallel>, #tpu.dimension_semantics<parallel>, #tpu.dimension_semantics<arbitrary>], iteration_bounds = array<i64: 1, 1, 1>, scalar_prefetch = 0 : i64, scratch_operands = 1 : i64, tpu.core_type = #tpu.core_type<tc>, window_params = [{transform_indices = @transform_0, window_bounds = array<i64: 16, 32>}, {transform_indices = @transform_1, window_bounds = array<i64: 32, 64>}, {transform_indices = @transform_2, window_bounds = array<i64: 1, 64>}, {transform_indices = @transform_3, window_bounds = array<i64: 16, 64>}]} {
    %c0_i32 = arith.constant 0 : i32
    %0 = arith.cmpi eq, %arg2, %c0_i32 : i32
    %1 = arith.extui %0 : i1 to i32
    %c0_i32_0 = arith.constant 0 : i32
    %2 = arith.cmpi ne, %1, %c0_i32_0 : i32
    scf.if %2 {
      %cst_10 = arith.constant 0.000000e+00 : f32
      %12 = vector.broadcast %cst_10 : f32 to vector<16x64xf32>
      %c0_11 = arith.constant 0 : index
      %c0_12 = arith.constant 0 : index
      %13 = vector.load %arg7[%c0_11, %c0_12] : memref<16x64xf32, #tpu.memory_space<vmem>>, vector<16x64xf32>
      tpu.vector_store %arg7[%c0_11, %c0_12], %12 {strides = array<i32>} : memref<16x64xf32, #tpu.memory_space<vmem>>, vector<16x64xf32>,
    } else {
    }
    %c0 = arith.constant 0 : index
    %c0_1 = arith.constant 0 : index
    %3 = vector.load %arg7[%c0, %c0_1] : memref<16x64xf32, #tpu.memory_space<vmem>>, vector<16x64xf32>
    %c0_2 = arith.constant 0 : index
    %c0_3 = arith.constant 0 : index
    %4 = vector.load %arg3[%c0_2, %c0_3] : memref<16x32xbf16, #tpu.memory_space<vmem>>, vector<16x32xbf16>
    %c0_4 = arith.constant 0 : index
    %c0_5 = arith.constant 0 : index
    %5 = vector.load %arg4[%c0_4, %c0_5] : memref<32x64xbf16, #tpu.memory_space<vmem>>, vector<32x64xbf16>
    %cst = arith.constant dense<0.000000e+00> : vector<16x64xf32>
    %6 = tpu.matmul %4, %5, %cst {dimension_numbers = #tpu.dot_dimension_numbers<[1], [0], [0], [1], [0, 0, 1, 1], [], []>} : vector<16x32xbf16>, vector<32x64xbf16>, vector<16x64xf32> -> vector<16x64xf32>
    %7 = arith.addf %3, %6 : vector<16x64xf32>
    %c0_6 = arith.constant 0 : index
    %c0_7 = arith.constant 0 : index
    %8 = vector.load %arg7[%c0_6, %c0_7] : memref<16x64xf32, #tpu.memory_space<vmem>>, vector<16x64xf32>
    tpu.vector_store %arg7[%c0_6, %c0_7], %7 {strides = array<i32>} : memref<16x64xf32, #tpu.memory_space<vmem>>, vector<16x64xf32>,
    %c0_i32_8 = arith.constant 0 : i32
    %9 = arith.cmpi eq, %arg2, %c0_i32_8 : i32
    %10 = arith.extui %9 : i1 to i32
    %c0_i32_9 = arith.constant 0 : i32
    %11 = arith.cmpi ne, %10, %c0_i32_9 : i32
    scf.if %11 {
      %c0_10 = arith.constant 0 : index
      %c0_11 = arith.constant 0 : index
      %12 = vector.load %arg7[%c0_10, %c0_11] : memref<16x64xf32, #tpu.memory_space<vmem>>, vector<16x64xf32>
      %c0_12 = arith.constant 0 : index
      %c0_13 = arith.constant 0 : index
      %13 = vector.load %arg5[%c0_12, %c0_13] : memref<1x64xf32, #tpu.memory_space<vmem>>, vector<1x64xf32>
      %14 = vector.broadcast %13 : vector<1x64xf32> to vector<16x64xf32>
      %15 = arith.addf %12, %14 : vector<16x64xf32>
      %16 = arith.mulf %15, %15 : vector<16x64xf32>
      %17 = arith.mulf %15, %16 : vector<16x64xf32>
      %cst_14 = arith.constant 4.471500e-02 : f32
      %18 = vector.broadcast %cst_14 : f32 to vector<16x64xf32>
      %19 = arith.mulf %18, %17 : vector<16x64xf32>
      %20 = arith.addf %15, %19 : vector<16x64xf32>
      %cst_15 = arith.constant 0.797884583 : f32
      %21 = vector.broadcast %cst_15 : f32 to vector<16x64xf32>
      %22 = arith.mulf %21, %20 : vector<16x64xf32>
      %23 = math.tanh %22 : vector<16x64xf32>
      %cst_16 = arith.constant 1.000000e+00 : f32
      %24 = vector.broadcast %cst_16 : f32 to vector<16x64xf32>
      %25 = arith.addf %24, %23 : vector<16x64xf32>
      %cst_17 = arith.constant 5.000000e-01 : f32
      %26 = vector.broadcast %cst_17 : f32 to vector<16x64xf32>
      %27 = arith.mulf %26, %25 : vector<16x64xf32>
      %28 = arith.mulf %15, %27 : vector<16x64xf32>
      %c0_18 = arith.constant 0 : index
      %c0_19 = arith.constant 0 : index
      %29 = vector.load %arg6[%c0_18, %c0_19] : memref<16x64xf32, #tpu.memory_space<vmem>>, vector<16x64xf32>
      tpu.vector_store %arg6[%c0_18, %c0_19], %28 {strides = array<i32>} : memref<16x64xf32, #tpu.memory_space<vmem>>, vector<16x64xf32>,
    } else {
    }
    return
  }
  func.func @transform_0(%arg0: i32, %arg1: i32, %arg2: i32) -> (i32, i32) {
    %c0_i32 = arith.constant 0 : i32
    return %arg0, %arg2 : i32, i32
  }
  func.func @transform_1(%arg0: i32, %arg1: i32, %arg2: i32) -> (i32, i32) {
    %c0_i32 = arith.constant 0 : i32
    return %arg2, %arg1 : i32, i32
  }
  func.func @transform_2(%arg0: i32, %arg1: i32, %arg2: i32) -> (i32, i32) {
    %c0_i32 = arith.constant 0 : i32
    %c0_i32_0 = arith.constant 0 : i32
    return %c0_i32, %arg1 : i32, i32
  }
  func.func @transform_3(%arg0: i32, %arg1: i32, %arg2: i32) -> (i32, i32) {
    %c0_i32 = arith.constant 0 : i32
    return %arg0, %arg1 : i32, i32
  }
}

module attributes {stable_mosaic.version = 11 : i64} {
  func.func @_lmhead_nll_kernel(%arg0: i32, %arg1: memref<14x1xi32, #tpu.memory_space<vmem>>, %arg2: memref<14x32xbf16, #tpu.memory_space<vmem>>, %arg3: memref<64x32xbf16, #tpu.memory_space<vmem>>, %arg4: memref<14x1xf32, #tpu.memory_space<vmem>>, %arg5: memref<14x1xf32, #tpu.memory_space<vmem>>, %arg6: memref<14x1xf32, #tpu.memory_space<vmem>>, %arg7: memref<14x1xf32, #tpu.memory_space<vmem>>) attributes {dimension_semantics = [#tpu.dimension_semantics<arbitrary>], iteration_bounds = array<i64: 1>, scalar_prefetch = 0 : i64, scratch_operands = 3 : i64, tpu.core_type = #tpu.core_type<tc>, window_params = [{pipeline_mode = #tpu.pipeline_mode<synchronous>, transform_indices = @transform_0, window_bounds = array<i64: 14, 1>}, {pipeline_mode = #tpu.pipeline_mode<synchronous>, transform_indices = @transform_1, window_bounds = array<i64: 14, 32>}, {transform_indices = @transform_2, window_bounds = array<i64: 64, 32>}, {pipeline_mode = #tpu.pipeline_mode<synchronous>, transform_indices = @transform_3, window_bounds = array<i64: 14, 1>}]} {
    %c0_i32 = arith.constant 0 : i32
    %0 = arith.cmpi eq, %arg0, %c0_i32 : i32
    %1 = arith.extui %0 : i1 to i32
    %c0_i32_0 = arith.constant 0 : i32
    %2 = arith.cmpi ne, %1, %c0_i32_0 : i32
    scf.if %2 {
      %cst_23 = arith.constant -1.000000e+30 : f32
      %40 = vector.broadcast %cst_23 : f32 to vector<14x1xf32>
      %c0_24 = arith.constant 0 : index
      %c0_25 = arith.constant 0 : index
      %41 = vector.load %arg5[%c0_24, %c0_25] : memref<14x1xf32, #tpu.memory_space<vmem>>, vector<14x1xf32>
      tpu.vector_store %arg5[%c0_24, %c0_25], %40 {strides = array<i32>} : memref<14x1xf32, #tpu.memory_space<vmem>>, vector<14x1xf32>,
      %cst_26 = arith.constant 0.000000e+00 : f32
      %42 = vector.broadcast %cst_26 : f32 to vector<14x1xf32>
      %c0_27 = arith.constant 0 : index
      %c0_28 = arith.constant 0 : index
      %43 = vector.load %arg6[%c0_27, %c0_28] : memref<14x1xf32, #tpu.memory_space<vmem>>, vector<14x1xf32>
      tpu.vector_store %arg6[%c0_27, %c0_28], %42 {strides = array<i32>} : memref<14x1xf32, #tpu.memory_space<vmem>>, vector<14x1xf32>,
      %cst_29 = arith.constant 0.000000e+00 : f32
      %44 = vector.broadcast %cst_29 : f32 to vector<14x1xf32>
      %c0_30 = arith.constant 0 : index
      %c0_31 = arith.constant 0 : index
      %45 = vector.load %arg7[%c0_30, %c0_31] : memref<14x1xf32, #tpu.memory_space<vmem>>, vector<14x1xf32>
      tpu.vector_store %arg7[%c0_30, %c0_31], %44 {strides = array<i32>} : memref<14x1xf32, #tpu.memory_space<vmem>>, vector<14x1xf32>,
    } else {
    }
    %c0 = arith.constant 0 : index
    %c0_1 = arith.constant 0 : index
    %3 = vector.load %arg2[%c0, %c0_1] : memref<14x32xbf16, #tpu.memory_space<vmem>>, vector<14x32xbf16>
    %c0_2 = arith.constant 0 : index
    %c0_3 = arith.constant 0 : index
    %4 = vector.load %arg3[%c0_2, %c0_3] : memref<64x32xbf16, #tpu.memory_space<vmem>>, vector<64x32xbf16>
    %cst = arith.constant dense<0.000000e+00> : vector<14x64xf32>
    %5 = tpu.matmul %3, %4, %cst {dimension_numbers = #tpu.dot_dimension_numbers<[1], [1], [0], [0], [0, 0, 1, 0], [], []>} : vector<14x32xbf16>, vector<64x32xbf16>, vector<14x64xf32> -> vector<14x64xf32>
    %6 = tpu.iota {dimensions = array<i32: 1>} : vector<14x64xi32>
    %c64_i32 = arith.constant 64 : i32
    %7 = arith.muli %arg0, %c64_i32 : i32
    %8 = vector.broadcast %7 : i32 to vector<14x64xi32>
    %9 = arith.addi %6, %8 : vector<14x64xi32>
    %c0_4 = arith.constant 0 : index
    %c0_5 = arith.constant 0 : index
    %10 = vector.load %arg1[%c0_4, %c0_5] : memref<14x1xi32, #tpu.memory_space<vmem>>, vector<14x1xi32>
    %11 = vector.broadcast %10 : vector<14x1xi32> to vector<14x64xi32>
    %12 = arith.cmpi eq, %9, %11 : vector<14x64xi32>
    %13 = arith.extui %12 : vector<14x64xi1> to vector<14x64xi32>
    %14 = arith.sitofp %13 : vector<14x64xi32> to vector<14x64xf32>
    %c0_6 = arith.constant 0 : index
    %c0_7 = arith.constant 0 : index
    %15 = vector.load %arg7[%c0_6, %c0_7] : memref<14x1xf32, #tpu.memory_space<vmem>>, vector<14x1xf32>
    %16 = arith.mulf %14, %5 : vector<14x64xf32>
    %cst_8 = arith.constant dense<0.000000e+00> : vector<14xf32>
    %17 = vector.multi_reduction <add>, %16, %cst_8 [1] : vector<14x64xf32> to vector<14xf32>
    %18 = vector.shape_cast %17 : vector<14xf32> to vector<14x1xf32>
    %19 = arith.addf %15, %18 : vector<14x1xf32>
    %c0_9 = arith.constant 0 : index
    %c0_10 = arith.constant 0 : index
    %20 = vector.load %arg7[%c0_9, %c0_10] : memref<14x1xf32, #tpu.memory_space<vmem>>, vector<14x1xf32>
    tpu.vector_store %arg7[%c0_9, %c0_10], %19 {strides = array<i32>} : memref<14x1xf32, #tpu.memory_space<vmem>>, vector<14x1xf32>,
    %c0_11 = arith.constant 0 : index
    %c0_12 = arith.constant 0 : index
    %21 = vector.load %arg5[%c0_11, %c0_12] : memref<14x1xf32, #tpu.memory_space<vmem>>, vector<14x1xf32>
    %cst_13 = arith.constant dense<0xFF800000> : vector<14xf32>
    %22 = vector.multi_reduction <maximumf>, %5, %cst_13 [1] : vector<14x64xf32> to vector<14xf32>
    %23 = vector.shape_cast %22 : vector<14xf32> to vector<14x1xf32>
    %24 = arith.maximumf %21, %23 : vector<14x1xf32>
    %c0_14 = arith.constant 0 : index
    %c0_15 = arith.constant 0 : index
    %25 = vector.load %arg6[%c0_14, %c0_15] : memref<14x1xf32, #tpu.memory_space<vmem>>, vector<14x1xf32>
    %26 = arith.subf %21, %24 : vector<14x1xf32>
    %27 = math.exp %26 : vector<14x1xf32>
    %28 = arith.mulf %25, %27 : vector<14x1xf32>
    %29 = vector.broadcast %24 : vector<14x1xf32> to vector<14x64xf32>
    %30 = arith.subf %5, %29 : vector<14x64xf32>
    %31 = math.exp %30 : vector<14x64xf32>
    %cst_16 = arith.constant dense<0.000000e+00> : vector<14xf32>
    %32 = vector.multi_reduction <add>, %31, %cst_16 [1] : vector<14x64xf32> to vector<14xf32>
    %33 = vector.shape_cast %32 : vector<14xf32> to vector<14x1xf32>
    %34 = arith.addf %28, %33 : vector<14x1xf32>
    %c0_17 = arith.constant 0 : index
    %c0_18 = arith.constant 0 : index
    %35 = vector.load %arg6[%c0_17, %c0_18] : memref<14x1xf32, #tpu.memory_space<vmem>>, vector<14x1xf32>
    tpu.vector_store %arg6[%c0_17, %c0_18], %34 {strides = array<i32>} : memref<14x1xf32, #tpu.memory_space<vmem>>, vector<14x1xf32>,
    %c0_19 = arith.constant 0 : index
    %c0_20 = arith.constant 0 : index
    %36 = vector.load %arg5[%c0_19, %c0_20] : memref<14x1xf32, #tpu.memory_space<vmem>>, vector<14x1xf32>
    tpu.vector_store %arg5[%c0_19, %c0_20], %24 {strides = array<i32>} : memref<14x1xf32, #tpu.memory_space<vmem>>, vector<14x1xf32>,
    %c0_i32_21 = arith.constant 0 : i32
    %37 = arith.cmpi eq, %arg0, %c0_i32_21 : i32
    %38 = arith.extui %37 : i1 to i32
    %c0_i32_22 = arith.constant 0 : i32
    %39 = arith.cmpi ne, %38, %c0_i32_22 : i32
    scf.if %39 {
      %c0_23 = arith.constant 0 : index
      %c0_24 = arith.constant 0 : index
      %40 = vector.load %arg5[%c0_23, %c0_24] : memref<14x1xf32, #tpu.memory_space<vmem>>, vector<14x1xf32>
      %c0_25 = arith.constant 0 : index
      %c0_26 = arith.constant 0 : index
      %41 = vector.load %arg6[%c0_25, %c0_26] : memref<14x1xf32, #tpu.memory_space<vmem>>, vector<14x1xf32>
      %42 = math.log %41 : vector<14x1xf32>
      %43 = arith.addf %40, %42 : vector<14x1xf32>
      %c0_27 = arith.constant 0 : index
      %c0_28 = arith.constant 0 : index
      %44 = vector.load %arg7[%c0_27, %c0_28] : memref<14x1xf32, #tpu.memory_space<vmem>>, vector<14x1xf32>
      %45 = arith.subf %43, %44 : vector<14x1xf32>
      %c0_29 = arith.constant 0 : index
      %c0_30 = arith.constant 0 : index
      %46 = vector.load %arg4[%c0_29, %c0_30] : memref<14x1xf32, #tpu.memory_space<vmem>>, vector<14x1xf32>
      tpu.vector_store %arg4[%c0_29, %c0_30], %45 {strides = array<i32>} : memref<14x1xf32, #tpu.memory_space<vmem>>, vector<14x1xf32>,
    } else {
    }
    return
  }
  func.func @transform_0(%arg0: i32) -> (i32, i32) {
    %c0_i32 = arith.constant 0 : i32
    %c0_i32_0 = arith.constant 0 : i32
    %c0_i32_1 = arith.constant 0 : i32
    return %c0_i32, %c0_i32_0 : i32, i32
  }
  func.func @transform_1(%arg0: i32) -> (i32, i32) {
    %c0_i32 = arith.constant 0 : i32
    %c0_i32_0 = arith.constant 0 : i32
    %c0_i32_1 = arith.constant 0 : i32
    return %c0_i32, %c0_i32_0 : i32, i32
  }
  func.func @transform_2(%arg0: i32) -> (i32, i32) {
    %c0_i32 = arith.constant 0 : i32
    %c0_i32_0 = arith.constant 0 : i32
    return %arg0, %c0_i32 : i32, i32
  }
  func.func @transform_3(%arg0: i32) -> (i32, i32) {
    %c0_i32 = arith.constant 0 : i32
    %c0_i32_0 = arith.constant 0 : i32
    %c0_i32_1 = arith.constant 0 : i32
    return %c0_i32, %c0_i32_0 : i32, i32
  }
}

</mosaic_0001>

<bundles_post_ra>
// kernel: seq2edit_forward.30
= control target key start
LH: loop header
LB: loop body
LE: loop exit
PB: predicated region body
PF: predicated region fallthrough
CT: control target
= control target key end

     0   :  { %vm19_vm0 = vcmask 523264   ;;  %v217_v1 = vmov 0.0   ;;  %vm58_vm1 = vcmask 261120   ;;  %s277_s1 = inlined_call_operand.vmem [shape: bf16[32,64], index: 1, kind: input, shape index: {}]   ;;  %s278_s0 = inlined_call_operand.vmem [shape: bf16[32,32], index: 0, kind: input, shape index: {}]   ;;  %s279_s2 = inlined_call_operand.vmem [shape: f32[1,64], index: 2, kind: input, shape index: {}]   ;;  %s280_s3 = inlined_call_operand.vmem [shape: f32[32,64], index: 3, kind: output, shape index: {}]  }
   0x1   :  { %v205_v0 = vld [vmem:[%s277_s1] sm:$0xff]   ;;  %22 = vst.msk [vmem:[#allocation2 + $0x10] sm:$0xff] %vm19_vm0, %v217_v1  ;;  %20 = vst.msk [vmem:[#allocation2] sm:$0xff] %vm19_vm0, %v217_v1  ;;  %v206_v2 = vld [vmem:[%s277_s1 + $0x8] sm:$0xff]  }
   0x2   :  { %21 = vst.msk [vmem:[#allocation2 + $0x8] sm:$0xff] %vm19_vm0, %v217_v1  ;;  %23 = vst.msk [vmem:[#allocation2 + $0x18] sm:$0xff] %vm19_vm0, %v217_v1  ;;  %196 = vmatprep.subr.bf16.mxu0 %v205_v0  ;;  %v207_v3 = vld [vmem:[%s278_s0] sm:$0xff]   ;;  %v208_v4 = vld [vmem:[%s278_s0 + $0x8] sm:$0xff]  }
   0x3   :  { %197 = vmatpush3.bf16.msra.mxu0 %v205_v0  ;;  %200 = vmatprep.mubr.msk.bf16.mxu0 %vm58_vm1, %v207_v3  ;;  %v191_v17 = vld [vmem:[%s279_s2] ss:$0 sm:$0xff] }
   0x4   :  { %198 = vmatprep.subr.bf16.mxu0 %v206_v2 }
   0x7   :  { %199 = vmatpush3.bf16.msra.mxu0 %v206_v2 }
   0x8   :  { %v26_v5 = vld [vmem:[#allocation2 + $0x10] sm:$0xff]  ;;  %v24_v6 = vld [vmem:[#allocation2] sm:$0xff] }
   0x9   :  { %v27_v8 = vld [vmem:[#allocation2 + $0x18] sm:$0xff]  ;;  %v25_v11 = vld [vmem:[#allocation2 + $0x8] sm:$0xff] }
   0xa   :  { %201 = vmatmul.mubr.msk.bf16.vlgmr.msra.gmra.mrb[0].mxu0 %vm58_vm1, %v208_v4 }
  0xdd   :  { %v202_v7 = vpop.f32.mrb[0].mxu0 }
  0xde   :  { %v116_v9 = vadd.f32 %v202_v7, %v26_v5  ;;  %v99_v10 = vpop.f32.mrb[1].mxu0 }
  0xdf   :  { %v114_v12 = vadd.f32 %v99_v10, %v24_v6  ;;  %v203_v13 = vpop.f32.mrb[2].mxu0 }
  0xe0   :  { %121 = vst.msk [vmem:[#allocation2 + $0x10] sm:$0xff] %vm19_vm0, %v116_v9  ;;  %v117_v14 = vadd.f32 %v203_v13, %v27_v8  ;;  %v102_v15 = vpop.f32.mrb[3].mxu0 }
  0xe1   :  { %119 = vst.msk [vmem:[#allocation2] sm:$0xff] %vm19_vm0, %v114_v12  ;;  %v115_v16 = vadd.f32 %v102_v15, %v25_v11 }
  0xe2   :  { %122 = vst.msk [vmem:[#allocation2 + $0x18] sm:$0xff] %vm19_vm0, %v117_v14 }
  0xe3   :  { %120 = vst.msk [vmem:[#allocation2 + $0x8] sm:$0xff] %vm19_vm0, %v115_v16 }
  0xe7   :  { %v128_v18 = vld [vmem:[#allocation2 + $0x10] sm:$0xff] }
  0xe8   :  { %v139_v19 = vadd.f32 %v191_v17, %v128_v18  ;;  %v126_v20 = vld [vmem:[#allocation2] sm:$0xff] }
  0xe9   :  { %v137_v21 = vadd.f32 %v191_v17, %v126_v20  ;;  %v129_v22 = vld [vmem:[#allocation2 + $0x18] sm:$0xff] }
  0xea   :  { %v143_v23 = vmul.f32 %v139_v19, %v139_v19  ;;  %v140_v24 = vadd.f32 %v191_v17, %v129_v22  ;;  %v127_v25 = vld [vmem:[#allocation2 + $0x8] sm:$0xff] }
  0xeb   :  { %v141_v26 = vmul.f32 %v137_v21, %v137_v21  ;;  %v138_v27 = vadd.f32 %v191_v17, %v127_v25 }
  0xec   :  { %v147_v28 = vmul.f32 %v143_v23, %v139_v19  ;;  %v144_v29 = vmul.f32 %v140_v24, %v140_v24 }
  0xed   :  { %v145_v30 = vmul.f32 %v141_v26, %v137_v21  ;;  %v142_v31 = vmul.f32 %v138_v27, %v138_v27 }
  0xee   :  { %v151_v32 = vmul.f32 0.044715, %v147_v28  ;;  %v148_v33 = vmul.f32 %v144_v29, %v140_v24 }
  0xef   :  { %v149_v34 = vmul.f32 0.044715, %v145_v30  ;;  %v146_v35 = vmul.f32 %v142_v31, %v138_v27 }
  0xf0   :  { %v155_v36 = vadd.f32 %v151_v32, %v139_v19  ;;  %v152_v37 = vmul.f32 0.044715, %v148_v33 }
  0xf1   :  { %v153_v38 = vadd.f32 %v149_v34, %v137_v21  ;;  %v150_v39 = vmul.f32 0.044715, %v146_v35 }
  0xf2   :  { %v159_v40 = vmul.f32 0.7978846, %v155_v36  ;;  %v156_v41 = vadd.f32 %v152_v37, %v140_v24 }
  0xf3   :  { %v157_v42 = vmul.f32 0.7978846, %v153_v38  ;;  %v154_v43 = vadd.f32 %v150_v39, %v138_v27 }
  0xf4   :  { %209 = vtanh.f32 %v159_v40  ;;  %v160_v44 = vmul.f32 0.7978846, %v156_v41 }
  0xf5   :  { %211 = vtanh.f32 %v157_v42  ;;  %v158_v45 = vmul.f32 0.7978846, %v154_v43 }
  0xf6   :  { %213 = vtanh.f32 %v160_v44 }
  0xf7   :  { %215 = vtanh.f32 %v158_v45 }
  0xfe   :  { %v210_v46 = vpop.eup %209 }
  0xff   :  { %v212_v47 = vpop.eup %211  ;;  %v167_v48 = vadd.f32 1.0, %v210_v46 }
 0x100   :  { %v214_v49 = vpop.eup %213  ;;  %v165_v50 = vadd.f32 1.0, %v212_v47 }
 0x101   :  { %v216_v51 = vpop.eup %215  ;;  %v171_v52 = vmul.f32 0.5, %v167_v48  ;;  %v168_v53 = vadd.f32 1.0, %v214_v49 }
 0x102   :  { %v169_v54 = vmul.f32 0.5, %v165_v50  ;;  %v166_v55 = vadd.f32 1.0, %v216_v51 }
 0x103   :  { %v175_v56 = vmul.f32 %v171_v52, %v139_v19  ;;  %v172_v57 = vmul.f32 0.5, %v168_v53 }
 0x104   :  { %v173_v58 = vmul.f32 %v169_v54, %v137_v21  ;;  %v170_v59 = vmul.f32 0.5, %v166_v55 }
 0x105   :  { %179 = vst.msk [vmem:[%s280_s3 + $0x10] sm:$0xff] %vm19_vm0, %v175_v56  ;;  %v176_v60 = vmul.f32 %v172_v57, %v140_v24 }
 0x106   :  { %177 = vst.msk [vmem:[%s280_s3] sm:$0xff] %vm19_vm0, %v173_v58  ;;  %v174_v61 = vmul.f32 %v170_v59, %v138_v27 }
 0x107   :  { %180 = vst.msk [vmem:[%s280_s3 + $0x18] sm:$0xff] %vm19_vm0, %v176_v60 }
 0x108   :  { %178 = vst.msk [vmem:[%s280_s3 + $0x8] sm:$0xff] %vm19_vm0, %v174_v61 }

// kernel: seq2edit_forward.27
= control target key start
LH: loop header
LB: loop body
LE: loop exit
PB: predicated region body
PF: predicated region fallthrough
CT: control target
= control target key end

     0   :  { %vm19_vm0 = vcmask 785408   ;;  %v173_v1 = vmov 0.0   ;;  %vm58_vm1 = vcmask 261120   ;;  %s233_s1 = inlined_call_operand.vmem [shape: bf16[32,96], index: 1, kind: input, shape index: {}]   ;;  %s234_s0 = inlined_call_operand.vmem [shape: bf16[32,32], index: 0, kind: input, shape index: {}]   ;;  %s235_s2 = inlined_call_operand.vmem [shape: f32[1,96], index: 2, kind: input, shape index: {}]   ;;  %s236_s3 = inlined_call_operand.vmem [shape: f32[32,96], index: 3, kind: output, shape index: {}]  }
   0x1   :  { %v169_v0 = vld [vmem:[%s233_s1] sm:$0xff]   ;;  %22 = vst.msk [vmem:[#allocation2 + $0x10] sm:$0xff] %vm19_vm0, %v173_v1  ;;  %20 = vst.msk [vmem:[#allocation2] sm:$0xff] %vm19_vm0, %v173_v1  ;;  %v170_v2 = vld [vmem:[%s233_s1 + $0x8] sm:$0xff]  }
   0x2   :  { %21 = vst.msk [vmem:[#allocation2 + $0x8] sm:$0xff] %vm19_vm0, %v173_v1  ;;  %23 = vst.msk [vmem:[#allocation2 + $0x18] sm:$0xff] %vm19_vm0, %v173_v1  ;;  %160 = vmatprep.subr.bf16.mxu0 %v169_v0  ;;  %v171_v3 = vld [vmem:[%s234_s0] sm:$0xff]   ;;  %v172_v4 = vld [vmem:[%s234_s0 + $0x8] sm:$0xff]  }
   0x3   :  { %161 = vmatpush3.bf16.msra.mxu0 %v169_v0  ;;  %164 = vmatprep.mubr.msk.bf16.mxu0 %vm58_vm1, %v171_v3  ;;  %v155_v17 = vld [vmem:[%s235_s2] ss:$0 sm:$0xff] }
   0x4   :  { %162 = vmatprep.subr.bf16.mxu0 %v170_v2 }
   0x7   :  { %163 = vmatpush3.bf16.msra.mxu0 %v170_v2 }
   0x8   :  { %v26_v5 = vld [vmem:[#allocation2 + $0x10] sm:$0xff]  ;;  %v24_v6 = vld [vmem:[#allocation2] sm:$0xff] }
   0x9   :  { %v27_v8 = vld [vmem:[#allocation2 + $0x18] sm:$0xff]  ;;  %v25_v11 = vld [vmem:[#allocation2 + $0x8] sm:$0xff] }
   0xa   :  { %165 = vmatmul.mubr.msk.bf16.vlgmr.msra.gmra.mrb[0].mxu0 %vm58_vm1, %v172_v4 }
  0xdd   :  { %v166_v7 = vpop.f32.mrb[0].mxu0 }
  0xde   :  { %v116_v9 = vadd.f32 %v166_v7, %v26_v5  ;;  %v99_v10 = vpop.f32.mrb[1].mxu0 }
  0xdf   :  { %v114_v12 = vadd.f32 %v99_v10, %v24_v6  ;;  %v167_v13 = vpop.f32.mrb[2].mxu0 }
  0xe0   :  { %121 = vst.msk [vmem:[#allocation2 + $0x10] sm:$0xff] %vm19_vm0, %v116_v9  ;;  %v117_v14 = vadd.f32 %v167_v13, %v27_v8  ;;  %v102_v15 = vpop.f32.mrb[3].mxu0 }
  0xe1   :  { %119 = vst.msk [vmem:[#allocation2] sm:$0xff] %vm19_vm0, %v114_v12  ;;  %v115_v16 = vadd.f32 %v102_v15, %v25_v11 }
  0xe2   :  { %122 = vst.msk [vmem:[#allocation2 + $0x18] sm:$0xff] %vm19_vm0, %v117_v14 }
  0xe3   :  { %120 = vst.msk [vmem:[#allocation2 + $0x8] sm:$0xff] %vm19_vm0, %v115_v16 }
  0xe7   :  { %v128_v18 = vld [vmem:[#allocation2 + $0x10] sm:$0xff] }
  0xe8   :  { %v139_v19 = vadd.f32 %v155_v17, %v128_v18  ;;  %v126_v20 = vld [vmem:[#allocation2] sm:$0xff] }
  0xe9   :  { %v137_v21 = vadd.f32 %v155_v17, %v126_v20  ;;  %v129_v22 = vld [vmem:[#allocation2 + $0x18] sm:$0xff] }
  0xea   :  { %143 = vst.msk [vmem:[%s236_s3 + $0x10] sm:$0xff] %vm19_vm0, %v139_v19  ;;  %v140_v23 = vadd.f32 %v155_v17, %v129_v22  ;;  %v127_v24 = vld [vmem:[#allocation2 + $0x8] sm:$0xff] }
  0xeb   :  { %141 = vst.msk [vmem:[%s236_s3] sm:$0xff] %vm19_vm0, %v137_v21  ;;  %v138_v25 = vadd.f32 %v155_v17, %v127_v24 }
  0xec   :  { %144 = vst.msk [vmem:[%s236_s3 + $0x18] sm:$0xff] %vm19_vm0, %v140_v23 }
  0xed   :  { %142 = vst.msk [vmem:[%s236_s3 + $0x8] sm:$0xff] %vm19_vm0, %v138_v25 }

// kernel: seq2edit_forward.29
= control target key start
LH: loop header
LB: loop body
LE: loop exit
PB: predicated region body
PF: predicated region fallthrough
CT: control target
= control target key end

     0   :  { %vm19_vm0 = vcmask 261120   ;;  %v172_v1 = vmov 0.0   ;;  %s234_s1 = inlined_call_operand.vmem [shape: bf16[32,32], index: 1, kind: input, shape index: {}]   ;;  %s235_s0 = inlined_call_operand.vmem [shape: bf16[32,32], index: 0, kind: input, shape index: {}]   ;;  %s236_s2 = inlined_call_operand.vmem [shape: f32[1,32], index: 2, kind: input, shape index: {}]   ;;  %s237_s3 = inlined_call_operand.vmem [shape: f32[32,32], index: 3, kind: output, shape index: {}]  }
   0x1   :  { %v168_v0 = vld [vmem:[%s234_s1] sm:$0xff]   ;;  %22 = vst.msk [vmem:[#allocation2 + $0x10] sm:$0xff] %vm19_vm0, %v172_v1  ;;  %20 = vst.msk [vmem:[#allocation2] sm:$0xff] %vm19_vm0, %v172_v1  ;;  %v169_v2 = vld [vmem:[%s234_s1 + $0x8] sm:$0xff]  }
   0x2   :  { %21 = vst.msk [vmem:[#allocation2 + $0x8] sm:$0xff] %vm19_vm0, %v172_v1  ;;  %23 = vst.msk [vmem:[#allocation2 + $0x18] sm:$0xff] %vm19_vm0, %v172_v1  ;;  %159 = vmatprep.subr.bf16.mxu0 %v168_v0  ;;  %v170_v3 = vld [vmem:[%s235_s0] sm:$0xff]   ;;  %v171_v4 = vld [vmem:[%s235_s0 + $0x8] sm:$0xff]  }
   0x3   :  { %160 = vmatpush3.bf16.msra.mxu0 %v168_v0  ;;  %163 = vmatprep.mubr.msk.bf16.mxu0 %vm19_vm0, %v170_v3  ;;  %v154_v17 = vld [vmem:[%s236_s2] ss:$0 sm:$0xff] }
   0x4   :  { %161 = vmatprep.subr.bf16.mxu0 %v169_v2 }
   0x7   :  { %162 = vmatpush3.bf16.msra.mxu0 %v169_v2 }
   0x8   :  { %v26_v5 = vld [vmem:[#allocation2 + $0x10] sm:$0xff]  ;;  %v24_v6 = vld [vmem:[#allocation2] sm:$0xff] }
   0x9   :  { %v27_v8 = vld [vmem:[#allocation2 + $0x18] sm:$0xff]  ;;  %v25_v11 = vld [vmem:[#allocation2 + $0x8] sm:$0xff] }
   0xa   :  { %164 = vmatmul.mubr.msk.bf16.vlgmr.msra.gmra.mrb[0].mxu0 %vm19_vm0, %v171_v4 }
  0xdd   :  { %v165_v7 = vpop.f32.mrb[0].mxu0 }
  0xde   :  { %v116_v9 = vadd.f32 %v165_v7, %v26_v5  ;;  %v99_v10 = vpop.f32.mrb[1].mxu0 }
  0xdf   :  { %v114_v12 = vadd.f32 %v99_v10, %v24_v6  ;;  %v166_v13 = vpop.f32.mrb[2].mxu0 }
  0xe0   :  { %120 = vst.msk [vmem:[#allocation2 + $0x10] sm:$0xff] %vm19_vm0, %v116_v9  ;;  %v117_v14 = vadd.f32 %v166_v13, %v27_v8  ;;  %v102_v15 = vpop.f32.mrb[3].mxu0 }
  0xe1   :  { %118 = vst.msk [vmem:[#allocation2] sm:$0xff] %vm19_vm0, %v114_v12  ;;  %v115_v16 = vadd.f32 %v102_v15, %v25_v11 }
  0xe2   :  { %121 = vst.msk [vmem:[#allocation2 + $0x18] sm:$0xff] %vm19_vm0, %v117_v14 }
  0xe3   :  { %119 = vst.msk [vmem:[#allocation2 + $0x8] sm:$0xff] %vm19_vm0, %v115_v16 }
  0xe7   :  { %v127_v18 = vld [vmem:[#allocation2 + $0x10] sm:$0xff] }
  0xe8   :  { %v138_v19 = vadd.f32 %v154_v17, %v127_v18  ;;  %v125_v20 = vld [vmem:[#allocation2] sm:$0xff] }
  0xe9   :  { %v136_v21 = vadd.f32 %v154_v17, %v125_v20  ;;  %v128_v22 = vld [vmem:[#allocation2 + $0x18] sm:$0xff] }
  0xea   :  { %142 = vst.msk [vmem:[%s237_s3 + $0x10] sm:$0xff] %vm19_vm0, %v138_v19  ;;  %v139_v23 = vadd.f32 %v154_v17, %v128_v22  ;;  %v126_v24 = vld [vmem:[#allocation2 + $0x8] sm:$0xff] }
  0xeb   :  { %140 = vst.msk [vmem:[%s237_s3] sm:$0xff] %vm19_vm0, %v136_v21  ;;  %v137_v25 = vadd.f32 %v154_v17, %v126_v24 }
  0xec   :  { %143 = vst.msk [vmem:[%s237_s3 + $0x18] sm:$0xff] %vm19_vm0, %v139_v23 }
  0xed   :  { %141 = vst.msk [vmem:[%s237_s3 + $0x8] sm:$0xff] %vm19_vm0, %v137_v25 }

// kernel: seq2edit_forward.28
= control target key start
LH: loop header
LB: loop body
LE: loop exit
PB: predicated region body
PF: predicated region fallthrough
CT: control target
= control target key end

     0   :  { %s1088_s15 = smov 0   ;;  %s1220_s0 = inlined_call_operand.vmem [shape: bf16[2,16,32], index: 0, kind: input, shape index: {}]   ;;  %s1221_s1 = inlined_call_operand.vmem [shape: bf16[2,16,32], index: 1, kind: input, shape index: {}]   ;;  %s1222_s2 = inlined_call_operand.vmem [shape: bf16[2,16,32], index: 2, kind: input, shape index: {}]   ;;  %s1223_s3 = inlined_call_operand.vmem [shape: f32[2,1,16], index: 3, kind: input, shape index: {}]   ;;  %s1224_s4 = inlined_call_operand.vmem [shape: f32[2,16,32], index: 4, kind: output, shape index: {}]  }
   0x1 LB: > { %s900_s16 = sadd.s32 4294967295, %s1052_s15   ;;  %p904_p0 = scmp.ge.s32.totalorder %s1052_s15, 1  ;;  %s1052_s15 = sphi %s1088_s15, %s14_s15  }
   0x2   : > { %p190_p1 = scmp.lt.s32.totalorder %s1052_s15, 3 }
   0x4   : > { %p191_p2 = pnand %p904_p0, %p190_p1 }
   0x5   : > { %p229_p3 = scmp.lt.s32.totalorder (!%p191_p2), %s900_s16, 1  ;;  %v1054_v0 = vmov (!%p191_p2), 0.0   ;;  %vm1055_vm0 = vmmov (!%p191_p2), 0   ;;  %vm277_vm1 = vcmask (!%p191_p2), 64512   ;;  %v262_v4 = vlaneseq (!%p191_p2)  ;;  %s1057_s27 = smov (!%p191_p2), 120  }
   0x6   : > { %194 = sbr.rel (%p191_p2) target bundleno = 1495 (0x5d7), region = 36  ;;  %946 = vmatprep.subr.bf16.mxu0 (!%p191_p2), %v1054_v0  ;;  %948 = vmatprep.mubr.msk.bf16.mxu0 (!%p191_p2), %vm1055_vm0, %v1054_v0  ;;  %v1056_v8 = vmov (!%p191_p2), 0   ;;  %vm329_vm4 = vcmask (!%p191_p2), 130048   ;;  %s1058_s28 = smov (!%p191_p2), 104   ;;  %vm806_vm5 = vcmask (!%p191_p2), 195584   ;;  %vm809_vm6 = vcmask (!%p191_p2), 261120  }
   0x7   : > { %952 = vmatprep.subr.bf16.mxu1 (!%p191_p2), %v1054_v0  ;;  %954 = vmatprep.mubr.msk.bf16.mxu1 (!%p191_p2), %vm1055_vm0, %v1054_v0  ;;  %v263_v6 = vshrl.u32 (!%p191_p2), %v262_v4, 7  ;;  %s1059_s6 = smov (!%p191_p2), 112   ;;  %s1060_s7 = smov (!%p191_p2), 8  }
   0x8   : > { %s1061_s8 = smov (!%p191_p2), 16   ;;  %s1062_s9 = smov (!%p191_p2), 24  }
   0x9   : > { %v264_v7 = vsub.s32 (!%p191_p2), 0, %v263_v6 }
   0xd   : > { %s1226_s16 = smov (!%p229_p3, %s900_s16), 1 }
   0xe   : > { %s1105_s17 = sshll.u32 %s1226_s16, 3  ;;  %s246_s26 = scalar_lea.vmem %s1223_s3, %s1226_s16 }
   0xf   : > { %s238_s20 = scalar_lea.vmem %s1221_s1, %s1105_s17  ;;  %s233_s23 = scalar_lea.vmem %s1220_s0, %s1105_s17  ;;  %v259_v5 = vld [vmem:[%s246_s26] sm:$0x1] }
  0x10   : > { %v1011_v1 = vld [vmem:[%s238_s20] sm:$0xff]   ;;  %vm260_vm2 = vcmp.gt.f32.partialorder %v259_v5, 0.5  ;;  %s243_s5 = scalar_lea.vmem %s1222_s2, %s1105_s17  ;;  %s929_s10 = sshll.u32 %s1226_s16, 4 }
  0x11   : > { %v282_v2 = vsel %vm277_vm1, %v1011_v1, 0  ;;  %v1012_v3 = vld [vmem:[%s233_s23] sm:$0xff]   ;;  %v261_v9 = vsel %vm260_vm2, 1, %v1056_v8  ;;  %s251_s13 = scalar_lea.vmem %s1224_s4, %s929_s10 }
  0x12   : > { %947 = vmatpush3.bf16.xpose.msra.mxu0 %v282_v2  ;;  %v1124_v10 = vrot.slane %v261_v9, %v264_v7  ;;  %v1141_v31 = vld [vmem:[%s243_s5] sm:$0xff]  }
  0x13   : > { %964 = vmatprep.subr.bf16.mxu0 %v1054_v0  ;;  %953 = vmatpush3.bf16.msra.mxu1 %v1141_v31 }
  0x14   : > { %vm266_vm3 = vcmp.eq.s32.totalorder %v1124_v10, 1  ;;  %958 = vmatprep.subr.bf16.mxu1 %v1054_v0 }
  0x19   : > { %949 = vmatmul.mubr.msk.bf16.vlgmr.msra.gmra.mrb[0].mxu0 %vm277_vm1, %v1012_v3 }
  0x1a   : > { %966 = vmatprep.mubr.msk.bf16.mxu0 %vm1055_vm0, %v1054_v0 }
  0xec   : > { %v318_v11 = vpop.f32.mrb[0].mxu0 }
  0xed   : > { %v325_v12 = vmul.f32 0.35355338, %v318_v11  ;;  %v950_v13 = vpop.f32.mrb[1].mxu0 }
  0xee   : > { %v321_v14 = vpop.f32.mrb[2].mxu0 }
  0xef   : > { %v326_v15 = vmul.f32 0.35355338, %v321_v14  ;;  %v951_v16 = vpop.f32.mrb[3].mxu0  ;;  %v327_v17 = vsel %vm266_vm3, %v325_v12, -1e+30 }
  0xf0   : > { %v330_v18 = vsel %vm329_vm4, %v327_v17, -inf }
  0xf1   : > { %331 = vmax.xlane.f32.xlu0 %v330_v18  ;;  %v328_v19 = vsel %vm266_vm3, %v326_v15, -1e+30 }
  0xf2   : > { %v333_v20 = vsel %vm329_vm4, %v328_v19, -inf }
  0xf5   : > { %334 = vmax.xlane.f32.xlu0 %v333_v20 }
 0x10b   : > { %405 = vrot.lane.b32.xlu0 %v1011_v1, %s1057_s27 }
 0x10f   : > { %655 = vrot.lane.b32.xlu0 %v1011_v1, %s1058_s28 }
 0x17e   : > { %v332_v21 = vpop.xlane.xlu0 %331 }
 0x17f   : > { %v336_v22 = vsub.f32 %v327_v17, %v332_v21 }
 0x181   : > { %v338_v23 = vmul.f32 1.442695, %v336_v22 }
 0x182   : > { %v335_v24 = vpop.xlane.xlu0 %334 }
 0x183   : > { %1014 = vpow2.f32 %v338_v23  ;;  %v337_v25 = vsub.f32 %v328_v19, %v335_v24 }
 0x185   : > { %v340_v26 = vmul.f32 1.442695, %v337_v25 }
 0x186   : > { %v406_v36 = vpop.permute.xlu0 %405 }
 0x187   : > { %1016 = vpow2.f32 %v340_v26  ;;  %v411_v40 = vsel %vm277_vm1, %v406_v36, 0 }
 0x18a   : > { %v656_v44 = vpop.permute.xlu0 %655 }
 0x18b   : > { %v661_v46 = vsel %vm277_vm1, %v656_v44, 0 }
 0x18d   : > { %v1015_v27 = vpop.eup %1014 }
 0x18e   : > { %v342_v28 = vsel %vm329_vm4, %v1015_v27, 0.0 }
 0x18f   : > { %343 = vadd.xlane.f32.xlu1 %v342_v28 }
 0x191   : > { %v1017_v29 = vpop.eup %1016 }
 0x192   : > { %v345_v30 = vsel %vm329_vm4, %v1017_v29, 0.0 }
 0x193   : > { %346 = vadd.xlane.f32.xlu1 %v345_v30 }
 0x1a4   : > { %403 = vrot.lane.b32.xlu1 %v1012_v3, %s1057_s27 }
 0x1a8   : > { %530 = vrot.lane.b32.xlu1 %v1011_v1, %s1059_s6 }
 0x1ac   : > { %528 = vrot.lane.b32.xlu1 %v1012_v3, %s1059_s6 }
 0x1b0   : > { %653 = vrot.lane.b32.xlu1 %v1012_v3, %s1058_s28 }
 0x21c   : > { %v344_v32 = vpop.xlane.xlu1 %343 }
 0x21d   : > { %1018 = vrcp.f32 %v344_v32 }
 0x220   : > { %v347_v33 = vpop.xlane.xlu1 %346 }
 0x221   : > { %1020 = vrcp.f32 %v347_v33 }
 0x224   : > { %v404_v39 = vpop.permute.xlu1 %403 }
 0x227   : > { %v1019_v34 = vpop.eup %1018 }
 0x228   : > { %v350_v37 = vmul.f32 %v1019_v34, %v1015_v27  ;;  %v531_v42 = vpop.permute.xlu1 %530 }
 0x229   : > { %v536_v43 = vsel %vm277_vm1, %v531_v42, 0 }
 0x22b   : > { %v1021_v35 = vpop.eup %1020 }
 0x22c   : > { %v351_v38 = vmul.f32 %v1021_v35, %v1017_v29  ;;  %v529_v45 = vpop.permute.xlu1 %528 }
 0x22e   : > { %v352_v41 = vpack.c.bf16 %v351_v38, %v350_v37 }
 0x230   : > { %955 = vmatmul.mubr.msk.bf16.vlgmr.msra.gmra.mrb[0].mxu1 %vm329_vm4, %v352_v41  ;;  %v654_v47 = vpop.permute.xlu1 %653 }
 0x231   : > { %959 = vmatpush3.bf16.xpose.msra.mxu1 %v411_v40  ;;  %960 = vmatprep.mubr.msk.bf16.mxu1 %vm1055_vm0, %v1054_v0 }
 0x232   : > { %970 = vmatprep.subr.bf16.mxu1 %v1054_v0 }
 0x238   : > { %961 = vmatmul.mubr.msk.bf16.vlgmr.msra.gmra.mrb[4].mxu1 %vm277_vm1, %v404_v39 }
 0x239   : > { %971 = vmatpush3.bf16.xpose.msra.mxu1 %v536_v43  ;;  %972 = vmatprep.mubr.msk.bf16.mxu1 %vm1055_vm0, %v1054_v0 }
 0x23a   : > { %982 = vmatprep.subr.bf16.mxu1 %v1054_v0 }
 0x240   : > { %973 = vmatmul.mubr.msk.bf16.vlgmr.msra.gmra.mrb[8].mxu1 %vm277_vm1, %v529_v45 }
 0x241   : > { %983 = vmatpush3.bf16.xpose.msra.mxu1 %v661_v46  ;;  %984 = vmatprep.mubr.msk.bf16.mxu1 %vm1055_vm0, %v1054_v0 }
 0x248   : > { %985 = vmatmul.mubr.msk.bf16.vlgmr.msra.gmra.mrb[12].mxu1 %vm277_vm1, %v654_v47 }
 0x303   : > { %v1164_v48 = vpop.f32.mrb[0].mxu1 }
 0x304   : > { %v956_v49 = vpop.f32.mrb[1].mxu1 }
 0x305   : > { %v1166_v50 = vpop.f32.mrb[2].mxu1 }
 0x306   : > { %v957_v51 = vpop.f32.mrb[3].mxu1 }
 0x30b   : > { %v447_v52 = vpop.f32.mrb[4].mxu1 }
 0x30c   : > { %v454_v53 = vmul.f32 0.35355338, %v447_v52  ;;  %v962_v54 = vpop.f32.mrb[5].mxu1 }
 0x30d   : > { %v450_v55 = vpop.f32.mrb[6].mxu1 }
 0x30e   : > { %v455_v56 = vmul.f32 0.35355338, %v450_v55  ;;  %v963_v57 = vpop.f32.mrb[7].mxu1  ;;  %v456_v58 = vsel %vm266_vm3, %v454_v53, -1e+30 }
 0x30f   : > { %v458_v59 = vsel %vm329_vm4, %v456_v58, -inf }
 0x310   : > { %459 = vmax.xlane.f32.xlu0 %v458_v59  ;;  %v457_v60 = vsel %vm266_vm3, %v455_v56, -1e+30 }
 0x311   : > { %v461_v61 = vsel %vm329_vm4, %v457_v60, -inf }
 0x312   : > { %462 = vmax.xlane.f32.xlu1 %v461_v61 }
 0x313   : > { %v572_v62 = vpop.f32.mrb[8].mxu1 }
 0x314   : > { %v579_v63 = vmul.f32 0.35355338, %v572_v62  ;;  %v974_v1 = vpop.f32.mrb[9].mxu1 }
 0x315   : > { %v575_v2 = vpop.f32.mrb[10].mxu1 }
 0x316   : > { %v580_v3 = vmul.f32 0.35355338, %v575_v2  ;;  %v975_v4 = vpop.f32.mrb[11].mxu1  ;;  %v581_v5 = vsel %vm266_vm3, %v579_v63, -1e+30 }
 0x317   : > { %v583_v6 = vsel %vm329_vm4, %v581_v5, -inf }
 0x318   : > { %584 = vmax.xlane.f32.xlu0 %v583_v6  ;;  %v582_v7 = vsel %vm266_vm3, %v580_v3, -1e+30 }
 0x319   : > { %v586_v9 = vsel %vm329_vm4, %v582_v7, -inf }
 0x31b   : > { %v697_v8 = vpop.f32.mrb[12].mxu1 }
 0x31c   : > { %v704_v11 = vmul.f32 0.35355338, %v697_v8  ;;  %587 = vmax.xlane.f32.xlu0 %v586_v9  ;;  %v986_v12 = vpop.f32.mrb[13].mxu1 }
 0x31d   : > { %v700_v13 = vpop.f32.mrb[14].mxu1 }
 0x31e   : > { %v705_v14 = vmul.f32 0.35355338, %v700_v13  ;;  %v706_v15 = vsel %vm266_vm3, %v704_v11, -1e+30  ;;  %v987_v16 = vpop.f32.mrb[15].mxu1 }
 0x31f   : > { %v708_v17 = vsel %vm329_vm4, %v706_v15, -inf }
 0x320   : > { %709 = vmax.xlane.f32.xlu0 %v708_v17  ;;  %v707_v18 = vsel %vm266_vm3, %v705_v14, -1e+30 }
 0x321   : > { %v711_v19 = vsel %vm329_vm4, %v707_v18, -inf }
 0x322   : > { %712 = vmax.xlane.f32.xlu1 %v711_v19 }
 0x39d   : > { %v460_v20 = vpop.xlane.xlu0 %459 }
 0x39e   : > { %v464_v21 = vsub.f32 %v456_v58, %v460_v20 }
 0x39f   : > { %v463_v22 = vpop.xlane.xlu1 %462 }
 0x3a0   : > { %v466_v23 = vmul.f32 1.442695, %v464_v21  ;;  %v465_v24 = vsub.f32 %v457_v60, %v463_v22 }
 0x3a2   : > { %1022 = vpow2.f32 %v466_v23  ;;  %v468_v25 = vmul.f32 1.442695, %v465_v24 }
 0x3a4   : > { %1024 = vpow2.f32 %v468_v25 }
 0x3a5   : > { %v585_v26 = vpop.xlane.xlu0 %584 }
 0x3a6   : > { %v589_v27 = vsub.f32 %v581_v5, %v585_v26 }
 0x3a8   : > { %v591_v28 = vmul.f32 1.442695, %v589_v27 }
 0x3a9   : > { %v588_v29 = vpop.xlane.xlu0 %587 }
 0x3aa   : > { %1026 = vpow2.f32 %v591_v28  ;;  %v590_v30 = vsub.f32 %v582_v7, %v588_v29 }
 0x3ac   : > { %v1023_v32 = vpop.eup %1022  ;;  %v593_v10 = vmul.f32 1.442695, %v590_v30 }
 0x3ad   : > { %v710_v33 = vpop.xlane.xlu0 %709  ;;  %v470_v34 = vsel %vm329_vm4, %v1023_v32, 0.0 }
 0x3ae   : > { %v1025_v35 = vpop.eup %1024  ;;  %1028 = vpow2.f32 %v593_v10  ;;  %v714_v36 = vsub.f32 %v706_v15, %v710_v33  ;;  %471 = vadd.xlane.f32.xlu0 %v470_v34 }
 0x3af   : > { %v473_v37 = vsel %vm329_vm4, %v1025_v35, 0.0  ;;  %v713_v45 = vpop.xlane.xlu1 %712 }
 0x3b0   : > { %v716_v38 = vmul.f32 1.442695, %v714_v36  ;;  %474 = vadd.xlane.f32.xlu1 %v473_v37  ;;  %v715_v46 = vsub.f32 %v707_v18, %v713_v45 }
 0x3b2   : > { %1030 = vpow2.f32 %v716_v38  ;;  %v718_v47 = vmul.f32 1.442695, %v715_v46 }
 0x3b4   : > { %v1027_v39 = vpop.eup %1026  ;;  %1032 = vpow2.f32 %v718_v47 }
 0x3b5   : > { %v595_v40 = vsel %vm329_vm4, %v1027_v39, 0.0 }
 0x3b6   : > { %596 = vadd.xlane.f32.xlu0 %v595_v40 }
 0x3b8   : > { %v1029_v41 = vpop.eup %1028 }
 0x3b9   : > { %v598_v42 = vsel %vm329_vm4, %v1029_v41, 0.0 }
 0x3ba   : > { %599 = vadd.xlane.f32.xlu1 %v598_v42 }
 0x3bc   : > { %v1031_v43 = vpop.eup %1030 }
 0x3bd   : > { %v720_v44 = vsel %vm329_vm4, %v1031_v43, 0.0 }
 0x3be   : > { %721 = vadd.xlane.f32.xlu0 %v720_v44  ;;  %v1033_v49 = vpop.eup %1032 }
 0x3bf   : > { %v723_v51 = vsel %vm329_vm4, %v1033_v49, 0.0 }
 0x3cb   : > { %606 = vrot.lane.b32.xlu1 %v1141_v31, %s1059_s6 }
 0x3d4   : > { %481 = vrot.lane.b32.xlu0 %v1141_v31, %s1057_s27 }
 0x3ef   : > { %724 = vadd.xlane.f32.xlu1 %v723_v51 }
 0x400   : > { %731 = vrot.lane.b32.xlu1 %v1141_v31, %s1058_s28 }
 0x43b   : > { %v472_v53 = vpop.xlane.xlu0 %471 }
 0x43d   : > { %v475_v52 = vpop.xlane.xlu1 %474 }
 0x43e   : > { %1034 = vrcp.f32 %v475_v52 }
 0x43f   : > { %1036 = vrcp.f32 %v472_v53 }
 0x443   : > { %v597_v54 = vpop.xlane.xlu0 %596 }
 0x447   : > { %v600_v55 = vpop.xlane.xlu1 %599 }
 0x448   : > { %1038 = vrcp.f32 %v600_v55  ;;  %v1035_v56 = vpop.eup %1034 }
 0x449   : > { %1040 = vrcp.f32 %v597_v54  ;;  %v1037_v58 = vpop.eup %1036  ;;  %v479_v59 = vmul.f32 %v1035_v56, %v1025_v35 }
 0x44a   : > { %v478_v60 = vmul.f32 %v1037_v58, %v1023_v32 }
 0x44b   : > { %v722_v57 = vpop.xlane.xlu0 %721  ;;  %v607_v31 = vpop.permute.xlu1 %606 }
 0x44c   : > { %v480_v62 = vpack.c.bf16 %v479_v59, %v478_v60  ;;  %1042 = vrcp.f32 %v722_v57 }
 0x44f   : > { %v482_v61 = vpop.permute.xlu0 %481 }
 0x450   : > { %965 = vmatpush3.bf16.msra.mxu0 %v482_v61 }
 0x451   : > { %976 = vmatprep.subr.bf16.mxu0 %v1054_v0 }
 0x452   : > { %v1039_v63 = vpop.eup %1038 }
 0x453   : > { %967 = vmatmul.mubr.msk.bf16.vlgmr.msra.gmra.mrb[4].mxu0 %vm329_vm4, %v480_v62  ;;  %v1041_v1 = vpop.eup %1040  ;;  %v604_v2 = vmul.f32 %v1039_v63, %v1029_v41 }
 0x454   : > { %977 = vmatpush3.bf16.msra.mxu0 %v607_v31  ;;  %978 = vmatprep.mubr.msk.bf16.mxu0 %vm1055_vm0, %v1054_v0  ;;  %v603_v3 = vmul.f32 %v1041_v1, %v1027_v39 }
 0x455   : > { %988 = vmatprep.subr.bf16.mxu0 %v1054_v0 }
 0x456   : > { %v605_v4 = vpack.c.bf16 %v604_v2, %v603_v3  ;;  %v1043_v7 = vpop.eup %1042 }
 0x457   : > { %v728_v9 = vmul.f32 %v1043_v7, %v1031_v43 }
 0x45b   : > { %979 = vmatmul.mubr.msk.bf16.vlgmr.msra.gmra.mrb[8].mxu0 %vm329_vm4, %v605_v4 }
 0x45c   : > { %990 = vmatprep.mubr.msk.bf16.mxu0 %vm1055_vm0, %v1054_v0 }
 0x47c   : > { %v725_v5 = vpop.xlane.xlu1 %724 }
 0x47d   : > { %1044 = vrcp.f32 %v725_v5 }
 0x480   : > { %v732_v6 = vpop.permute.xlu1 %731 }
 0x481   : > { %989 = vmatpush3.bf16.msra.mxu0 %v732_v6 }
 0x487   : > { %v1045_v8 = vpop.eup %1044 }
 0x488   : > { %v729_v11 = vmul.f32 %v1045_v8, %v1033_v49 }
 0x48a   : > { %v730_v12 = vpack.c.bf16 %v729_v11, %v728_v9 }
 0x48c   : > { %991 = vmatmul.mubr.msk.bf16.vlgmr.msra.gmra.mrb[12].mxu0 %vm329_vm4, %v730_v12 }
 0x526   : > { %v521_v13 = vpop.f32.mrb[4].mxu0 }
 0x527   : > { %780 = vrot.lane.b32.xlu1 %v521_v13, %s1060_s7  ;;  %v968_v14 = vpop.f32.mrb[5].mxu0 }
 0x528   : > { %v524_v15 = vpop.f32.mrb[6].mxu0 }
 0x529   : > { %782 = vrot.lane.b32.xlu0 %v524_v15, %s1060_s7  ;;  %v969_v16 = vpop.f32.mrb[7].mxu0 }
 0x52e   : > { %v646_v0 = vpop.f32.mrb[8].mxu0 }
 0x52f   : > { %788 = vrot.lane.b32.xlu1 %v646_v0, %s1061_s8  ;;  %v980_v17 = vpop.f32.mrb[9].mxu0 }
 0x530   : > { %v649_v18 = vpop.f32.mrb[10].mxu0 }
 0x531   : > { %790 = vrot.lane.b32.xlu0 %v649_v18, %s1061_s8  ;;  %v981_v19 = vpop.f32.mrb[11].mxu0 }
 0x55f   : > { %v771_v20 = vpop.f32.mrb[12].mxu0 }
 0x560   : > { %796 = vrot.lane.b32.xlu1 %v771_v20, %s1062_s9  ;;  %v992_v21 = vpop.f32.mrb[13].mxu0 }
 0x561   : > { %v774_v22 = vpop.f32.mrb[14].mxu0 }
 0x562   : > { %798 = vrot.lane.b32.xlu0 %v774_v22, %s1062_s9  ;;  %v993_v23 = vpop.f32.mrb[15].mxu0 }
 0x599   : > { %v781_v24 = vpop.permute.xlu1 %780 }
 0x59a   : > { %v802_v28 = vsel %vm277_vm1, %v1164_v48, %v781_v24 }
 0x59b   : > { %v783_v25 = vpop.permute.xlu0 %782 }
 0x59c   : > { %v803_v32 = vsel %vm277_vm1, %v1166_v50, %v783_v25 }
 0x5a1   : > { %v789_v26 = vpop.permute.xlu1 %788 }
 0x5a2   : > { %v804_v29 = vsel %vm329_vm4, %v802_v28, %v789_v26 }
 0x5a3   : > { %v791_v27 = vpop.permute.xlu0 %790 }
 0x5a4   : > { %v805_v33 = vsel %vm329_vm4, %v803_v32, %v791_v27 }
 0x5d2   : > { %v797_v30 = vpop.permute.xlu1 %796 }
 0x5d3   : > { %v807_v10 = vsel %vm806_vm5, %v804_v29, %v797_v30 }
 0x5d4   : > { %810 = vst.msk [vmem:[%s251_s13] sm:$0xff] %vm809_vm6, %v807_v10  ;;  %v799_v34 = vpop.permute.xlu0 %798 }
 0x5d5   : > { %v808_v35 = vsel %vm806_vm5, %v805_v33, %v799_v34 }
 0x5d6   : > { %811 = vst.msk [vmem:[%s251_s13 + $0x8] sm:$0xff] %vm809_vm6, %v808_v35 }
 0x5d7 PF: > { %s14_s15 = sadd.s32 1, %s1052_s15  }
 0x5d8   : > { %p11_p4 = scmp.ge.s32.totalorder %s14_s15, 4  }
 0x5da   :  { %13 = sbr.rel (!%p11_p4) target bundleno = 1 (0x1), region = 75 }

// kernel: seq2edit_forward.31
= control target key start
LH: loop header
LB: loop body
LE: loop exit
PB: predicated region body
PF: predicated region fallthrough
CT: control target
= control target key end

     0   :  { %vm19_vm0 = vcmask 261120   ;;  %v199_v1 = vmov 0.0   ;;  %vm74_vm1 = vcmask 523264   ;;  %s265_s1 = inlined_call_operand.vmem [shape: bf16[64,32], index: 1, kind: input, shape index: {}]   ;;  %s266_s0 = inlined_call_operand.vmem [shape: bf16[32,64], index: 0, kind: input, shape index: {}]   ;;  %s267_s2 = inlined_call_operand.vmem [shape: f32[1,32], index: 2, kind: input, shape index: {}]   ;;  %s268_s3 = inlined_call_operand.vmem [shape: f32[32,32], index: 3, kind: output, shape index: {}]  }
   0x1   :  { %v193_v0 = vld [vmem:[%s265_s1] sm:$0xff]   ;;  %22 = vst.msk [vmem:[#allocation2 + $0x10] sm:$0xff] %vm19_vm0, %v199_v1  ;;  %20 = vst.msk [vmem:[#allocation2] sm:$0xff] %vm19_vm0, %v199_v1  ;;  %v194_v2 = vld [vmem:[%s265_s1 + $0x8] sm:$0xff]  }
   0x2   :  { %21 = vst.msk [vmem:[#allocation2 + $0x8] sm:$0xff] %vm19_vm0, %v199_v1  ;;  %23 = vst.msk [vmem:[#allocation2 + $0x18] sm:$0xff] %vm19_vm0, %v199_v1  ;;  %180 = vmatprep.subr.bf16.mxu0 %v193_v0  ;;  %v195_v3 = vld [vmem:[%s265_s1 + $0x10] sm:$0xff]   ;;  %v197_v4 = vld [vmem:[%s266_s0] sm:$0xff]  }
   0x3   :  { %181 = vmatpush3.bf16.msra.mxu0 %v193_v0  ;;  %188 = vmatprep.mubr.msk.bf16.mxu0 %vm74_vm1, %v197_v4  ;;  %v196_v5 = vld [vmem:[%s265_s1 + $0x18] sm:$0xff]   ;;  %v198_v6 = vld [vmem:[%s266_s0 + $0x8] sm:$0xff]   ;;  %v173_v19 = vld [vmem:[%s267_s2] ss:$0 sm:$0xff] }
   0x4   :  { %182 = vmatprep.subr.bf16.mxu0 %v194_v2 }
   0x7   :  { %183 = vmatpush3.bf16.msra.mxu0 %v194_v2 }
   0x8   :  { %184 = vmatprep.subr.bf16.mxu0 %v195_v3  ;;  %v26_v7 = vld [vmem:[#allocation2 + $0x10] sm:$0xff]  ;;  %v24_v8 = vld [vmem:[#allocation2] sm:$0xff] }
   0x9   :  { %v27_v10 = vld [vmem:[#allocation2 + $0x18] sm:$0xff]  ;;  %v25_v13 = vld [vmem:[#allocation2 + $0x8] sm:$0xff] }
   0xb   :  { %185 = vmatpush3.bf16.msra.mxu0 %v195_v3 }
   0xc   :  { %186 = vmatprep.subr.bf16.mxu0 %v196_v5 }
   0xf   :  { %187 = vmatpush3.bf16.msra.mxu0 %v196_v5 }
  0x12   :  { %189 = vmatmul.mubr.msk.bf16.vlgmr.msra.gmra.mrb[0].mxu0 %vm74_vm1, %v198_v6 }
  0xe5   :  { %v190_v9 = vpop.f32.mrb[0].mxu0 }
  0xe6   :  { %v132_v11 = vadd.f32 %v190_v9, %v26_v7  ;;  %v115_v12 = vpop.f32.mrb[1].mxu0 }
  0xe7   :  { %v130_v14 = vadd.f32 %v115_v12, %v24_v8  ;;  %v191_v15 = vpop.f32.mrb[2].mxu0 }
  0xe8   :  { %137 = vst.msk [vmem:[#allocation2 + $0x10] sm:$0xff] %vm19_vm0, %v132_v11  ;;  %v133_v16 = vadd.f32 %v191_v15, %v27_v10  ;;  %v118_v17 = vpop.f32.mrb[3].mxu0 }
  0xe9   :  { %135 = vst.msk [vmem:[#allocation2] sm:$0xff] %vm19_vm0, %v130_v14  ;;  %v131_v18 = vadd.f32 %v118_v17, %v25_v13 }
  0xea   :  { %138 = vst.msk [vmem:[#allocation2 + $0x18] sm:$0xff] %vm19_vm0, %v133_v16 }
  0xeb   :  { %136 = vst.msk [vmem:[#allocation2 + $0x8] sm:$0xff] %vm19_vm0, %v131_v18 }
  0xef   :  { %v144_v20 = vld [vmem:[#allocation2 + $0x10] sm:$0xff] }
  0xf0   :  { %v155_v21 = vadd.f32 %v173_v19, %v144_v20  ;;  %v142_v22 = vld [vmem:[#allocation2] sm:$0xff] }
  0xf1   :  { %v153_v23 = vadd.f32 %v173_v19, %v142_v22  ;;  %v145_v24 = vld [vmem:[#allocation2 + $0x18] sm:$0xff] }
  0xf2   :  { %159 = vst.msk [vmem:[%s268_s3 + $0x10] sm:$0xff] %vm19_vm0, %v155_v21  ;;  %v156_v25 = vadd.f32 %v173_v19, %v145_v24  ;;  %v143_v26 = vld [vmem:[#allocation2 + $0x8] sm:$0xff] }
  0xf3   :  { %157 = vst.msk [vmem:[%s268_s3] sm:$0xff] %vm19_vm0, %v153_v23  ;;  %v154_v27 = vadd.f32 %v173_v19, %v143_v26 }
  0xf4   :  { %160 = vst.msk [vmem:[%s268_s3 + $0x18] sm:$0xff] %vm19_vm0, %v156_v25 }
  0xf5   :  { %158 = vst.msk [vmem:[%s268_s3 + $0x8] sm:$0xff] %vm19_vm0, %v154_v27 }

// kernel: seq2edit_forward.42
= control target key start
LH: loop header
LB: loop body
LE: loop exit
PB: predicated region body
PF: predicated region fallthrough
CT: control target
= control target key end

     0   :  { %vm19_vm0 = vcmask 785408   ;;  %v138_v0 = vmov 0.0   ;;  %vm139_vm1 = vmmov 0   ;;  %vm47_vm2 = vcmask 261120   ;;  %s184_s1 = inlined_call_operand.vmem [shape: bf16[32,96], index: 1, kind: input, shape index: {}]   ;;  %s185_s0 = inlined_call_operand.vmem [shape: bf16[16,32], index: 0, kind: input, shape index: {}]   ;;  %s186_s2 = inlined_call_operand.vmem [shape: f32[1,96], index: 2, kind: input, shape index: {}]   ;;  %s187_s3 = inlined_call_operand.vmem [shape: f32[16,96], index: 3, kind: output, shape index: {}]  }
   0x1   :  { %125 = vmatprep.subr.bf16.mxu0 %v138_v0  ;;  %v135_v1 = vld [vmem:[%s184_s1] sm:$0xff]   ;;  %129 = vmatprep.mubr.msk.bf16.mxu0 %vm139_vm1, %v138_v0  ;;  %20 = vst.msk [vmem:[#allocation2] sm:$0xff] %vm19_vm0, %v138_v0  ;;  %21 = vst.msk [vmem:[#allocation2 + $0x8] sm:$0xff] %vm19_vm0, %v138_v0  ;;  %v136_v2 = vld [vmem:[%s184_s1 + $0x8] sm:$0xff]  }
   0x2   :  { %126 = vmatpush3.bf16.msra.mxu0 %v135_v1  ;;  %v137_v3 = vld [vmem:[%s185_s0] sm:$0xff]  }
   0x3   :  { %127 = vmatprep.subr.bf16.mxu0 %v138_v0  ;;  %v121_v12 = vld [vmem:[%s186_s2] ss:$0 sm:$0xff] }
   0x6   :  { %128 = vmatpush3.bf16.msra.mxu0 %v136_v2 }
   0x8   :  { %v22_v4 = vld [vmem:[#allocation2] sm:$0xff]  ;;  %v23_v6 = vld [vmem:[#allocation2 + $0x8] sm:$0xff] }
   0x9   :  { %130 = vmatmul.mubr.msk.bf16.vlgmr.msra.gmra.mrb[0].mxu0 %vm47_vm2, %v137_v3 }
  0xdc   :  { %v85_v5 = vpop.f32.mrb[0].mxu0 }
  0xdd   :  { %v92_v7 = vadd.f32 %v85_v5, %v22_v4  ;;  %v131_v8 = vpop.f32.mrb[1].mxu0 }
  0xde   :  { %v88_v9 = vpop.f32.mrb[2].mxu0 }
  0xdf   :  { %95 = vst.msk [vmem:[#allocation2] sm:$0xff] %vm19_vm0, %v92_v7  ;;  %v93_v10 = vadd.f32 %v88_v9, %v23_v6  ;;  %v132_v11 = vpop.f32.mrb[3].mxu0 }
  0xe1   :  { %96 = vst.msk [vmem:[#allocation2 + $0x8] sm:$0xff] %vm19_vm0, %v93_v10 }
  0xe6   :  { %v100_v13 = vld [vmem:[#allocation2] sm:$0xff] }
  0xe7   :  { %v109_v14 = vadd.f32 %v121_v12, %v100_v13 }
  0xe8   :  { %v101_v15 = vld [vmem:[#allocation2 + $0x8] sm:$0xff] }
  0xe9   :  { %111 = vst.msk [vmem:[%s187_s3] sm:$0xff] %vm19_vm0, %v109_v14  ;;  %v110_v16 = vadd.f32 %v121_v12, %v101_v15 }
  0xeb   :  { %112 = vst.msk [vmem:[%s187_s3 + $0x8] sm:$0xff] %vm19_vm0, %v110_v16 }

// kernel: seq2edit_forward.44
= control target key start
LH: loop header
LB: loop body
LE: loop exit
PB: predicated region body
PF: predicated region fallthrough
CT: control target
= control target key end

     0   :  { %vm19_vm0 = vcmask 261120   ;;  %v137_v0 = vmov 0.0   ;;  %vm138_vm1 = vmmov 0   ;;  %s184_s1 = inlined_call_operand.vmem [shape: bf16[32,32], index: 1, kind: input, shape index: {}]   ;;  %s185_s0 = inlined_call_operand.vmem [shape: bf16[16,32], index: 0, kind: input, shape index: {}]   ;;  %s186_s2 = inlined_call_operand.vmem [shape: f32[1,32], index: 2, kind: input, shape index: {}]   ;;  %s187_s3 = inlined_call_operand.vmem [shape: f32[16,32], index: 3, kind: output, shape index: {}]  }
   0x1   :  { %124 = vmatprep.subr.bf16.mxu0 %v137_v0  ;;  %v134_v1 = vld [vmem:[%s184_s1] sm:$0xff]   ;;  %128 = vmatprep.mubr.msk.bf16.mxu0 %vm138_vm1, %v137_v0  ;;  %20 = vst.msk [vmem:[#allocation2] sm:$0xff] %vm19_vm0, %v137_v0  ;;  %21 = vst.msk [vmem:[#allocation2 + $0x8] sm:$0xff] %vm19_vm0, %v137_v0  ;;  %v135_v2 = vld [vmem:[%s184_s1 + $0x8] sm:$0xff]  }
   0x2   :  { %125 = vmatpush3.bf16.msra.mxu0 %v134_v1  ;;  %v136_v3 = vld [vmem:[%s185_s0] sm:$0xff]  }
   0x3   :  { %126 = vmatprep.subr.bf16.mxu0 %v137_v0  ;;  %v120_v12 = vld [vmem:[%s186_s2] ss:$0 sm:$0xff] }
   0x6   :  { %127 = vmatpush3.bf16.msra.mxu0 %v135_v2 }
   0x8   :  { %v22_v4 = vld [vmem:[#allocation2] sm:$0xff]  ;;  %v23_v6 = vld [vmem:[#allocation2 + $0x8] sm:$0xff] }
   0x9   :  { %129 = vmatmul.mubr.msk.bf16.vlgmr.msra.gmra.mrb[0].mxu0 %vm19_vm0, %v136_v3 }
  0xdc   :  { %v85_v5 = vpop.f32.mrb[0].mxu0 }
  0xdd   :  { %v92_v7 = vadd.f32 %v85_v5, %v22_v4  ;;  %v130_v8 = vpop.f32.mrb[1].mxu0 }
  0xde   :  { %v88_v9 = vpop.f32.mrb[2].mxu0 }
  0xdf   :  { %94 = vst.msk [vmem:[#allocation2] sm:$0xff] %vm19_vm0, %v92_v7  ;;  %v93_v10 = vadd.f32 %v88_v9, %v23_v6  ;;  %v131_v11 = vpop.f32.mrb[3].mxu0 }
  0xe1   :  { %95 = vst.msk [vmem:[#allocation2 + $0x8] sm:$0xff] %vm19_vm0, %v93_v10 }
  0xe6   :  { %v99_v13 = vld [vmem:[#allocation2] sm:$0xff] }
  0xe7   :  { %v108_v14 = vadd.f32 %v120_v12, %v99_v13 }
  0xe8   :  { %v100_v15 = vld [vmem:[#allocation2 + $0x8] sm:$0xff] }
  0xe9   :  { %110 = vst.msk [vmem:[%s187_s3] sm:$0xff] %vm19_vm0, %v108_v14  ;;  %v109_v16 = vadd.f32 %v120_v12, %v100_v15 }
  0xeb   :  { %111 = vst.msk [vmem:[%s187_s3 + $0x8] sm:$0xff] %vm19_vm0, %v109_v16 }

// kernel: seq2edit_forward.43
= control target key start
LH: loop header
LB: loop body
LE: loop exit
PB: predicated region body
PF: predicated region fallthrough
CT: control target
= control target key end

     0   :  { %s981_s15 = smov 0   ;;  %s1095_s0 = inlined_call_operand.vmem [shape: bf16[2,8,32], index: 0, kind: input, shape index: {}]   ;;  %s1096_s1 = inlined_call_operand.vmem [shape: bf16[2,8,32], index: 1, kind: input, shape index: {}]   ;;  %s1097_s2 = inlined_call_operand.vmem [shape: bf16[2,8,32], index: 2, kind: input, shape index: {}]   ;;  %s1098_s3 = inlined_call_operand.vmem [shape: f32[2,1,8], index: 3, kind: input, shape index: {}]   ;;  %s1099_s4 = inlined_call_operand.vmem [shape: f32[2,8,32], index: 4, kind: output, shape index: {}]  }
   0x1 LB: > { %s817_s16 = sadd.s32 4294967295, %s945_s15   ;;  %p821_p0 = scmp.ge.s32.totalorder %s945_s15, 1  ;;  %s945_s15 = sphi %s981_s15, %s14_s15  }
   0x2   : > { %p187_p1 = scmp.lt.s32.totalorder %s945_s15, 3 }
   0x4   : > { %p188_p2 = pnand %p821_p0, %p187_p1 }
   0x5   : > { %p222_p3 = scmp.lt.s32.totalorder (!%p188_p2), %s817_s16, 1  ;;  %v947_v0 = vmov (!%p188_p2), 0.0   ;;  %vm948_vm0 = vmmov (!%p188_p2), 0   ;;  %vm259_vm1 = vcmask (!%p188_p2), 64512   ;;  %v247_v4 = vlaneseq (!%p188_p2)  ;;  %s950_s27 = smov (!%p188_p2), 120  }
   0x6   : > { %191 = sbr.rel (%p188_p2) target bundleno = 1477 (0x5c5), region = 36  ;;  %855 = vmatprep.subr.bf16.mxu0 (!%p188_p2), %v947_v0  ;;  %857 = vmatprep.mubr.msk.bf16.mxu0 (!%p188_p2), %vm948_vm0, %v947_v0  ;;  %v949_v8 = vmov (!%p188_p2), 0   ;;  %s951_s28 = smov (!%p188_p2), 112   ;;  %vm323_vm6 = vcmask (!%p188_p2), 1043456   ;;  %vm725_vm7 = vcmask (!%p188_p2), 130048   ;;  %vm727_vm8 = vcmask (!%p188_p2), 195584  }
   0x7   : > { %861 = vmatprep.subr.bf16.mxu1 (!%p188_p2), %v947_v0  ;;  %863 = vmatprep.mubr.msk.bf16.mxu1 (!%p188_p2), %vm948_vm0, %v947_v0  ;;  %v248_v6 = vshrl.u32 (!%p188_p2), %v247_v4, 7  ;;  %v250_v10 = vand.u32 (!%p188_p2), 127, %v247_v4  ;;  %s952_s29 = smov (!%p188_p2), 104   ;;  %s953_s7 = smov (!%p188_p2), 8   ;;  %vm729_vm9 = vcmask (!%p188_p2), 261120  }
   0x8   : > { %s954_s8 = smov (!%p188_p2), 16   ;;  %s955_s9 = smov (!%p188_p2), 24  }
   0x9   : > { %v255_v7 = vsub.s32 (!%p188_p2), 0, %v248_v6  ;;  %vm251_vm3 = vcmp.le.s32.totalorder (!%p188_p2), %v250_v10, %v248_v6 }
   0xd   : > { %s1103_s16 = smov (!%p222_p3, %s817_s16), 1 }
   0xe   : > { %s998_s17 = sshll.u32 %s1103_s16, 2  ;;  %s236_s26 = scalar_lea.vmem %s1098_s3, %s1103_s16 }
   0xf   : > { %s229_s20 = scalar_lea.vmem %s1096_s1, %s998_s17  ;;  %s225_s23 = scalar_lea.vmem %s1095_s0, %s998_s17  ;;  %v245_v5 = vld [vmem:[%s236_s26] sm:$0x1] }
  0x10   : > { %v243_v1 = vld [vmem:[%s229_s20] sm:$0xf]  ;;  %vm246_vm2 = vcmp.gt.f32.partialorder %v245_v5, 0.5  ;;  %s233_s6 = scalar_lea.vmem %s1097_s2, %s998_s17  ;;  %s825_s10 = sshll.u32 %s1103_s16, 3 }
  0x11   : > { %v264_v2 = vsel %vm259_vm1, %v243_v1, 0  ;;  %v242_v3 = vld [vmem:[%s225_s23] sm:$0xf]  ;;  %v252_v9 = vsel %vm246_vm2, 1, %v949_v8  ;;  %v829_v20 = vcombine.low %v243_v1, %v243_v1  ;;  %s240_s13 = scalar_lea.vmem %s1099_s4, %s825_s10 }
  0x12   : > { %856 = vmatpush3.bf16.xpose.msra.mxu0 %v264_v2  ;;  %v256_v11 = vrot.slane %v252_v9, %v255_v7  ;;  %v828_v21 = vcombine.low %v242_v3, %v242_v3  ;;  %v1034_v27 = vld [vmem:[%s233_s6] sm:$0xf] }
  0x13   : > { %873 = vmatprep.subr.bf16.mxu0 %v947_v0  ;;  %375 = vrot.lane.b32.xlu1 %v829_v20, %s950_s27  ;;  %v325_v28 = vsel %vm323_vm6, %v1034_v27, 0 }
  0x14   : > { %vm257_vm4 = vcmp.eq.s32.totalorder %v256_v11, 1  ;;  %862 = vmatpush3.bf16.msra.mxu1 %v325_v28 }
  0x15   : > { %vm1017_vm5 = vmand %vm257_vm4, %vm251_vm3  ;;  %867 = vmatprep.subr.bf16.mxu1 %v947_v0 }
  0x17   : > { %370 = vrot.lane.b32.xlu1 %v828_v21, %s950_s27 }
  0x19   : > { %858 = vmatmul.mubr.msk.bf16.vlgmr.msra.gmra.mrb[0].mxu0 %vm259_vm1, %v242_v3 }
  0x1a   : > { %875 = vmatprep.mubr.msk.bf16.mxu0 %vm948_vm0, %v947_v0 }
  0x1b   : > { %488 = vrot.lane.b32.xlu1 %v828_v21, %s951_s28 }
  0x1f   : > { %602 = vrot.lane.b32.xlu1 %v829_v20, %s952_s29 }
  0x23   : > { %600 = vrot.lane.b32.xlu1 %v828_v21, %s952_s29 }
  0x85   : > { %v376_v31 = vpop.permute.xlu1 %375 }
  0x86   : > { %v381_v33 = vsel %vm259_vm1, %v376_v31, 0 }
  0x89   : > { %v371_v35 = vpop.permute.xlu1 %370 }
  0x8d   : > { %v489_v37 = vpop.permute.xlu1 %488 }
  0x91   : > { %v603_v39 = vpop.permute.xlu1 %602 }
  0x92   : > { %v608_v40 = vsel %vm259_vm1, %v603_v39, 0 }
  0x95   : > { %v601_v41 = vpop.permute.xlu1 %600 }
  0xec   : > { %v300_v12 = vpop.f32.mrb[0].mxu0 }
  0xed   : > { %v306_v14 = vmul.f32 0.35355338, %v300_v12  ;;  %v859_v15 = vpop.f32.mrb[1].mxu0 }
  0xee   : > { %v303_v16 = vpop.f32.mrb[2].mxu0 }
  0xef   : > { %v860_v17 = vpop.f32.mrb[3].mxu0  ;;  %v307_v18 = vsel %vm1017_vm5, %v306_v14, -1e+30  ;;  %v831_v14 = vcombine.low %v1034_v27, %v1034_v27 }
  0xf0   : > { %v308_v19 = vsel %vm259_vm1, %v307_v18, -inf }
  0xf1   : > { %309 = vmax.xlane.f32.xlu0 %v308_v19 }
 0x17e   : > { %v310_v22 = vpop.xlane.xlu0 %309 }
 0x17f   : > { %v311_v23 = vsub.f32 %v307_v18, %v310_v22 }
 0x181   : > { %v312_v24 = vmul.f32 1.442695, %v311_v23 }
 0x183   : > { %923 = vpow2.f32 %v312_v24 }
 0x18d   : > { %v924_v25 = vpop.eup %923 }
 0x18e   : > { %v314_v26 = vsel %vm259_vm1, %v924_v25, 0.0 }
 0x18f   : > { %315 = vadd.xlane.f32.xlu0 %v314_v26 }
 0x1a5   : > { %490 = vrot.lane.b32.xlu0 %v829_v20, %s951_s28 }
 0x21c   : > { %v316_v29 = vpop.xlane.xlu0 %315 }
 0x21d   : > { %925 = vrcp.f32 %v316_v29 }
 0x220   : > { %v491_v36 = vpop.permute.xlu0 %490 }
 0x221   : > { %v496_v38 = vsel %vm259_vm1, %v491_v36, 0 }
 0x227   : > { %v926_v30 = vpop.eup %925 }
 0x228   : > { %v318_v32 = vmul.f32 %v926_v30, %v924_v25 }
 0x22a   : > { %v319_v34 = vpack.c.bf16 %v318_v32, %v318_v32 }
 0x22c   : > { %864 = vmatmul.mubr.msk.bf16.vlgmr.msra.gmra.mrb[0].mxu1 %vm259_vm1, %v319_v34 }
 0x22d   : > { %868 = vmatpush3.bf16.xpose.msra.mxu1 %v381_v33  ;;  %869 = vmatprep.mubr.msk.bf16.mxu1 %vm948_vm0, %v947_v0 }
 0x22e   : > { %879 = vmatprep.subr.bf16.mxu1 %v947_v0 }
 0x234   : > { %870 = vmatmul.mubr.msk.bf16.vlgmr.msra.gmra.mrb[4].mxu1 %vm259_vm1, %v371_v35 }
 0x235   : > { %880 = vmatpush3.bf16.xpose.msra.mxu1 %v496_v38  ;;  %881 = vmatprep.mubr.msk.bf16.mxu1 %vm948_vm0, %v947_v0 }
 0x236   : > { %891 = vmatprep.subr.bf16.mxu1 %v947_v0 }
 0x23c   : > { %882 = vmatmul.mubr.msk.bf16.vlgmr.msra.gmra.mrb[8].mxu1 %vm259_vm1, %v489_v37 }
 0x23d   : > { %892 = vmatpush3.bf16.xpose.msra.mxu1 %v608_v40  ;;  %893 = vmatprep.mubr.msk.bf16.mxu1 %vm948_vm0, %v947_v0 }
 0x244   : > { %894 = vmatmul.mubr.msk.bf16.vlgmr.msra.gmra.mrb[12].mxu1 %vm259_vm1, %v601_v41 }
 0x2ff   : > { %v1055_v42 = vpop.f32.mrb[0].mxu1 }
 0x300   : > { %v865_v43 = vpop.f32.mrb[1].mxu1 }
 0x301   : > { %v364_v44 = vpop.f32.mrb[2].mxu1 }
 0x302   : > { %v866_v45 = vpop.f32.mrb[3].mxu1 }
 0x307   : > { %v417_v46 = vpop.f32.mrb[4].mxu1 }
 0x308   : > { %v423_v47 = vmul.f32 0.35355338, %v417_v46  ;;  %v871_v48 = vpop.f32.mrb[5].mxu1 }
 0x309   : > { %v420_v49 = vpop.f32.mrb[6].mxu1 }
 0x30a   : > { %v872_v50 = vpop.f32.mrb[7].mxu1  ;;  %v424_v51 = vsel %vm1017_vm5, %v423_v47, -1e+30 }
 0x30b   : > { %v425_v52 = vsel %vm259_vm1, %v424_v51, -inf }
 0x30c   : > { %426 = vmax.xlane.f32.xlu1 %v425_v52 }
 0x30f   : > { %v532_v53 = vpop.f32.mrb[8].mxu1 }
 0x310   : > { %v538_v54 = vmul.f32 0.35355338, %v532_v53  ;;  %v883_v55 = vpop.f32.mrb[9].mxu1 }
 0x311   : > { %v535_v56 = vpop.f32.mrb[10].mxu1 }
 0x312   : > { %v539_v57 = vsel %vm1017_vm5, %v538_v54, -1e+30  ;;  %v884_v58 = vpop.f32.mrb[11].mxu1 }
 0x313   : > { %v540_v59 = vsel %vm259_vm1, %v539_v57, -inf }
 0x314   : > { %541 = vmax.xlane.f32.xlu0 %v540_v59 }
 0x317   : > { %v644_v60 = vpop.f32.mrb[12].mxu1 }
 0x318   : > { %v650_v61 = vmul.f32 0.35355338, %v644_v60  ;;  %v895_v62 = vpop.f32.mrb[13].mxu1 }
 0x319   : > { %v647_v63 = vpop.f32.mrb[14].mxu1 }
 0x31a   : > { %v651_v1 = vsel %vm1017_vm5, %v650_v61, -1e+30  ;;  %v896_v2 = vpop.f32.mrb[15].mxu1 }
 0x31b   : > { %v652_v3 = vsel %vm259_vm1, %v651_v1, -inf }
 0x31c   : > { %653 = vmax.xlane.f32.xlu1 %v652_v3 }
 0x399   : > { %v427_v4 = vpop.xlane.xlu1 %426 }
 0x39a   : > { %v428_v5 = vsub.f32 %v424_v51, %v427_v4 }
 0x39c   : > { %v429_v6 = vmul.f32 1.442695, %v428_v5 }
 0x39e   : > { %927 = vpow2.f32 %v429_v6 }
 0x3a1   : > { %v542_v7 = vpop.xlane.xlu0 %541 }
 0x3a2   : > { %v543_v8 = vsub.f32 %v539_v57, %v542_v7 }
 0x3a4   : > { %v544_v9 = vmul.f32 1.442695, %v543_v8 }
 0x3a6   : > { %929 = vpow2.f32 %v544_v9 }
 0x3a8   : > { %v928_v10 = vpop.eup %927 }
 0x3a9   : > { %v431_v11 = vsel %vm259_vm1, %v928_v10, 0.0  ;;  %v654_v15 = vpop.xlane.xlu1 %653 }
 0x3aa   : > { %432 = vadd.xlane.f32.xlu1 %v431_v11  ;;  %v655_v16 = vsub.f32 %v651_v1, %v654_v15 }
 0x3ac   : > { %v656_v17 = vmul.f32 1.442695, %v655_v16 }
 0x3ae   : > { %931 = vpow2.f32 %v656_v17 }
 0x3b0   : > { %v930_v12 = vpop.eup %929 }
 0x3b1   : > { %v546_v13 = vsel %vm259_vm1, %v930_v12, 0.0 }
 0x3b2   : > { %547 = vadd.xlane.f32.xlu0 %v546_v13 }
 0x3b8   : > { %v932_v18 = vpop.eup %931 }
 0x3b9   : > { %v658_v19 = vsel %vm259_vm1, %v932_v18, 0.0 }
 0x3bb   : > { %552 = vrot.lane.b32.xlu1 %v831_v14, %s951_s28 }
 0x3c8   : > { %440 = vrot.lane.b32.xlu0 %v831_v14, %s950_s27 }
 0x3df   : > { %659 = vadd.xlane.f32.xlu1 %v658_v19 }
 0x3f0   : > { %664 = vrot.lane.b32.xlu1 %v831_v14, %s952_s29 }
 0x437   : > { %v433_v20 = vpop.xlane.xlu1 %432 }
 0x438   : > { %933 = vrcp.f32 %v433_v20 }
 0x43b   : > { %v553_v26 = vpop.permute.xlu1 %552 }
 0x43c   : > { %v558_v28 = vsel %vm323_vm6, %v553_v26, 0 }
 0x43f   : > { %v548_v21 = vpop.xlane.xlu0 %547 }
 0x440   : > { %935 = vrcp.f32 %v548_v21 }
 0x442   : > { %v934_v22 = vpop.eup %933 }
 0x443   : > { %v435_v23 = vmul.f32 %v934_v22, %v928_v10  ;;  %v441_v24 = vpop.permute.xlu0 %440 }
 0x444   : > { %v446_v25 = vsel %vm323_vm6, %v441_v24, 0 }
 0x445   : > { %874 = vmatpush3.bf16.msra.mxu0 %v446_v25  ;;  %v436_v27 = vpack.c.bf16 %v435_v23, %v435_v23 }
 0x446   : > { %885 = vmatprep.subr.bf16.mxu0 %v947_v0 }
 0x448   : > { %876 = vmatmul.mubr.msk.bf16.vlgmr.msra.gmra.mrb[4].mxu0 %vm259_vm1, %v436_v27 }
 0x449   : > { %886 = vmatpush3.bf16.msra.mxu0 %v558_v28  ;;  %887 = vmatprep.mubr.msk.bf16.mxu0 %vm948_vm0, %v947_v0 }
 0x44a   : > { %v936_v29 = vpop.eup %935  ;;  %897 = vmatprep.subr.bf16.mxu0 %v947_v0 }
 0x44b   : > { %v550_v30 = vmul.f32 %v936_v29, %v930_v12 }
 0x44d   : > { %v551_v31 = vpack.c.bf16 %v550_v30, %v550_v30 }
 0x450   : > { %888 = vmatmul.mubr.msk.bf16.vlgmr.msra.gmra.mrb[8].mxu0 %vm259_vm1, %v551_v31 }
 0x451   : > { %899 = vmatprep.mubr.msk.bf16.mxu0 %vm948_vm0, %v947_v0 }
 0x46c   : > { %v660_v32 = vpop.xlane.xlu1 %659 }
 0x46d   : > { %937 = vrcp.f32 %v660_v32 }
 0x470   : > { %v665_v33 = vpop.permute.xlu1 %664 }
 0x471   : > { %v670_v34 = vsel %vm323_vm6, %v665_v33, 0 }
 0x472   : > { %898 = vmatpush3.bf16.msra.mxu0 %v670_v34 }
 0x477   : > { %v938_v35 = vpop.eup %937 }
 0x478   : > { %v662_v36 = vmul.f32 %v938_v35, %v932_v18 }
 0x47a   : > { %v663_v37 = vpack.c.bf16 %v662_v36, %v662_v36 }
 0x47c   : > { %900 = vmatmul.mubr.msk.bf16.vlgmr.msra.gmra.mrb[12].mxu0 %vm259_vm1, %v663_v37 }
 0x51b   : > { %v482_v38 = vpop.f32.mrb[4].mxu0 }
 0x51c   : > { %713 = vrot.lane.b32.xlu0 %v482_v38, %s953_s7  ;;  %v877_v39 = vpop.f32.mrb[5].mxu0 }
 0x51d   : > { %v485_v40 = vpop.f32.mrb[6].mxu0 }
 0x51e   : > { %v878_v41 = vpop.f32.mrb[7].mxu0 }
 0x523   : > { %v594_v43 = vpop.f32.mrb[8].mxu0 }
 0x524   : > { %717 = vrot.lane.b32.xlu1 %v594_v43, %s954_s8  ;;  %v889_v0 = vpop.f32.mrb[9].mxu0 }
 0x525   : > { %v597_v44 = vpop.f32.mrb[10].mxu0 }
 0x526   : > { %v890_v45 = vpop.f32.mrb[11].mxu0 }
 0x54f   : > { %v706_v46 = vpop.f32.mrb[12].mxu0 }
 0x550   : > { %721 = vrot.lane.b32.xlu0 %v706_v46, %s955_s9  ;;  %v901_v47 = vpop.f32.mrb[13].mxu0 }
 0x551   : > { %v709_v48 = vpop.f32.mrb[14].mxu0 }
 0x552   : > { %v902_v49 = vpop.f32.mrb[15].mxu0 }
 0x58e   : > { %v714_v50 = vpop.permute.xlu0 %713 }
 0x58f   : > { %v724_v52 = vsel %vm259_vm1, %v1055_v42, %v714_v50 }
 0x596   : > { %v718_v51 = vpop.permute.xlu1 %717 }
 0x597   : > { %v726_v53 = vsel %vm725_vm7, %v724_v52, %v718_v51 }
 0x5c2   : > { %v722_v54 = vpop.permute.xlu0 %721 }
 0x5c3   : > { %v728_v55 = vsel %vm727_vm8, %v726_v53, %v722_v54 }
 0x5c4   : > { %730 = vst.msk [vmem:[%s240_s13] sm:$0xff] %vm729_vm9, %v728_v55 }
 0x5c5 PF: > { %s14_s15 = sadd.s32 1, %s945_s15  }
 0x5c6   : > { %p11_p4 = scmp.ge.s32.totalorder %s14_s15, 4  }
 0x5c8   :  { %13 = sbr.rel (!%p11_p4) target bundleno = 1 (0x1), region = 75 }

// kernel: seq2edit_forward.46
= control target key start
LH: loop header
LB: loop body
LE: loop exit
PB: predicated region body
PF: predicated region fallthrough
CT: control target
= control target key end

     0   :  { %vm19_vm0 = vcmask 523264   ;;  %v173_v1 = vmov 0.0   ;;  %vm58_vm1 = vcmask 261120   ;;  %s233_s1 = inlined_call_operand.vmem [shape: bf16[32,64], index: 1, kind: input, shape index: {}]   ;;  %s234_s0 = inlined_call_operand.vmem [shape: bf16[32,32], index: 0, kind: input, shape index: {}]   ;;  %s235_s2 = inlined_call_operand.vmem [shape: f32[1,64], index: 2, kind: input, shape index: {}]   ;;  %s236_s3 = inlined_call_operand.vmem [shape: f32[32,64], index: 3, kind: output, shape index: {}]  }
   0x1   :  { %v169_v0 = vld [vmem:[%s233_s1] sm:$0xff]   ;;  %22 = vst.msk [vmem:[#allocation2 + $0x10] sm:$0xff] %vm19_vm0, %v173_v1  ;;  %20 = vst.msk [vmem:[#allocation2] sm:$0xff] %vm19_vm0, %v173_v1  ;;  %v170_v2 = vld [vmem:[%s233_s1 + $0x8] sm:$0xff]  }
   0x2   :  { %21 = vst.msk [vmem:[#allocation2 + $0x8] sm:$0xff] %vm19_vm0, %v173_v1  ;;  %23 = vst.msk [vmem:[#allocation2 + $0x18] sm:$0xff] %vm19_vm0, %v173_v1  ;;  %160 = vmatprep.subr.bf16.mxu0 %v169_v0  ;;  %v171_v3 = vld [vmem:[%s234_s0] sm:$0xff]   ;;  %v172_v4 = vld [vmem:[%s234_s0 + $0x8] sm:$0xff]  }
   0x3   :  { %161 = vmatpush3.bf16.msra.mxu0 %v169_v0  ;;  %164 = vmatprep.mubr.msk.bf16.mxu0 %vm58_vm1, %v171_v3  ;;  %v155_v17 = vld [vmem:[%s235_s2] ss:$0 sm:$0xff] }
   0x4   :  { %162 = vmatprep.subr.bf16.mxu0 %v170_v2 }
   0x7   :  { %163 = vmatpush3.bf16.msra.mxu0 %v170_v2 }
   0x8   :  { %v26_v5 = vld [vmem:[#allocation2 + $0x10] sm:$0xff]  ;;  %v24_v6 = vld [vmem:[#allocation2] sm:$0xff] }
   0x9   :  { %v27_v8 = vld [vmem:[#allocation2 + $0x18] sm:$0xff]  ;;  %v25_v11 = vld [vmem:[#allocation2 + $0x8] sm:$0xff] }
   0xa   :  { %165 = vmatmul.mubr.msk.bf16.vlgmr.msra.gmra.mrb[0].mxu0 %vm58_vm1, %v172_v4 }
  0xdd   :  { %v166_v7 = vpop.f32.mrb[0].mxu0 }
  0xde   :  { %v116_v9 = vadd.f32 %v166_v7, %v26_v5  ;;  %v99_v10 = vpop.f32.mrb[1].mxu0 }
  0xdf   :  { %v114_v12 = vadd.f32 %v99_v10, %v24_v6  ;;  %v167_v13 = vpop.f32.mrb[2].mxu0 }
  0xe0   :  { %121 = vst.msk [vmem:[#allocation2 + $0x10] sm:$0xff] %vm19_vm0, %v116_v9  ;;  %v117_v14 = vadd.f32 %v167_v13, %v27_v8  ;;  %v102_v15 = vpop.f32.mrb[3].mxu0 }
  0xe1   :  { %119 = vst.msk [vmem:[#allocation2] sm:$0xff] %vm19_vm0, %v114_v12  ;;  %v115_v16 = vadd.f32 %v102_v15, %v25_v11 }
  0xe2   :  { %122 = vst.msk [vmem:[#allocation2 + $0x18] sm:$0xff] %vm19_vm0, %v117_v14 }
  0xe3   :  { %120 = vst.msk [vmem:[#allocation2 + $0x8] sm:$0xff] %vm19_vm0, %v115_v16 }
  0xe7   :  { %v128_v18 = vld [vmem:[#allocation2 + $0x10] sm:$0xff] }
  0xe8   :  { %v139_v19 = vadd.f32 %v155_v17, %v128_v18  ;;  %v126_v20 = vld [vmem:[#allocation2] sm:$0xff] }
  0xe9   :  { %v137_v21 = vadd.f32 %v155_v17, %v126_v20  ;;  %v129_v22 = vld [vmem:[#allocation2 + $0x18] sm:$0xff] }
  0xea   :  { %143 = vst.msk [vmem:[%s236_s3 + $0x10] sm:$0xff] %vm19_vm0, %v139_v19  ;;  %v140_v23 = vadd.f32 %v155_v17, %v129_v22  ;;  %v127_v24 = vld [vmem:[#allocation2 + $0x8] sm:$0xff] }
  0xeb   :  { %141 = vst.msk [vmem:[%s236_s3] sm:$0xff] %vm19_vm0, %v137_v21  ;;  %v138_v25 = vadd.f32 %v155_v17, %v127_v24 }
  0xec   :  { %144 = vst.msk [vmem:[%s236_s3 + $0x18] sm:$0xff] %vm19_vm0, %v140_v23 }
  0xed   :  { %142 = vst.msk [vmem:[%s236_s3 + $0x8] sm:$0xff] %vm19_vm0, %v138_v25 }

// kernel: seq2edit_forward.47
= control target key start
LH: loop header
LB: loop body
LE: loop exit
PB: predicated region body
PF: predicated region fallthrough
CT: control target
= control target key end

     0   :  { %s982_s15 = smov 0   ;;  %s1088_s0 = inlined_call_operand.vmem [shape: bf16[2,8,32], index: 0, kind: input, shape index: {}]   ;;  %s1089_s1 = inlined_call_operand.vmem [shape: bf16[2,16,32], index: 1, kind: input, shape index: {}]   ;;  %s1090_s2 = inlined_call_operand.vmem [shape: bf16[2,16,32], index: 2, kind: input, shape index: {}]   ;;  %s1091_s3 = inlined_call_operand.vmem [shape: f32[2,1,16], index: 3, kind: input, shape index: {}]   ;;  %s1092_s4 = inlined_call_operand.vmem [shape: f32[2,8,32], index: 4, kind: output, shape index: {}]  }
   0x1 LB: > { %s814_s16 = sadd.s32 4294967295, %s946_s15   ;;  %p818_p0 = scmp.ge.s32.totalorder %s946_s15, 1  ;;  %s946_s15 = sphi %s982_s15, %s14_s15  }
   0x2   : > { %p189_p1 = scmp.lt.s32.totalorder %s946_s15, 3 }
   0x4   : > { %p190_p2 = pnand %p818_p0, %p189_p1 }
   0x5   : > { %p226_p3 = scmp.lt.s32.totalorder (!%p190_p2), %s814_s16, 1  ;;  %v948_v0 = vmov (!%p190_p2), 0.0   ;;  %vm949_vm0 = vmmov (!%p190_p2), 0   ;;  %vm266_vm1 = vcmask (!%p190_p2), 64512   ;;  %v256_v4 = vlaneseq (!%p190_p2)  ;;  %s951_s28 = smov (!%p190_p2), 120  }
   0x6   : > { %193 = sbr.rel (%p190_p2) target bundleno = 1477 (0x5c5), region = 36  ;;  %856 = vmatprep.subr.bf16.mxu0 (!%p190_p2), %v948_v0  ;;  %858 = vmatprep.mubr.msk.bf16.mxu0 (!%p190_p2), %vm949_vm0, %v948_v0  ;;  %v950_v8 = vmov (!%p190_p2), 0   ;;  %vm315_vm4 = vcmask (!%p190_p2), 130048   ;;  %s952_s29 = smov (!%p190_p2), 112   ;;  %vm724_vm5 = vcmask (!%p190_p2), 195584   ;;  %vm726_vm6 = vcmask (!%p190_p2), 261120  }
   0x7   : > { %862 = vmatprep.subr.bf16.mxu1 (!%p190_p2), %v948_v0  ;;  %864 = vmatprep.mubr.msk.bf16.mxu1 (!%p190_p2), %vm949_vm0, %v948_v0  ;;  %v257_v6 = vshrl.u32 (!%p190_p2), %v256_v4, 7  ;;  %s953_s30 = smov (!%p190_p2), 104   ;;  %s954_s8 = smov (!%p190_p2), 8  }
   0x8   : > { %s955_s9 = smov (!%p190_p2), 16   ;;  %s956_s10 = smov (!%p190_p2), 24  }
   0x9   : > { %v258_v7 = vsub.s32 (!%p190_p2), 0, %v257_v6 }
   0xd   : > { %s1094_s16 = smov (!%p226_p3, %s814_s16), 1 }
   0xe   : > { %s996_s17 = sshll.u32 %s1094_s16, 3  ;;  %s819_s21 = sshll.u32 %s1094_s16, 2 }
   0xf   : > { %s234_s20 = scalar_lea.vmem %s1089_s1, %s996_s17  ;;  %s229_s24 = scalar_lea.vmem %s1088_s0, %s819_s21 }
  0x10   : > { %v921_v1 = vld [vmem:[%s234_s20] sm:$0xff]   ;;  %s242_s27 = scalar_lea.vmem %s1091_s3, %s1094_s16  ;;  %s239_s7 = scalar_lea.vmem %s1090_s2, %s996_s17 }
  0x11   : > { %v271_v2 = vsel %vm266_vm1, %v921_v1, 0  ;;  %v248_v3 = vld [vmem:[%s229_s24] sm:$0xf]  ;;  %382 = vrot.lane.b32.xlu1 %v921_v1, %s951_s28  ;;  %s246_s13 = scalar_lea.vmem %s1092_s4, %s996_s17 }
  0x12   : > { %857 = vmatpush3.bf16.xpose.msra.mxu0 %v271_v2  ;;  %v253_v5 = vld [vmem:[%s242_s27] sm:$0x1]  ;;  %v829_v18 = vcombine.low %v248_v3, %v248_v3 }
  0x13   : > { %874 = vmatprep.subr.bf16.mxu0 %v948_v0  ;;  %vm254_vm2 = vcmp.gt.f32.partialorder %v253_v5, 0.5  ;;  %v1029_v24 = vld [vmem:[%s239_s7] sm:$0xff]  }
  0x14   : > { %v255_v9 = vsel %vm254_vm2, 1, %v950_v8  ;;  %863 = vmatpush3.bf16.msra.mxu1 %v1029_v24 }
  0x15   : > { %v1013_v10 = vrot.slane %v255_v9, %v258_v7  ;;  %380 = vrot.lane.b32.xlu1 %v829_v18, %s951_s28  ;;  %868 = vmatprep.subr.bf16.mxu1 %v948_v0 }
  0x17   : > { %vm260_vm3 = vcmp.eq.s32.totalorder %v1013_v10, 1 }
  0x19   : > { %859 = vmatmul.mubr.msk.bf16.vlgmr.msra.gmra.mrb[0].mxu0 %vm266_vm1, %v248_v3  ;;  %490 = vrot.lane.b32.xlu1 %v829_v18, %s952_s29 }
  0x1a   : > { %876 = vmatprep.mubr.msk.bf16.mxu0 %vm949_vm0, %v948_v0 }
  0x1d   : > { %602 = vrot.lane.b32.xlu1 %v921_v1, %s953_s30 }
  0x21   : > { %600 = vrot.lane.b32.xlu1 %v829_v18, %s953_s30 }
  0x83   : > { %v383_v27 = vpop.permute.xlu1 %382 }
  0x84   : > { %v388_v29 = vsel %vm266_vm1, %v383_v27, 0 }
  0x87   : > { %v381_v31 = vpop.permute.xlu1 %380 }
  0x8b   : > { %v491_v33 = vpop.permute.xlu1 %490 }
  0x8f   : > { %v603_v35 = vpop.permute.xlu1 %602 }
  0x90   : > { %v608_v36 = vsel %vm266_vm1, %v603_v35, 0 }
  0x93   : > { %v601_v37 = vpop.permute.xlu1 %600 }
  0xec   : > { %v307_v11 = vpop.f32.mrb[0].mxu0 }
  0xed   : > { %v313_v12 = vmul.f32 0.35355338, %v307_v11  ;;  %v860_v13 = vpop.f32.mrb[1].mxu0 }
  0xee   : > { %v310_v14 = vpop.f32.mrb[2].mxu0 }
  0xef   : > { %v861_v15 = vpop.f32.mrb[3].mxu0  ;;  %v314_v16 = vsel %vm260_vm3, %v313_v12, -1e+30 }
  0xf0   : > { %v316_v17 = vsel %vm315_vm4, %v314_v16, -inf }
  0xf1   : > { %317 = vmax.xlane.f32.xlu0 %v316_v17 }
 0x17e   : > { %v318_v19 = vpop.xlane.xlu0 %317 }
 0x17f   : > { %v319_v20 = vsub.f32 %v314_v16, %v318_v19 }
 0x181   : > { %v320_v21 = vmul.f32 1.442695, %v319_v20 }
 0x183   : > { %924 = vpow2.f32 %v320_v21 }
 0x18d   : > { %v925_v22 = vpop.eup %924 }
 0x18e   : > { %v322_v23 = vsel %vm315_vm4, %v925_v22, 0.0 }
 0x18f   : > { %323 = vadd.xlane.f32.xlu0 %v322_v23 }
 0x1a5   : > { %492 = vrot.lane.b32.xlu0 %v921_v1, %s952_s29 }
 0x21c   : > { %v324_v25 = vpop.xlane.xlu0 %323 }
 0x21d   : > { %926 = vrcp.f32 %v324_v25 }
 0x220   : > { %v493_v32 = vpop.permute.xlu0 %492 }
 0x221   : > { %v498_v34 = vsel %vm266_vm1, %v493_v32, 0 }
 0x227   : > { %v927_v26 = vpop.eup %926 }
 0x228   : > { %v326_v28 = vmul.f32 %v927_v26, %v925_v22 }
 0x22a   : > { %v327_v30 = vpack.c.bf16 %v326_v28, %v326_v28 }
 0x22c   : > { %865 = vmatmul.mubr.msk.bf16.vlgmr.msra.gmra.mrb[0].mxu1 %vm315_vm4, %v327_v30 }
 0x22d   : > { %869 = vmatpush3.bf16.xpose.msra.mxu1 %v388_v29  ;;  %870 = vmatprep.mubr.msk.bf16.mxu1 %vm949_vm0, %v948_v0 }
 0x22e   : > { %880 = vmatprep.subr.bf16.mxu1 %v948_v0 }
 0x234   : > { %871 = vmatmul.mubr.msk.bf16.vlgmr.msra.gmra.mrb[4].mxu1 %vm266_vm1, %v381_v31 }
 0x235   : > { %881 = vmatpush3.bf16.xpose.msra.mxu1 %v498_v34  ;;  %882 = vmatprep.mubr.msk.bf16.mxu1 %vm949_vm0, %v948_v0 }
 0x236   : > { %892 = vmatprep.subr.bf16.mxu1 %v948_v0 }
 0x23c   : > { %883 = vmatmul.mubr.msk.bf16.vlgmr.msra.gmra.mrb[8].mxu1 %vm266_vm1, %v491_v33 }
 0x23d   : > { %893 = vmatpush3.bf16.xpose.msra.mxu1 %v608_v36  ;;  %894 = vmatprep.mubr.msk.bf16.mxu1 %vm949_vm0, %v948_v0 }
 0x244   : > { %895 = vmatmul.mubr.msk.bf16.vlgmr.msra.gmra.mrb[12].mxu1 %vm266_vm1, %v601_v37 }
 0x2ff   : > { %v1049_v38 = vpop.f32.mrb[0].mxu1 }
 0x300   : > { %v866_v39 = vpop.f32.mrb[1].mxu1 }
 0x301   : > { %v374_v40 = vpop.f32.mrb[2].mxu1 }
 0x302   : > { %v867_v41 = vpop.f32.mrb[3].mxu1 }
 0x307   : > { %v424_v42 = vpop.f32.mrb[4].mxu1 }
 0x308   : > { %v430_v43 = vmul.f32 0.35355338, %v424_v42  ;;  %v872_v44 = vpop.f32.mrb[5].mxu1 }
 0x309   : > { %v427_v45 = vpop.f32.mrb[6].mxu1 }
 0x30a   : > { %v873_v46 = vpop.f32.mrb[7].mxu1  ;;  %v431_v47 = vsel %vm260_vm3, %v430_v43, -1e+30 }
 0x30b   : > { %v432_v48 = vsel %vm315_vm4, %v431_v47, -inf }
 0x30c   : > { %433 = vmax.xlane.f32.xlu1 %v432_v48 }
 0x30f   : > { %v534_v49 = vpop.f32.mrb[8].mxu1 }
 0x310   : > { %v540_v50 = vmul.f32 0.35355338, %v534_v49  ;;  %v884_v51 = vpop.f32.mrb[9].mxu1 }
 0x311   : > { %v537_v52 = vpop.f32.mrb[10].mxu1 }
 0x312   : > { %v541_v53 = vsel %vm260_vm3, %v540_v50, -1e+30  ;;  %v885_v54 = vpop.f32.mrb[11].mxu1 }
 0x313   : > { %v542_v55 = vsel %vm315_vm4, %v541_v53, -inf }
 0x314   : > { %543 = vmax.xlane.f32.xlu0 %v542_v55 }
 0x317   : > { %v644_v56 = vpop.f32.mrb[12].mxu1 }
 0x318   : > { %v650_v57 = vmul.f32 0.35355338, %v644_v56  ;;  %v896_v58 = vpop.f32.mrb[13].mxu1 }
 0x319   : > { %v647_v59 = vpop.f32.mrb[14].mxu1 }
 0x31a   : > { %v651_v60 = vsel %vm260_vm3, %v650_v57, -1e+30  ;;  %v897_v61 = vpop.f32.mrb[15].mxu1 }
 0x31b   : > { %v652_v62 = vsel %vm315_vm4, %v651_v60, -inf }
 0x31c   : > { %653 = vmax.xlane.f32.xlu1 %v652_v62 }
 0x399   : > { %v434_v63 = vpop.xlane.xlu1 %433 }
 0x39a   : > { %v435_v1 = vsub.f32 %v431_v47, %v434_v63 }
 0x39c   : > { %v436_v2 = vmul.f32 1.442695, %v435_v1 }
 0x39e   : > { %928 = vpow2.f32 %v436_v2 }
 0x3a1   : > { %v544_v3 = vpop.xlane.xlu0 %543 }
 0x3a2   : > { %v545_v4 = vsub.f32 %v541_v53, %v544_v3 }
 0x3a4   : > { %v546_v5 = vmul.f32 1.442695, %v545_v4 }
 0x3a6   : > { %930 = vpow2.f32 %v546_v5 }
 0x3a8   : > { %v929_v6 = vpop.eup %928 }
 0x3a9   : > { %v438_v7 = vsel %vm315_vm4, %v929_v6, 0.0  ;;  %v654_v10 = vpop.xlane.xlu1 %653 }
 0x3aa   : > { %439 = vadd.xlane.f32.xlu1 %v438_v7  ;;  %v655_v11 = vsub.f32 %v651_v60, %v654_v10 }
 0x3ac   : > { %v656_v12 = vmul.f32 1.442695, %v655_v11 }
 0x3ae   : > { %932 = vpow2.f32 %v656_v12 }
 0x3b0   : > { %v931_v8 = vpop.eup %930 }
 0x3b1   : > { %v548_v9 = vsel %vm315_vm4, %v931_v8, 0.0 }
 0x3b2   : > { %549 = vadd.xlane.f32.xlu0 %v548_v9 }
 0x3b8   : > { %v933_v13 = vpop.eup %932 }
 0x3b9   : > { %v658_v14 = vsel %vm315_vm4, %v933_v13, 0.0 }
 0x3bb   : > { %554 = vrot.lane.b32.xlu1 %v1029_v24, %s952_s29 }
 0x3c8   : > { %444 = vrot.lane.b32.xlu0 %v1029_v24, %s951_s28 }
 0x3df   : > { %659 = vadd.xlane.f32.xlu1 %v658_v14 }
 0x3f0   : > { %664 = vrot.lane.b32.xlu1 %v1029_v24, %s953_s30 }
 0x437   : > { %v440_v15 = vpop.xlane.xlu1 %439 }
 0x438   : > { %934 = vrcp.f32 %v440_v15 }
 0x43b   : > { %v555_v21 = vpop.permute.xlu1 %554 }
 0x43f   : > { %v550_v16 = vpop.xlane.xlu0 %549 }
 0x440   : > { %936 = vrcp.f32 %v550_v16 }
 0x442   : > { %v935_v17 = vpop.eup %934 }
 0x443   : > { %v442_v18 = vmul.f32 %v935_v17, %v929_v6  ;;  %v445_v19 = vpop.permute.xlu0 %444 }
 0x444   : > { %875 = vmatpush3.bf16.msra.mxu0 %v445_v19 }
 0x445   : > { %v443_v20 = vpack.c.bf16 %v442_v18, %v442_v18  ;;  %886 = vmatprep.subr.bf16.mxu0 %v948_v0 }
 0x447   : > { %877 = vmatmul.mubr.msk.bf16.vlgmr.msra.gmra.mrb[4].mxu0 %vm315_vm4, %v443_v20 }
 0x448   : > { %887 = vmatpush3.bf16.msra.mxu0 %v555_v21  ;;  %888 = vmatprep.mubr.msk.bf16.mxu0 %vm949_vm0, %v948_v0 }
 0x449   : > { %898 = vmatprep.subr.bf16.mxu0 %v948_v0 }
 0x44a   : > { %v937_v22 = vpop.eup %936 }
 0x44b   : > { %v552_v23 = vmul.f32 %v937_v22, %v931_v8 }
 0x44d   : > { %v553_v24 = vpack.c.bf16 %v552_v23, %v552_v23 }
 0x44f   : > { %889 = vmatmul.mubr.msk.bf16.vlgmr.msra.gmra.mrb[8].mxu0 %vm315_vm4, %v553_v24 }
 0x450   : > { %900 = vmatprep.mubr.msk.bf16.mxu0 %vm949_vm0, %v948_v0 }
 0x46c   : > { %v660_v25 = vpop.xlane.xlu1 %659 }
 0x46d   : > { %938 = vrcp.f32 %v660_v25 }
 0x470   : > { %v665_v26 = vpop.permute.xlu1 %664 }
 0x471   : > { %899 = vmatpush3.bf16.msra.mxu0 %v665_v26 }
 0x477   : > { %v939_v27 = vpop.eup %938 }
 0x478   : > { %v662_v28 = vmul.f32 %v939_v27, %v933_v13 }
 0x47a   : > { %v663_v29 = vpack.c.bf16 %v662_v28, %v662_v28 }
 0x47c   : > { %901 = vmatmul.mubr.msk.bf16.vlgmr.msra.gmra.mrb[12].mxu0 %vm315_vm4, %v663_v29 }
 0x51a   : > { %v484_v30 = vpop.f32.mrb[4].mxu0 }
 0x51b   : > { %711 = vrot.lane.b32.xlu0 %v484_v30, %s954_s8  ;;  %v878_v31 = vpop.f32.mrb[5].mxu0 }
 0x51c   : > { %v487_v32 = vpop.f32.mrb[6].mxu0 }
 0x51d   : > { %v879_v33 = vpop.f32.mrb[7].mxu0 }
 0x522   : > { %v594_v34 = vpop.f32.mrb[8].mxu0 }
 0x523   : > { %715 = vrot.lane.b32.xlu1 %v594_v34, %s955_s9  ;;  %v890_v0 = vpop.f32.mrb[9].mxu0 }
 0x524   : > { %v597_v35 = vpop.f32.mrb[10].mxu0 }
 0x525   : > { %v891_v36 = vpop.f32.mrb[11].mxu0 }
 0x54f   : > { %v704_v37 = vpop.f32.mrb[12].mxu0 }
 0x550   : > { %719 = vrot.lane.b32.xlu0 %v704_v37, %s956_s10  ;;  %v902_v39 = vpop.f32.mrb[13].mxu0 }
 0x551   : > { %v707_v40 = vpop.f32.mrb[14].mxu0 }
 0x552   : > { %v903_v41 = vpop.f32.mrb[15].mxu0 }
 0x58d   : > { %v712_v42 = vpop.permute.xlu0 %711 }
 0x58e   : > { %v722_v44 = vsel %vm266_vm1, %v1049_v38, %v712_v42 }
 0x595   : > { %v716_v43 = vpop.permute.xlu1 %715 }
 0x596   : > { %v723_v45 = vsel %vm315_vm4, %v722_v44, %v716_v43 }
 0x5c2   : > { %v720_v46 = vpop.permute.xlu0 %719 }
 0x5c3   : > { %v725_v47 = vsel %vm724_vm5, %v723_v45, %v720_v46 }
 0x5c4   : > { %727 = vst.msk [vmem:[%s246_s13] sm:$0xff] %vm726_vm6, %v725_v47 }
 0x5c5 PF: > { %s14_s15 = sadd.s32 1, %s946_s15  }
 0x5c6   : > { %p11_p4 = scmp.ge.s32.totalorder %s14_s15, 4  }
 0x5c8   :  { %13 = sbr.rel (!%p11_p4) target bundleno = 1 (0x1), region = 75 }

// kernel: seq2edit_forward.50
= control target key start
LH: loop header
LB: loop body
LE: loop exit
PB: predicated region body
PF: predicated region fallthrough
CT: control target
= control target key end

     0   :  { %vm19_vm0 = vcmask 261120   ;;  %v164_v0 = vmov 0.0   ;;  %vm165_vm1 = vmmov 0   ;;  %vm63_vm2 = vcmask 523264   ;;  %s216_s1 = inlined_call_operand.vmem [shape: bf16[64,32], index: 1, kind: input, shape index: {}]   ;;  %s217_s0 = inlined_call_operand.vmem [shape: bf16[16,64], index: 0, kind: input, shape index: {}]   ;;  %s218_s2 = inlined_call_operand.vmem [shape: f32[1,32], index: 2, kind: input, shape index: {}]   ;;  %s219_s3 = inlined_call_operand.vmem [shape: f32[16,32], index: 3, kind: output, shape index: {}]  }
   0x1   :  { %145 = vmatprep.subr.bf16.mxu0 %v164_v0  ;;  %v159_v1 = vld [vmem:[%s216_s1] sm:$0xff]   ;;  %153 = vmatprep.mubr.msk.bf16.mxu0 %vm165_vm1, %v164_v0  ;;  %20 = vst.msk [vmem:[#allocation2] sm:$0xff] %vm19_vm0, %v164_v0  ;;  %21 = vst.msk [vmem:[#allocation2 + $0x8] sm:$0xff] %vm19_vm0, %v164_v0  ;;  %v160_v2 = vld [vmem:[%s216_s1 + $0x8] sm:$0xff]  }
   0x2   :  { %146 = vmatpush3.bf16.msra.mxu0 %v159_v1  ;;  %v161_v3 = vld [vmem:[%s216_s1 + $0x10] sm:$0xff]   ;;  %v162_v4 = vld [vmem:[%s216_s1 + $0x18] sm:$0xff]   ;;  %v163_v5 = vld [vmem:[%s217_s0] sm:$0xff]  }
   0x3   :  { %147 = vmatprep.subr.bf16.mxu0 %v164_v0  ;;  %v139_v14 = vld [vmem:[%s218_s2] ss:$0 sm:$0xff] }
   0x6   :  { %148 = vmatpush3.bf16.msra.mxu0 %v160_v2 }
   0x7   :  { %149 = vmatprep.subr.bf16.mxu0 %v164_v0 }
   0x8   :  { %v22_v6 = vld [vmem:[#allocation2] sm:$0xff]  ;;  %v23_v8 = vld [vmem:[#allocation2 + $0x8] sm:$0xff] }
   0xa   :  { %150 = vmatpush3.bf16.msra.mxu0 %v161_v3 }
   0xb   :  { %151 = vmatprep.subr.bf16.mxu0 %v164_v0 }
   0xe   :  { %152 = vmatpush3.bf16.msra.mxu0 %v162_v4 }
  0x11   :  { %154 = vmatmul.mubr.msk.bf16.vlgmr.msra.gmra.mrb[0].mxu0 %vm63_vm2, %v163_v5 }
  0xe4   :  { %v101_v7 = vpop.f32.mrb[0].mxu0 }
  0xe5   :  { %v108_v9 = vadd.f32 %v101_v7, %v22_v6  ;;  %v155_v10 = vpop.f32.mrb[1].mxu0 }
  0xe6   :  { %v104_v11 = vpop.f32.mrb[2].mxu0 }
  0xe7   :  { %111 = vst.msk [vmem:[#allocation2] sm:$0xff] %vm19_vm0, %v108_v9  ;;  %v109_v12 = vadd.f32 %v104_v11, %v23_v8  ;;  %v156_v13 = vpop.f32.mrb[3].mxu0 }
  0xe9   :  { %112 = vst.msk [vmem:[#allocation2 + $0x8] sm:$0xff] %vm19_vm0, %v109_v12 }
  0xee   :  { %v116_v15 = vld [vmem:[#allocation2] sm:$0xff] }
  0xef   :  { %v125_v16 = vadd.f32 %v139_v14, %v116_v15 }
  0xf0   :  { %v117_v17 = vld [vmem:[#allocation2 + $0x8] sm:$0xff] }
  0xf1   :  { %127 = vst.msk [vmem:[%s219_s3] sm:$0xff] %vm19_vm0, %v125_v16  ;;  %v126_v18 = vadd.f32 %v139_v14, %v117_v17 }
  0xf3   :  { %128 = vst.msk [vmem:[%s219_s3 + $0x8] sm:$0xff] %vm19_vm0, %v126_v18 }

// kernel: seq2edit_forward.53
= control target key start
LH: loop header
LB: loop body
LE: loop exit
PB: predicated region body
PF: predicated region fallthrough
CT: control target
= control target key end

     0   :  { %s437_s12 = smov 0   ;;  %s468_s0 = inlined_call_operand.vmem [shape: bf16[2,8,32], index: 0, kind: input, shape index: {}]   ;;  %s469_s1 = inlined_call_operand.vmem [shape: bf16[2,16,32], index: 1, kind: input, shape index: {}]   ;;  %s470_s2 = inlined_call_operand.vmem [shape: s32[2,8,1], index: 2, kind: input, shape index: {}]   ;;  %s471_s3 = inlined_call_operand.vmem [shape: f32[2,8,1], index: 3, kind: output, shape index: {}]  }
   0x1 LB: > { %s365_s13 = sadd.s32 4294967295, %s412_s12   ;;  %p369_p0 = scmp.ge.s32.totalorder %s412_s12, 1  ;;  %s412_s12 = sphi %s437_s12, %s13_s12  }
   0x2   : > { %p155_p1 = scmp.lt.s32.totalorder %s412_s12, 3 }
   0x4   : > { %p156_p2 = pnand %p369_p0, %p155_p1 }
   0x5   : > { %p186_p3 = scmp.lt.s32.totalorder (!%p156_p2), %s365_s13, 1  ;;  %v414_v0 = vmov (!%p156_p2), 0.0   ;;  %vm415_vm0 = vmmov (!%p156_p2), 0   ;;  %vm212_vm1 = vcmask (!%p156_p2), 261120   ;;  %v416_v4 = vmov (!%p156_p2), 0  }
   0x6   : > { %159 = sbr.rel (%p156_p2) target bundleno = 556 (0x22c), region = 32  ;;  %383 = vmatprep.subr.bf16.mxu0 (!%p156_p2), %v414_v0  ;;  %385 = vmatprep.mubr.msk.bf16.mxu0 (!%p156_p2), %vm415_vm0, %v414_v0  ;;  %vm259_vm2 = vcmask (!%p156_p2), 130048   ;;  %v272_v13 = vlaneseq (!%p156_p2)  ;;  %vm286_vm4 = vcmask (!%p156_p2), 7168  }
   0x7   : > { %400 = vset.pattern.permute.xlu0 (!%p156_p2), %v416_v4 }
   0x8   : > { %v273_v15 = vand.u32 (!%p156_p2), 127, %v272_v13 }
   0xd   : > { %s473_s13 = smov (!%p186_p3, %s365_s13), 1 }
   0xe   : > { %s445_s14 = sshll.u32 %s473_s13, 3  ;;  %s370_s18 = sshll.u32 %s473_s13, 2 }
   0xf   : > { %s194_s17 = scalar_lea.vmem %s469_s1, %s445_s14  ;;  %s189_s21 = scalar_lea.vmem %s468_s0, %s370_s18 }
  0x10   : > { %v401_v1 = vld [vmem:[%s194_s17] sm:$0xff]   ;;  %s198_s24 = scalar_lea.vmem %s470_s2, %s445_s14  ;;  %s202_s27 = scalar_lea.vmem %s471_s3, %s445_s14 }
  0x11   : > { %v217_v2 = vsel %vm212_vm1, %v401_v1, 0  ;;  %v204_v3 = vld [vmem:[%s189_s21] sm:$0xf] }
  0x12   : > { %384 = vmatpush3.bf16.xpose.msra.mxu0 %v217_v2  ;;  %v274_v10 = vld [vmem:[%s198_s24] sm:$0xff] }
  0x19   : > { %386 = vmatmul.mubr.msk.bf16.vlgmr.msra.gmra.mrb[0].mxu0 %vm212_vm1, %v204_v3 }
  0xec   : > { %v253_v5 = vpop.f32.mrb[0].mxu0 }
  0xed   : > { %v387_v6 = vpop.f32.mrb[1].mxu0  ;;  %v260_v7 = vsel %vm259_vm2, %v253_v5, -inf }
  0xee   : > { %261 = vmax.xlane.f32.xlu0 %v260_v7  ;;  %v256_v8 = vpop.f32.mrb[2].mxu0 }
  0xef   : > { %v388_v9 = vpop.f32.mrb[3].mxu0 }
 0x104   : > { %276 = vperm.xlu0 %400, %v274_v10  }
 0x17b   : > { %v262_v11 = vpop.xlane.xlu0 %261 }
 0x17c   : > { %v263_v12 = vsub.f32 %v253_v5, %v262_v11 }
 0x17e   : > { %v264_v14 = vmul.f32 1.442695, %v263_v12 }
 0x180   : > { %402 = vpow2.f32 %v264_v14 }
 0x183   : > { %v277_v16 = vpop.permute.xlu0 %276 }
 0x184   : > { %vm278_vm3 = vcmp.eq.s32.totalorder %v273_v15, %v277_v16 }
 0x185   : > { %v377_v17 = vsel %vm278_vm3, 1.0, %v414_v0 }
 0x186   : > { %v281_v20 = vmul.f32 %v377_v17, %v253_v5 }
 0x188   : > { %v282_v21 = vsel %vm259_vm2, %v281_v20, 0.0 }
 0x18a   : > { %v403_v18 = vpop.eup %402 }
 0x18b   : > { %v266_v19 = vsel %vm259_vm2, %v403_v18, 0.0 }
 0x18c   : > { %267 = vadd.xlane.f32.xlu1 %v266_v19 }
 0x190   : > { %283 = vadd.xlane.f32.xlu1 %v282_v21 }
 0x219   : > { %v268_v22 = vpop.xlane.xlu1 %267 }
 0x21a   : > { %404 = vlog2.f32 %v268_v22 }
 0x21d   : > { %v284_v26 = vpop.xlane.xlu1 %283 }
 0x224   : > { %v405_v23 = vpop.eup %404 }
 0x225   : > { %v270_v24 = vmul.f32 0.6931472, %v405_v23 }
 0x227   : > { %v271_v25 = vadd.f32 %v270_v24, %v262_v11 }
 0x229   : > { %v285_v27 = vsub.f32 %v271_v25, %v284_v26 }
 0x22b   : > { %287 = vst.msk [vmem:[%s202_s27] sm:$0xff] %vm286_vm4, %v285_v27 }
 0x22c PF: > { %s13_s12 = sadd.s32 1, %s412_s12  }
 0x22d   : > { %p10_p4 = scmp.ge.s32.totalorder %s13_s12, 4  }
 0x22f   :  { %12 = sbr.rel (!%p10_p4) target bundleno = 1 (0x1), region = 68 }

// kernel: seq2edit_forward.49
= control target key start
LH: loop header
LB: loop body
LE: loop exit
PB: predicated region body
PF: predicated region fallthrough
CT: control target
= control target key end

     0   :  { %vm19_vm0 = vcmask 523264   ;;  %v160_v0 = vmov 0.0   ;;  %vm161_vm1 = vmmov 0   ;;  %vm47_vm2 = vcmask 261120   ;;  %s206_s1 = inlined_call_operand.vmem [shape: bf16[32,64], index: 1, kind: input, shape index: {}]   ;;  %s207_s0 = inlined_call_operand.vmem [shape: bf16[16,32], index: 0, kind: input, shape index: {}]   ;;  %s208_s2 = inlined_call_operand.vmem [shape: f32[1,64], index: 2, kind: input, shape index: {}]   ;;  %s209_s3 = inlined_call_operand.vmem [shape: f32[16,64], index: 3, kind: output, shape index: {}]  }
   0x1   :  { %143 = vmatprep.subr.bf16.mxu0 %v160_v0  ;;  %v153_v1 = vld [vmem:[%s206_s1] sm:$0xff]   ;;  %147 = vmatprep.mubr.msk.bf16.mxu0 %vm161_vm1, %v160_v0  ;;  %20 = vst.msk [vmem:[#allocation2] sm:$0xff] %vm19_vm0, %v160_v0  ;;  %21 = vst.msk [vmem:[#allocation2 + $0x8] sm:$0xff] %vm19_vm0, %v160_v0  ;;  %v154_v2 = vld [vmem:[%s206_s1 + $0x8] sm:$0xff]  }
   0x2   :  { %144 = vmatpush3.bf16.msra.mxu0 %v153_v1  ;;  %v155_v3 = vld [vmem:[%s207_s0] sm:$0xff]  }
   0x3   :  { %145 = vmatprep.subr.bf16.mxu0 %v160_v0  ;;  %v139_v12 = vld [vmem:[%s208_s2] ss:$0 sm:$0xff] }
   0x6   :  { %146 = vmatpush3.bf16.msra.mxu0 %v154_v2 }
   0x8   :  { %v22_v4 = vld [vmem:[#allocation2] sm:$0xff]  ;;  %v23_v6 = vld [vmem:[#allocation2 + $0x8] sm:$0xff] }
   0x9   :  { %148 = vmatmul.mubr.msk.bf16.vlgmr.msra.gmra.mrb[0].mxu0 %vm47_vm2, %v155_v3 }
  0xdc   :  { %v85_v5 = vpop.f32.mrb[0].mxu0 }
  0xdd   :  { %v92_v7 = vadd.f32 %v85_v5, %v22_v4  ;;  %v149_v8 = vpop.f32.mrb[1].mxu0 }
  0xde   :  { %v88_v9 = vpop.f32.mrb[2].mxu0 }
  0xdf   :  { %95 = vst.msk [vmem:[#allocation2] sm:$0xff] %vm19_vm0, %v92_v7  ;;  %v93_v10 = vadd.f32 %v88_v9, %v23_v6  ;;  %v150_v11 = vpop.f32.mrb[3].mxu0 }
  0xe1   :  { %96 = vst.msk [vmem:[#allocation2 + $0x8] sm:$0xff] %vm19_vm0, %v93_v10 }
  0xe6   :  { %v100_v13 = vld [vmem:[#allocation2] sm:$0xff] }
  0xe7   :  { %v109_v14 = vadd.f32 %v139_v12, %v100_v13 }
  0xe8   :  { %v101_v15 = vld [vmem:[#allocation2 + $0x8] sm:$0xff] }
  0xe9   :  { %v111_v16 = vmul.f32 %v109_v14, %v109_v14  ;;  %v110_v17 = vadd.f32 %v139_v12, %v101_v15 }
  0xeb   :  { %v113_v18 = vmul.f32 %v111_v16, %v109_v14  ;;  %v112_v19 = vmul.f32 %v110_v17, %v110_v17 }
  0xed   :  { %v115_v20 = vmul.f32 0.044715, %v113_v18  ;;  %v114_v21 = vmul.f32 %v112_v19, %v110_v17 }
  0xef   :  { %v117_v22 = vadd.f32 %v115_v20, %v109_v14  ;;  %v116_v23 = vmul.f32 0.044715, %v114_v21 }
  0xf1   :  { %v119_v24 = vmul.f32 0.7978846, %v117_v22  ;;  %v118_v25 = vadd.f32 %v116_v23, %v110_v17 }
  0xf3   :  { %156 = vtanh.f32 %v119_v24  ;;  %v120_v26 = vmul.f32 0.7978846, %v118_v25 }
  0xf5   :  { %158 = vtanh.f32 %v120_v26 }
  0xfd   :  { %v157_v27 = vpop.eup %156 }
  0xfe   :  { %v123_v28 = vadd.f32 1.0, %v157_v27 }
  0xff   :  { %v159_v29 = vpop.eup %158 }
 0x100   :  { %v125_v30 = vmul.f32 0.5, %v123_v28  ;;  %v124_v31 = vadd.f32 1.0, %v159_v29 }
 0x102   :  { %v127_v32 = vmul.f32 %v125_v30, %v109_v14  ;;  %v126_v33 = vmul.f32 0.5, %v124_v31 }
 0x104   :  { %129 = vst.msk [vmem:[%s209_s3] sm:$0xff] %vm19_vm0, %v127_v32  ;;  %v128_v34 = vmul.f32 %v126_v33, %v110_v17 }
 0x106   :  { %130 = vst.msk [vmem:[%s209_s3 + $0x8] sm:$0xff] %vm19_vm0, %v128_v34 }

// kernel: seq2edit_forward.51
= control target key start
LH: loop header
LB: loop body
LE: loop exit
PB: predicated region body
PF: predicated region fallthrough
CT: control target
= control target key end

     0   :  { %vm62_vm0 = vcmask 261120   ;;  %v275_v0 = vmov 0.0   ;;  %vm276_vm1 = vmmov 0   ;;  %v277_v10 = vmov 0   ;;  %s362_s2 = inlined_call_operand.vmem [shape: bf16[64,32], index: 2, kind: input, shape index: {}]   ;;  %s363_s1 = inlined_call_operand.vmem [shape: bf16[14,32], index: 1, kind: input, shape index: {}]   ;;  %s364_s0 = inlined_call_operand.vmem [shape: s32[14,1], index: 0, kind: input, shape index: {}]   ;;  %s365_s3 = inlined_call_operand.vmem [shape: f32[14,1], index: 3, kind: output, shape index: {}]  }
   0x1   :  { %240 = vmatprep.subr.bf16.mxu0 %v275_v0  ;;  %v258_v1 = vld [vmem:[%s362_s2] sm:$0xff]   ;;  %248 = vmatprep.mubr.msk.bf16.mxu0 %vm276_vm1, %v275_v0  ;;  %v259_v3 = vld [vmem:[%s362_s2 + $0x8] sm:$0xff]   ;;  %v260_v5 = vld [vmem:[%s362_s2 + $0x10] sm:$0xff]   ;;  %vm19_vm2 = vcmask 7168   ;;  %v278_v11 = vmov -1e+30   ;;  %v119_v26 = vlaneseq }
   0x2   :  { %v67_v2 = vsel %vm62_vm0, %v258_v1, 0  ;;  %v70_v4 = vsel %vm62_vm0, %v259_v3, 0  ;;  %v73_v6 = vsel %vm62_vm0, %v260_v5, 0  ;;  %v261_v7 = vld [vmem:[%s362_s2 + $0x18] sm:$0xff]   ;;  %v262_v9 = vld [vmem:[%s363_s1] sm:$0x7f]   ;;  %257 = vset.pattern.permute.xlu0 %v277_v10  ;;  %256 = vset.pattern.permute.xlu1 %v277_v10 }
   0x3   :  { %241 = vmatpush3.bf16.xpose.msra.mxu0 %v67_v2  ;;  %v76_v8 = vsel %vm62_vm0, %v261_v7, 0  ;;  %20 = vst.msk [vmem:[#allocation2] sm:$0xff] %vm19_vm2, %v278_v11  ;;  %23 = vst.msk [vmem:[#allocation3] sm:$0xff] %vm19_vm2, %v275_v0  ;;  %vm142_vm3 = vcmask 523264   ;;  %vm146_vm4 = vcmask 521216   ;;  %vm21_vm5 = vcmask 5120  }
   0x4   :  { %242 = vmatprep.subr.bf16.mxu0 %v275_v0  ;;  %25 = vst.msk [vmem:[#allocation4] sm:$0xff] %vm19_vm2, %v275_v0  ;;  %v124_v18 = vld [vmem:[%s364_s0] sm:$0xff]  ;;  %v125_v28 = vld [vmem:[%s364_s0 + $0x8] sm:$0x3f]  ;;  %v120_v29 = vand.u32 127, %v119_v26 }
   0x5   :  { %22 = vst.msk [vmem:[#allocation2 + $0x8] sm:$0x3f] %vm21_vm5, %v278_v11  ;;  %24 = vst.msk [vmem:[#allocation3 + $0x8] sm:$0x3f] %vm21_vm5, %v275_v0 }
   0x6   :  { %26 = vst.msk [vmem:[#allocation4 + $0x8] sm:$0x3f] %vm21_vm5, %v275_v0 }
   0xa   :  { %v156_v19 = vld [vmem:[#allocation2] sm:$0xff]  ;;  %v166_v54 = vld [vmem:[#allocation3] sm:$0xff] }
   0xb   :  { %243 = vmatpush3.bf16.xpose.msra.mxu0 %v70_v4  ;;  %v138_v48 = vld [vmem:[#allocation4] sm:$0xff] }
   0xc   :  { %244 = vmatprep.subr.bf16.mxu0 %v275_v0  ;;  %v157_v22 = vld [vmem:[#allocation2 + $0x8] sm:$0x3f]  ;;  %v167_v58 = vld [vmem:[#allocation3 + $0x8] sm:$0x3f] }
   0xd   :  { %v139_v63 = vld [vmem:[#allocation4 + $0x8] sm:$0x3f] }
  0x13   :  { %245 = vmatpush3.bf16.xpose.msra.mxu0 %v73_v6 }
  0x14   :  { %246 = vmatprep.subr.bf16.mxu0 %v275_v0 }
  0x1b   :  { %247 = vmatpush3.bf16.xpose.msra.mxu0 %v76_v8 }
  0x22   :  { %249 = vmatmul.mubr.msk.bf16.vlgmr.msra.gmra.mrb[0].mxu0 %vm62_vm0, %v262_v9 }
  0xf5   :  { %v112_v12 = vpop.f32.mrb[0].mxu0 }
  0xf6   :  { %v250_v13 = vpop.f32.mrb[1].mxu0  ;;  %v158_v14 = vsel %vm142_vm3, %v112_v12, -inf }
  0xf7   :  { %159 = vmax.xlane.f32.xlu0 %v158_v14  ;;  %v115_v15 = vpop.f32.mrb[2].mxu0 }
  0xf8   :  { %v251_v16 = vpop.f32.mrb[3].mxu0  ;;  %v161_v17 = vsel %vm146_vm4, %v115_v15, -inf }
  0xfb   :  { %162 = vmax.xlane.f32.xlu0 %v161_v17 }
 0x111   :  { %127 = vperm.xlu0 %257, %v124_v18  }
 0x184   :  { %v160_v20 = vpop.xlane.xlu0 %159 }
 0x185   :  { %v164_v21 = vmax.f32 %v156_v19, %v160_v20 }
 0x187   :  { %v168_v23 = vsub.f32 %v156_v19, %v164_v21  ;;  %202 = vst.msk [vmem:[#allocation2] sm:$0xff] %vm19_vm2, %v164_v21  ;;  %178 = vperm.xlu1 %256, %v164_v21  }
 0x188   :  { %v163_v24 = vpop.xlane.xlu0 %162 }
 0x189   :  { %v165_v25 = vmax.f32 %v157_v22, %v163_v24  ;;  %v170_v51 = vmul.f32 1.442695, %v168_v23 }
 0x18b   :  { %v169_v27 = vsub.f32 %v157_v22, %v165_v25  ;;  %203 = vst.msk [vmem:[#allocation2 + $0x8] sm:$0x3f] %vm21_vm5, %v165_v25  ;;  %183 = vperm.xlu1 %256, %v165_v25  }
 0x18d   :  { %v172_v52 = vmul.f32 1.442695, %v169_v27 }
 0x18e   :  { %v207_v6 = vld [vmem:[#allocation2] sm:$0xff] }
 0x18f   :  { %130 = vperm.xlu1 %256, %v125_v28  }
 0x190   :  { %v128_v30 = vpop.permute.xlu0 %127 }
 0x191   :  { %vm132_vm6 = vcmp.eq.s32.totalorder %v120_v29, %v128_v30 }
 0x192   :  { %v233_v31 = vsel %vm132_vm6, 1.0, %v275_v0 }
 0x193   :  { %v140_v32 = vmul.f32 %v233_v31, %v112_v12 }
 0x195   :  { %v143_v33 = vsel %vm142_vm3, %v140_v32, 0.0 }
 0x196   :  { %144 = vadd.xlane.f32.xlu0 %v143_v33 }
 0x206   :  { %v179_v34 = vpop.permute.xlu1 %178 }
 0x207   :  { %v186_v35 = vsub.f32 %v112_v12, %v179_v34  ;;  %v208_v12 = vld [vmem:[#allocation2 + $0x8] sm:$0x3f] }
 0x209   :  { %v188_v36 = vmul.f32 1.442695, %v186_v35 }
 0x20a   :  { %v184_v37 = vpop.permute.xlu1 %183 }
 0x20b   :  { %263 = vpow2.f32 %v188_v36  ;;  %v187_v38 = vsub.f32 %v115_v15, %v184_v37 }
 0x20d   :  { %v190_v39 = vmul.f32 1.442695, %v187_v38 }
 0x20e   :  { %v131_v40 = vpop.permute.xlu1 %130 }
 0x20f   :  { %265 = vpow2.f32 %v190_v39  ;;  %vm133_vm7 = vcmp.eq.s32.totalorder %v120_v29, %v131_v40 }
 0x210   :  { %v234_v43 = vsel %vm133_vm7, 1.0, %v275_v0  ;;  %267 = vpow2.f32 %v170_v51 }
 0x211   :  { %v141_v46 = vmul.f32 %v234_v43, %v115_v15  ;;  %269 = vpow2.f32 %v172_v52 }
 0x213   :  { %v147_v47 = vsel %vm146_vm4, %v141_v46, 0.0 }
 0x215   :  { %v264_v41 = vpop.eup %263 }
 0x216   :  { %v192_v42 = vsel %vm142_vm3, %v264_v41, 0.0 }
 0x217   :  { %193 = vadd.xlane.f32.xlu1 %v192_v42 }
 0x219   :  { %v266_v44 = vpop.eup %265 }
 0x21a   :  { %v195_v45 = vsel %vm146_vm4, %v266_v44, 0.0  ;;  %v268_v53 = vpop.eup %267 }
 0x21b   :  { %196 = vadd.xlane.f32.xlu1 %v195_v45  ;;  %v174_v55 = vmul.f32 %v268_v53, %v166_v54  ;;  %v270_v56 = vpop.eup %269 }
 0x21c   :  { %v175_v60 = vmul.f32 %v270_v56, %v167_v58 }
 0x21f   :  { %148 = vadd.xlane.f32.xlu1 %v147_v47 }
 0x223   :  { %v145_v49 = vpop.xlane.xlu0 %144 }
 0x224   :  { %v150_v50 = vadd.f32 %v145_v49, %v138_v48 }
 0x226   :  { %153 = vst.msk [vmem:[#allocation4] sm:$0xff] %vm19_vm2, %v150_v50 }
 0x22d   :  { %v217_v9 = vld [vmem:[#allocation4] sm:$0xff] }
 0x2a4   :  { %v194_v57 = vpop.xlane.xlu1 %193 }
 0x2a5   :  { %v198_v59 = vadd.f32 %v194_v57, %v174_v55 }
 0x2a7   :  { %200 = vst.msk [vmem:[#allocation3] sm:$0xff] %vm19_vm2, %v198_v59 }
 0x2a8   :  { %v197_v61 = vpop.xlane.xlu1 %196 }
 0x2a9   :  { %v199_v62 = vadd.f32 %v197_v61, %v175_v60 }
 0x2ab   :  { %201 = vst.msk [vmem:[#allocation3 + $0x8] sm:$0x3f] %vm21_vm5, %v199_v62 }
 0x2ac   :  { %v149_v0 = vpop.xlane.xlu1 %148 }
 0x2ad   :  { %v151_v1 = vadd.f32 %v149_v0, %v139_v63 }
 0x2ae   :  { %v209_v2 = vld [vmem:[#allocation3] sm:$0xff] }
 0x2af   :  { %271 = vlog2.f32 %v209_v2  ;;  %155 = vst.msk [vmem:[#allocation4 + $0x8] sm:$0x3f] %vm21_vm5, %v151_v1 }
 0x2b2   :  { %v210_v3 = vld [vmem:[#allocation3 + $0x8] sm:$0x3f] }
 0x2b3   :  { %273 = vlog2.f32 %v210_v3 }
 0x2b6   :  { %v218_v14 = vld [vmem:[#allocation4 + $0x8] sm:$0x3f] }
 0x2b9   :  { %v272_v4 = vpop.eup %271 }
 0x2ba   :  { %v212_v5 = vmul.f32 0.6931472, %v272_v4 }
 0x2bc   :  { %v215_v7 = vadd.f32 %v212_v5, %v207_v6 }
 0x2bd   :  { %v274_v8 = vpop.eup %273 }
 0x2be   :  { %v219_v10 = vsub.f32 %v215_v7, %v217_v9  ;;  %v214_v11 = vmul.f32 0.6931472, %v274_v8 }
 0x2c0   :  { %v216_v13 = vadd.f32 %v214_v11, %v208_v12  ;;  %221 = vst.msk [vmem:[%s365_s3] sm:$0xff] %vm19_vm2, %v219_v10 }
 0x2c2   :  { %v220_v15 = vsub.f32 %v216_v13, %v218_v14 }
 0x2c4   :  { %222 = vst.msk [vmem:[%s365_s3 + $0x8] sm:$0x3f] %vm21_vm5, %v220_v15 }

</bundles_post_ra>
